<compile_context>
chip_gen: v7x
topology: tpu7x:2x2x1
jax: 0.10.0
libtpu: 0.0.40
codegen_flags: <defaults>
</compile_context>

<pallas_src>
import functools

import jax
import jax.numpy as jnp
from jax.experimental import pallas as pl
from jax.experimental.pallas import tpu as pltpu

EPS = 1e-5          # nn.BatchNorm2d default
LANE = 128          # TPU lane width -> channel padding granularity


def _round_up(c, m=LANE):
    return ((c + m - 1) // m) * m


def _vmem_limit_bytes():
    """~half of physical VMEM: 64 MiB on v5e/v6e (128 MiB parts), 32 MiB on v7x."""
    try:
        cap = int(pltpu.get_tpu_info().vmem_capacity_bytes)
    except Exception:
        cap = 64 * 1024 * 1024
    return int(max(32 * 1024 * 1024, min(cap // 2, 100 * 1024 * 1024)))


def _pick_rows(H, W, var_bytes_per_row, fixed_bytes, budget, max_tile_elems=None):
    """Largest divisor th of H whose estimated VMEM footprint fits the budget."""
    best = 1
    for th in range(1, H + 1):
        if H % th:
            continue
        if max_tile_elems is not None and th * W > max_tile_elems:
            continue
        if fixed_bytes + th * var_bytes_per_row <= budget:
            best = th
    return best


# ---------------------------------------------------------------------------
# Pass 1: 3x3 conv (padding=1) via width-im2col + per-tile (sum, centered M2)
# ---------------------------------------------------------------------------
def conv_stats_kernel(x_ref, w_ref, conv_ref, stats_ref, acc_ref):
    """x_ref:     (1, H+2, W+2, Ci)  zero-padded NHWC input (bf16/f32)
       w_ref:     (3, 3*Ci, Co)      weights with (dx, ci) folded into K
       conv_ref:  (1, TH, W, Co)     conv output tile (activation dtype)
       stats_ref: (1, 1, 2, Co) f32  per-tile [sum, centered second moment]
       acc_ref:   (TH*W, Co) f32     VMEM accumulator scratch
    """
    TH, W, Co = conv_ref.shape[1], conv_ref.shape[2], conv_ref.shape[3]
    K = w_ref.shape[1]

    row0 = pl.multiple_of(pl.program_id(1) * TH, TH)
    xs = x_ref[0, pl.ds(row0, TH + 2), :, :]                     # (TH+2, W+2, Ci)

    # width-im2col: 3 dx-shifted slabs built ONCE per tile, placed at 128-aligned
    # lane offsets; the dy slices / reshapes below are copy-free (major dims only).
    xcat = jnp.concatenate(
        [xs[:, 0:W, :], xs[:, 1:W + 1, :], xs[:, 2:W + 2, :]], axis=-1)  # (TH+2, W, 3*Ci)

    # 3 MXU matmuls with K = 3*Ci, accumulated in place into one f32 ref.
    acc_ref[...] = jnp.dot(xcat[0:TH].reshape(TH * W, K), w_ref[0],
                           preferred_element_type=jnp.float32)
    acc_ref[...] += jnp.dot(xcat[1:TH + 1].reshape(TH * W, K), w_ref[1],
                            preferred_element_type=jnp.float32)
    acc_ref[...] += jnp.dot(xcat[2:TH + 2].reshape(TH * W, K), w_ref[2],
                            preferred_element_type=jnp.float32)

    acc = acc_ref[...]
    conv_ref[0] = acc.reshape(TH, W, Co).astype(conv_ref.dtype)

    # Per-tile shifted statistics (tile mean + centered M2) in f32: Chan/Welford
    # combination in the wrapper avoids E[x^2]-E[x]^2 cancellation at scale.
    s = jnp.sum(acc, axis=0, keepdims=True)                      # (1, Co)
    mu = s * (1.0 / (TH * W))
    d = acc - mu
    m2 = jnp.sum(d * d, axis=0, keepdims=True)                   # (1, Co)
    stats_ref[0, 0] = jnp.concatenate([s, m2], axis=0)           # (2, Co)


# ---------------------------------------------------------------------------
# Pass 2: per-channel affine (folded BN) + ReLU  (pure bandwidth-bound FMA)
# ---------------------------------------------------------------------------
def bn_relu_kernel(conv_ref, scale_ref, shift_ref, o_ref):
    Co = conv_ref.shape[-1]
    scale = scale_ref[...].reshape(1, 1, 1, Co)
    shift = shift_ref[...].reshape(1, 1, 1, Co)
    y = conv_ref[...].astype(jnp.float32) * scale + shift
    o_ref[...] = jnp.maximum(y, 0.0).astype(o_ref.dtype)


# ---------------------------------------------------------------------------
# NHWC / lane-padded core (chainable between layers without transposes)
# ---------------------------------------------------------------------------
def conv_bn_relu_nhwc(x_p, w3, gamma_p, beta_p):
    """x_p: (N, H, W, Ci_p) lane-padded NHWC (bf16/f32); w3: (3, 3*Ci_p, Co_p);
       gamma_p/beta_p: (Co_p,) f32, ZERO-padded.  Returns (N, H, W, Co_p), x_p.dtype."""
    N, H, W, Ci = x_p.shape
    K, Co = w3.shape[1], w3.shape[2]
    act_dtype = x_p.dtype
    ib = jnp.dtype(act_dtype).itemsize
    vmem_limit = _vmem_limit_bytes()
    budget = int(vmem_limit * 0.7)

    # ---- Pass 1: conv + stats ----------------------------------------------
    fixed = 2 * (H + 2) * (W + 2) * Ci * ib + 2 * 3 * K * Co * ib   # x (dbl-buf) + weights
    per_row = W * Co * 4 + W * K * ib + 2 * W * Co * ib             # acc + xcat + conv out
    tile_h = _pick_rows(H, W, per_row, fixed, budget, max_tile_elems=2048)
    if N == 1 and tile_h == H and H % 2 == 0:
        tile_h = H // 2          # keep parallel grid extent >= 2 (v7x megacore)
    n_h = H // tile_h

    x_pad = jnp.pad(x_p, ((0, 0), (1, 1), (1, 1), (0, 0)))          # spatial padding=1
    Hp, Wp = H + 2, W + 2

    conv, stats = pl.pallas_call(
        conv_stats_kernel,
        grid=(N, n_h),
        out_shape=(jax.ShapeDtypeStruct((N, H, W, Co), act_dtype),
                   jax.ShapeDtypeStruct((N, n_h, 2, Co), jnp.float32)),
        in_specs=[
            pl.BlockSpec((1, Hp, Wp, Ci), lambda n, h: (n, 0, 0, 0)),
            pl.BlockSpec((3, K, Co), lambda n, h: (0, 0, 0)),
        ],
        out_specs=(
            pl.BlockSpec((1, tile_h, W, Co), lambda n, h: (n, h, 0, 0)),
            pl.BlockSpec((1, 1, 2, Co), lambda n, h: (n, h, 0, 0)),
        ),
        scratch_shapes=[pltpu.VMEM((tile_h * W, Co), jnp.float32)],
        compiler_params=pltpu.CompilerParams(
            dimension_semantics=("parallel", "parallel"),
            vmem_limit_bytes=vmem_limit),
    )(x_pad, w3)

    # ---- Fold batch statistics into scale/shift (tiny, f32, plain JAX) -----
    cnt_tile = float(tile_h * W)
    cnt = float(N * H * W)
    s_t = stats[:, :, 0, :]                                   # (N, n_h, Co)
    m2_t = stats[:, :, 1, :]
    mean = jnp.sum(s_t, axis=(0, 1)) / cnt
    mu_t = s_t / cnt_tile
    m2 = jnp.sum(m2_t, axis=(0, 1)) + cnt_tile * jnp.sum((mu_t - mean) ** 2, axis=(0, 1))
    var = jnp.maximum(m2 / cnt, 0.0)                          # biased batch variance
    inv_std = jax.lax.rsqrt(var + EPS)
    # NOTE: gamma_p MUST be zero-padded so padded lanes (inv_std = 1/sqrt(eps)) stay 0.
    scale = (gamma_p * inv_std).reshape(1, Co).astype(jnp.float32)
    shift = (beta_p - mean * gamma_p * inv_std).reshape(1, Co).astype(jnp.float32)

    # ---- Pass 2: affine + ReLU, large row slabs, aliased onto conv buffer --
    per_row2 = 2 * W * Co * 2 * ib                            # in + out, double-buffered
    tile_h2 = _pick_rows(H, W, per_row2, 0, budget)
    if N == 1 and tile_h2 == H and H % 2 == 0:
        tile_h2 = H // 2
    n_h2 = H // tile_h2

    out = pl.pallas_call(
        bn_relu_kernel,
        grid=(N, n_h2),
        out_shape=jax.ShapeDtypeStruct((N, H, W, Co), act_dtype),
        in_specs=[
            pl.BlockSpec((1, tile_h2, W, Co), lambda n, h: (n, h, 0, 0)),
            pl.BlockSpec((1, Co), lambda n, h: (0, 0)),
            pl.BlockSpec((1, Co), lambda n, h: (0, 0)),
        ],
        out_specs=pl.BlockSpec((1, tile_h2, W, Co), lambda n, h: (n, h, 0, 0)),
        input_output_aliases={0: 0},                          # reuse conv buffer in place
        compiler_params=pltpu.CompilerParams(
            dimension_semantics=("parallel", "parallel"),
            vmem_limit_bytes=vmem_limit),
    )(conv, scale, shift)
    return out


# ---------------------------------------------------------------------------
# Parameter packing + PyTorch-compatible (NCHW) wrappers
# ---------------------------------------------------------------------------
def _pack_weight(weight_oihw, ci_p, co_p, dtype):
    co, ci, kh, kw = weight_oihw.shape
    w = jnp.transpose(weight_oihw, (2, 3, 1, 0))              # HWIO (3, 3, Ci, Co)
    w = jnp.pad(w, ((0, 0), (0, 0), (0, ci_p - ci), (0, co_p - co)))
    return w.reshape(kh, kw * ci_p, co_p).astype(dtype)       # (3, 3*Ci_p, Co_p)


def _pad_channels_last(a, c_p):
    return jnp.pad(a, ((0, 0),) * (a.ndim - 1) + ((0, c_p - a.shape[-1]),))


def conv_batch_norm(x_nchw, weight, bias, gamma, beta, *, compute_dtype=jnp.bfloat16):
    """ConvBatchNorm.forward, NCHW in/out like the PyTorch module.  `bias` is
    accepted for API parity but unused: a conv bias immediately followed by
    training-mode BatchNorm is cancelled exactly by the mean subtraction.
    TODO(synk): re-add the bias if reused with eval-mode (running-stat) BN."""
    del bias
    N, Cin, H, W = x_nchw.shape
    Cout = weight.shape[0]
    ci_p, co_p = _round_up(Cin), _round_up(Cout)

    x = _pad_channels_last(jnp.transpose(x_nchw, (0, 2, 3, 1)), ci_p).astype(compute_dtype)
    w3 = _pack_weight(weight, ci_p, co_p, compute_dtype)
    g = jnp.pad(gamma, (0, co_p - Cout)).astype(jnp.float32)
    b = jnp.pad(beta, (0, co_p - Cout)).astype(jnp.float32)

    out = conv_bn_relu_nhwc(x, w3, g, b)
    return jnp.transpose(out[..., :Cout], (0, 3, 1, 2)).astype(x_nchw.dtype)


def double_conv_block(x_nchw, params1, params2, *, compute_dtype=jnp.bfloat16):
    """UNet `_make_nConv(cin, cout, nb_Conv=2)` stage: two ConvBatchNorm layers.
    Activations stay NHWC / lane-padded / compute_dtype between the two layers."""
    N, Cin, H, W = x_nchw.shape
    (w1, _b1, g1, be1), (w2, _b2, g2, be2) = params1, params2
    c1, c2 = w1.shape[0], w2.shape[0]
    ci_p, c1_p, c2_p = _round_up(Cin), _round_up(c1), _round_up(c2)

    x = _pad_channels_last(jnp.transpose(x_nchw, (0, 2, 3, 1)), ci_p).astype(compute_dtype)
    h = conv_bn_relu_nhwc(x, _pack_weight(w1, ci_p, c1_p, compute_dtype),
                          jnp.pad(g1, (0, c1_p - c1)).astype(jnp.float32),
                          jnp.pad(be1, (0, c1_p - c1)).astype(jnp.float32))
    h = conv_bn_relu_nhwc(h, _pack_weight(w2, c1_p, c2_p, compute_dtype),
                          jnp.pad(g2, (0, c2_p - c2)).astype(jnp.float32),
                          jnp.pad(be2, (0, c2_p - c2)).astype(jnp.float32))
    return jnp.transpose(h[..., :c2], (0, 3, 1, 2)).astype(x_nchw.dtype)


# ---------------------------------------------------------------------------
# Pure-JAX reference (matches PyTorch ConvBatchNorm in training mode)
# ---------------------------------------------------------------------------
def reference_block(x, weight, bias, gamma, beta):
    out = jax.lax.conv_general_dilated(
        x, weight, window_strides=(1, 1), padding=((1, 1), (1, 1)),
        dimension_numbers=("NCHW", "OIHW", "NCHW"))
    out = out + bias.reshape(1, -1, 1, 1)
    mean = jnp.mean(out, axis=(0, 2, 3), keepdims=True)
    var = jnp.mean((out - mean) ** 2, axis=(0, 2, 3), keepdims=True)
    out = (out - mean) / jnp.sqrt(var + EPS)
    out = out * gamma.reshape(1, -1, 1, 1) + beta.reshape(1, -1, 1, 1)
    return jnp.maximum(out, 0.0)


if __name__ == "__main__":
    # UNet first encoder stage at a small spatial size:
    # _make_nConv(in_channels=12, out_channels=64, nb_Conv=2)
    N, Cin, Cmid, H, W = 2, 12, 64, 16, 16

    key = jax.random.PRNGKey(0)
    k1, k2, k3, k4, kx = jax.random.split(key, 5)
    w1 = jax.random.normal(k1, (Cmid, Cin, 3, 3), jnp.float32) * 0.1   # conv1.weight
    b1 = jax.random.normal(k2, (Cmid,), jnp.float32) * 0.1             # conv1.bias
    g1 = jnp.ones((Cmid,), jnp.float32)                                 # norm1.weight
    be1 = jnp.zeros((Cmid,), jnp.float32)                               # norm1.bias
    w2 = jax.random.normal(k3, (Cmid, Cmid, 3, 3), jnp.float32) * 0.05  # conv2.weight
    b2 = jax.random.normal(k4, (Cmid,), jnp.float32) * 0.1              # conv2.bias
    g2 = jnp.ones((Cmid,), jnp.float32)
    be2 = jnp.zeros((Cmid,), jnp.float32)
    x = jax.random.normal(kx, (N, Cin, H, W), jnp.float32)

    ref1 = jax.block_until_ready(reference_block(x, w1, b1, g1, be1))
    ref2 = jax.block_until_ready(reference_block(ref1, w2, b2, g2, be2))

    # --- f32 compute path: tight correctness check --------------------------
    cbn_f32 = jax.jit(functools.partial(conv_batch_norm, compute_dtype=jnp.float32))
    dbl_f32 = jax.jit(functools.partial(double_conv_block, compute_dtype=jnp.float32))
    out1 = jax.block_until_ready(cbn_f32(x, w1, b1, g1, be1))
    assert out1.shape == (N, Cmid, H, W), out1.shape
    err = float(jnp.max(jnp.abs(out1 - ref1)))
    assert err < 2e-3, f"f32 single-block mismatch vs reference: {err}"
    out2 = jax.block_until_ready(dbl_f32(x, (w1, b1, g1, be1), (w2, b2, g2, be2)))
    assert out2.shape == (N, Cmid, H, W), out2.shape
    err = float(jnp.max(jnp.abs(out2 - ref2)))
    assert err < 2e-3, f"f32 double-conv mismatch vs reference: {err}"

    # --- bf16 MXU path (default): looser tolerance from bf16 operands +
    #     bf16 conv intermediate (values are O(1) after BN normalization) -----
    cbn_bf16 = jax.jit(conv_batch_norm)
    dbl_bf16 = jax.jit(double_conv_block)
    out1b = jax.block_until_ready(cbn_bf16(x, w1, b1, g1, be1))
    err = float(jnp.max(jnp.abs(out1b - ref1)))
    assert err < 5e-2, f"bf16 single-block mismatch vs reference: {err}"
    out2b = jax.block_until_ready(dbl_bf16(x, (w1, b1, g1, be1), (w2, b2, g2, be2)))
    err = float(jnp.max(jnp.abs(out2b - ref2)))
    assert err < 1e-1, f"bf16 double-conv mismatch vs reference: {err}"

    print("KERNEL_OK")
</pallas_src>

<mosaic_0001>
module attributes {stable_mosaic.version = 11 : i64} {
  func.func @bn_relu_kernel(%arg0: i32, %arg1: i32, %arg2: memref<1x16x16x128xf32, #tpu.memory_space<vmem>>, %arg3: memref<1x128xf32, #tpu.memory_space<vmem>>, %arg4: memref<1x128xf32, #tpu.memory_space<vmem>>, %arg5: memref<1x16x16x128xf32, #tpu.memory_space<vmem>>) attributes {dimension_semantics = [#tpu.dimension_semantics<parallel>, #tpu.dimension_semantics<parallel>], iteration_bounds = array<i64: 2, 1>, scalar_prefetch = 0 : i64, scratch_operands = 0 : i64, tpu.core_type = #tpu.core_type<tc>, window_params = [{transform_indices = @transform_0, window_bounds = array<i64: 1, 16, 16, 128>}, {pipeline_mode = #tpu.pipeline_mode<synchronous>, transform_indices = @transform_1, window_bounds = array<i64: 1, 128>}, {pipeline_mode = #tpu.pipeline_mode<synchronous>, transform_indices = @transform_2, window_bounds = array<i64: 1, 128>}, {transform_indices = @transform_3, window_bounds = array<i64: 1, 16, 16, 128>}]} {
    %c0 = arith.constant 0 : index
    %c0_0 = arith.constant 0 : index
    %0 = vector.load %arg3[%c0, %c0_0] : memref<1x128xf32, #tpu.memory_space<vmem>>, vector<1x128xf32>
    %1 = vector.shape_cast %0 : vector<1x128xf32> to vector<1x1x1x128xf32>
    %c0_1 = arith.constant 0 : index
    %c0_2 = arith.constant 0 : index
    %2 = vector.load %arg4[%c0_1, %c0_2] : memref<1x128xf32, #tpu.memory_space<vmem>>, vector<1x128xf32>
    %3 = vector.shape_cast %2 : vector<1x128xf32> to vector<1x1x1x128xf32>
    %c0_3 = arith.constant 0 : index
    %c0_4 = arith.constant 0 : index
    %c0_5 = arith.constant 0 : index
    %c0_6 = arith.constant 0 : index
    %4 = vector.load %arg2[%c0_3, %c0_4, %c0_5, %c0_6] : memref<1x16x16x128xf32, #tpu.memory_space<vmem>>, vector<1x16x16x128xf32>
    %5 = vector.broadcast %1 : vector<1x1x1x128xf32> to vector<1x16x16x128xf32>
    %6 = arith.mulf %4, %5 : vector<1x16x16x128xf32>
    %7 = vector.broadcast %3 : vector<1x1x1x128xf32> to vector<1x16x16x128xf32>
    %8 = arith.addf %6, %7 : vector<1x16x16x128xf32>
    %cst = arith.constant 0.000000e+00 : f32
    %9 = vector.broadcast %cst : f32 to vector<1x16x16x128xf32>
    %10 = arith.maximumf %8, %9 : vector<1x16x16x128xf32>
    %c0_7 = arith.constant 0 : index
    %c0_8 = arith.constant 0 : index
    %c0_9 = arith.constant 0 : index
    %c0_10 = arith.constant 0 : index
    %11 = vector.load %arg5[%c0_7, %c0_8, %c0_9, %c0_10] : memref<1x16x16x128xf32, #tpu.memory_space<vmem>>, vector<1x16x16x128xf32>
    tpu.vector_store %arg5[%c0_7, %c0_8, %c0_9, %c0_10], %10 {strides = array<i32>} : memref<1x16x16x128xf32, #tpu.memory_space<vmem>>, vector<1x16x16x128xf32>,
    return
  }
  func.func @transform_0(%arg0: i32, %arg1: i32) -> (i32, i32, i32, i32) {
    %c0_i32 = arith.constant 0 : i32
    %c0_i32_0 = arith.constant 0 : i32
    %c0_i32_1 = arith.constant 0 : i32
    return %arg0, %arg1, %c0_i32, %c0_i32_0 : i32, i32, i32, i32
  }
  func.func @transform_1(%arg0: i32, %arg1: i32) -> (i32, i32) {
    %c0_i32 = arith.constant 0 : i32
    %c0_i32_0 = arith.constant 0 : i32
    %c0_i32_1 = arith.constant 0 : i32
    return %c0_i32, %c0_i32_0 : i32, i32
  }
  func.func @transform_2(%arg0: i32, %arg1: i32) -> (i32, i32) {
    %c0_i32 = arith.constant 0 : i32
    %c0_i32_0 = arith.constant 0 : i32
    %c0_i32_1 = arith.constant 0 : i32
    return %c0_i32, %c0_i32_0 : i32, i32
  }
  func.func @transform_3(%arg0: i32, %arg1: i32) -> (i32, i32, i32, i32) {
    %c0_i32 = arith.constant 0 : i32
    %c0_i32_0 = arith.constant 0 : i32
    %c0_i32_1 = arith.constant 0 : i32
    return %arg0, %arg1, %c0_i32, %c0_i32_0 : i32, i32, i32, i32
  }
}

module attributes {stable_mosaic.version = 11 : i64} {
  func.func @conv_stats_kernel(%arg0: i32, %arg1: i32, %arg2: memref<1x18x18x128xf32, #tpu.memory_space<vmem>>, %arg3: memref<3x384x128xf32, #tpu.memory_space<vmem>>, %arg4: memref<1x16x16x128xf32, #tpu.memory_space<vmem>>, %arg5: memref<1x1x2x128xf32, #tpu.memory_space<vmem>>, %arg6: memref<256x128xf32, #tpu.memory_space<vmem>>) attributes {dimension_semantics = [#tpu.dimension_semantics<parallel>, #tpu.dimension_semantics<parallel>], iteration_bounds = array<i64: 2, 1>, scalar_prefetch = 0 : i64, scratch_operands = 1 : i64, tpu.core_type = #tpu.core_type<tc>, window_params = [{transform_indices = @transform_0, window_bounds = array<i64: 1, 18, 18, 128>}, {pipeline_mode = #tpu.pipeline_mode<synchronous>, transform_indices = @transform_1, window_bounds = array<i64: 3, 384, 128>}, {transform_indices = @transform_2, window_bounds = array<i64: 1, 16, 16, 128>}, {transform_indices = @transform_3, window_bounds = array<i64: 1, 1, 2, 128>}]} {
    %c16_i32 = arith.constant 16 : i32
    %0 = arith.muli %arg1, %c16_i32 : i32
    %1 = tpu.assume_multiple %0, 16 : i32
    %c0 = arith.constant 0 : index
    %2 = arith.index_cast %1 : i32 to index
    %c0_0 = arith.constant 0 : index
    %c0_1 = arith.constant 0 : index
    %3 = vector.load %arg2[%c0, %2, %c0_0, %c0_1] : memref<1x18x18x128xf32, #tpu.memory_space<vmem>>, vector<1x18x18x128xf32>
    %4 = vector.shape_cast %3 : vector<1x18x18x128xf32> to vector<18x18x128xf32>
    %5 = vector.extract_strided_slice %4 {offsets = [0, 0, 0], sizes = [18, 16, 128], strides = [1, 1, 1]} : vector<18x18x128xf32> to vector<18x16x128xf32>
    %6 = vector.extract_strided_slice %4 {offsets = [0, 1, 0], sizes = [18, 16, 128], strides = [1, 1, 1]} : vector<18x18x128xf32> to vector<18x16x128xf32>
    %7 = vector.extract_strided_slice %4 {offsets = [0, 2, 0], sizes = [18, 16, 128], strides = [1, 1, 1]} : vector<18x18x128xf32> to vector<18x16x128xf32>
    %8 = tpu.concatenate %5, %6, %7 in 2 : vector<18x16x128xf32>, vector<18x16x128xf32>, vector<18x16x128xf32> -> vector<18x16x384xf32>
    %9 = vector.extract_strided_slice %8 {offsets = [0, 0, 0], sizes = [16, 16, 384], strides = [1, 1, 1]} : vector<18x16x384xf32> to vector<16x16x384xf32>
    %10 = vector.shape_cast %9 : vector<16x16x384xf32> to vector<256x384xf32>
    %c0_2 = arith.constant 0 : index
    %c0_3 = arith.constant 0 : index
    %c0_4 = arith.constant 0 : index
    %11 = vector.load %arg3[%c0_2, %c0_3, %c0_4] : memref<3x384x128xf32, #tpu.memory_space<vmem>>, vector<1x384x128xf32>
    %12 = vector.shape_cast %11 : vector<1x384x128xf32> to vector<384x128xf32>
    %cst = arith.constant dense<0.000000e+00> : vector<256x128xf32>
    %13 = tpu.matmul %10, %12, %cst {dimension_numbers = #tpu.dot_dimension_numbers<[1], [0], [0], [1], [0, 0, 1, 1], [], []>} : vector<256x384xf32>, vector<384x128xf32>, vector<256x128xf32> -> vector<256x128xf32>
    %c0_5 = arith.constant 0 : index
    %c0_6 = arith.constant 0 : index
    %14 = vector.load %arg6[%c0_5, %c0_6] : memref<256x128xf32, #tpu.memory_space<vmem>>, vector<256x128xf32>
    tpu.vector_store %arg6[%c0_5, %c0_6], %13 {strides = array<i32>} : memref<256x128xf32, #tpu.memory_space<vmem>>, vector<256x128xf32>,
    %c0_7 = arith.constant 0 : index
    %c0_8 = arith.constant 0 : index
    %15 = vector.load %arg6[%c0_7, %c0_8] : memref<256x128xf32, #tpu.memory_space<vmem>>, vector<256x128xf32>
    %16 = vector.extract_strided_slice %8 {offsets = [1, 0, 0], sizes = [16, 16, 384], strides = [1, 1, 1]} : vector<18x16x384xf32> to vector<16x16x384xf32>
    %17 = vector.shape_cast %16 : vector<16x16x384xf32> to vector<256x384xf32>
    %c1 = arith.constant 1 : index
    %c0_9 = arith.constant 0 : index
    %c0_10 = arith.constant 0 : index
    %18 = vector.load %arg3[%c1, %c0_9, %c0_10] : memref<3x384x128xf32, #tpu.memory_space<vmem>>, vector<1x384x128xf32>
    %19 = vector.shape_cast %18 : vector<1x384x128xf32> to vector<384x128xf32>
    %cst_11 = arith.constant dense<0.000000e+00> : vector<256x128xf32>
    %20 = tpu.matmul %17, %19, %cst_11 {dimension_numbers = #tpu.dot_dimension_numbers<[1], [0], [0], [1], [0, 0, 1, 1], [], []>} : vector<256x384xf32>, vector<384x128xf32>, vector<256x128xf32> -> vector<256x128xf32>
    %21 = arith.addf %15, %20 : vector<256x128xf32>
    %c0_12 = arith.constant 0 : index
    %c0_13 = arith.constant 0 : index
    %22 = vector.load %arg6[%c0_12, %c0_13] : memref<256x128xf32, #tpu.memory_space<vmem>>, vector<256x128xf32>
    tpu.vector_store %arg6[%c0_12, %c0_13], %21 {strides = array<i32>} : memref<256x128xf32, #tpu.memory_space<vmem>>, vector<256x128xf32>,
    %c0_14 = arith.constant 0 : index
    %c0_15 = arith.constant 0 : index
    %23 = vector.load %arg6[%c0_14, %c0_15] : memref<256x128xf32, #tpu.memory_space<vmem>>, vector<256x128xf32>
    %24 = vector.extract_strided_slice %8 {offsets = [2, 0, 0], sizes = [16, 16, 384], strides = [1, 1, 1]} : vector<18x16x384xf32> to vector<16x16x384xf32>
    %25 = vector.shape_cast %24 : vector<16x16x384xf32> to vector<256x384xf32>
    %c2 = arith.constant 2 : index
    %c0_16 = arith.constant 0 : index
    %c0_17 = arith.constant 0 : index
    %26 = vector.load %arg3[%c2, %c0_16, %c0_17] : memref<3x384x128xf32, #tpu.memory_space<vmem>>, vector<1x384x128xf32>
    %27 = vector.shape_cast %26 : vector<1x384x128xf32> to vector<384x128xf32>
    %cst_18 = arith.constant dense<0.000000e+00> : vector<256x128xf32>
    %28 = tpu.matmul %25, %27, %cst_18 {dimension_numbers = #tpu.dot_dimension_numbers<[1], [0], [0], [1], [0, 0, 1, 1], [], []>} : vector<256x384xf32>, vector<384x128xf32>, vector<256x128xf32> -> vector<256x128xf32>
    %29 = arith.addf %23, %28 : vector<256x128xf32>
    %c0_19 = arith.constant 0 : index
    %c0_20 = arith.constant 0 : index
    %30 = vector.load %arg6[%c0_19, %c0_20] : memref<256x128xf32, #tpu.memory_space<vmem>>, vector<256x128xf32>
    tpu.vector_store %arg6[%c0_19, %c0_20], %29 {strides = array<i32>} : memref<256x128xf32, #tpu.memory_space<vmem>>, vector<256x128xf32>,
    %c0_21 = arith.constant 0 : index
    %c0_22 = arith.constant 0 : index
    %31 = vector.load %arg6[%c0_21, %c0_22] : memref<256x128xf32, #tpu.memory_space<vmem>>, vector<256x128xf32>
    %32 = vector.shape_cast %31 : vector<256x128xf32> to vector<16x16x128xf32>
    %c0_23 = arith.constant 0 : index
    %c0_24 = arith.constant 0 : index
    %c0_25 = arith.constant 0 : index
    %c0_26 = arith.constant 0 : index
    %33 = vector.load %arg4[%c0_23, %c0_24, %c0_25, %c0_26] : memref<1x16x16x128xf32, #tpu.memory_space<vmem>>, vector<1x16x16x128xf32>
    %34 = vector.shape_cast %33 : vector<1x16x16x128xf32> to vector<16x16x128xf32>
    %35 = vector.shape_cast %32 : vector<16x16x128xf32> to vector<1x16x16x128xf32>
    tpu.vector_store %arg4[%c0_23, %c0_24, %c0_25, %c0_26], %35 {strides = array<i32>} : memref<1x16x16x128xf32, #tpu.memory_space<vmem>>, vector<1x16x16x128xf32>,
    %cst_27 = arith.constant dense<0.000000e+00> : vector<128xf32>
    %36 = vector.multi_reduction <add>, %31, %cst_27 [0] : vector<256x128xf32> to vector<128xf32>
    %37 = vector.shape_cast %36 : vector<128xf32> to vector<1x128xf32>
    %cst_28 = arith.constant 3.906250e-03 : f32
    %38 = vector.broadcast %cst_28 : f32 to vector<1x128xf32>
    %39 = arith.mulf %37, %38 : vector<1x128xf32>
    %40 = vector.broadcast %39 : vector<1x128xf32> to vector<256x128xf32>
    %41 = arith.subf %31, %40 : vector<256x128xf32>
    %42 = arith.mulf %41, %41 : vector<256x128xf32>
    %cst_29 = arith.constant dense<0.000000e+00> : vector<128xf32>
    %43 = vector.multi_reduction <add>, %42, %cst_29 [0] : vector<256x128xf32> to vector<128xf32>
    %44 = vector.shape_cast %43 : vector<128xf32> to vector<1x128xf32>
    %45 = tpu.concatenate %37, %44 in 0 : vector<1x128xf32>, vector<1x128xf32> -> vector<2x128xf32>
    %c0_30 = arith.constant 0 : index
    %c0_31 = arith.constant 0 : index
    %c0_32 = arith.constant 0 : index
    %c0_33 = arith.constant 0 : index
    %46 = vector.load %arg5[%c0_30, %c0_31, %c0_32, %c0_33] : memref<1x1x2x128xf32, #tpu.memory_space<vmem>>, vector<1x1x2x128xf32>
    %47 = vector.shape_cast %46 : vector<1x1x2x128xf32> to vector<2x128xf32>
    %48 = vector.shape_cast %45 : vector<2x128xf32> to vector<1x1x2x128xf32>
    tpu.vector_store %arg5[%c0_30, %c0_31, %c0_32, %c0_33], %48 {strides = array<i32>} : memref<1x1x2x128xf32, #tpu.memory_space<vmem>>, vector<1x1x2x128xf32>,
    return
  }
  func.func @transform_0(%arg0: i32, %arg1: i32) -> (i32, i32, i32, i32) {
    %c0_i32 = arith.constant 0 : i32
    %c0_i32_0 = arith.constant 0 : i32
    %c0_i32_1 = arith.constant 0 : i32
    %c0_i32_2 = arith.constant 0 : i32
    return %arg0, %c0_i32, %c0_i32_0, %c0_i32_1 : i32, i32, i32, i32
  }
  func.func @transform_1(%arg0: i32, %arg1: i32) -> (i32, i32, i32) {
    %c0_i32 = arith.constant 0 : i32
    %c0_i32_0 = arith.constant 0 : i32
    %c0_i32_1 = arith.constant 0 : i32
    %c0_i32_2 = arith.constant 0 : i32
    return %c0_i32, %c0_i32_0, %c0_i32_1 : i32, i32, i32
  }
  func.func @transform_2(%arg0: i32, %arg1: i32) -> (i32, i32, i32, i32) {
    %c0_i32 = arith.constant 0 : i32
    %c0_i32_0 = arith.constant 0 : i32
    %c0_i32_1 = arith.constant 0 : i32
    return %arg0, %arg1, %c0_i32, %c0_i32_0 : i32, i32, i32, i32
  }
  func.func @transform_3(%arg0: i32, %arg1: i32) -> (i32, i32, i32, i32) {
    %c0_i32 = arith.constant 0 : i32
    %c0_i32_0 = arith.constant 0 : i32
    %c0_i32_1 = arith.constant 0 : i32
    return %arg0, %arg1, %c0_i32, %c0_i32_0 : i32, i32, i32, i32
  }
}

</mosaic_0001>

<bundles_post_ra>
// kernel: conv_batch_norm.3
= control target key start
LH: loop header
LB: loop body
LE: loop exit
PB: predicated region body
PF: predicated region fallthrough
CT: control target
= control target key end

     0   :  { %s568_s12 = smov 0   ;;  %s570_s13 = smov 0   ;;  %s774_s0 = inlined_call_operand.vmem [shape: f32[2,16,16,128], index: 0, kind: input, shape index: {}, may-alias: {0,3}]   ;;  %s775_s1 = inlined_call_operand.vmem [shape: f32[1,128], index: 1, kind: input, shape index: {}]   ;;  %s776_s2 = inlined_call_operand.vmem [shape: f32[1,128], index: 2, kind: input, shape index: {}]   ;;  %s777_s3 = inlined_call_operand.vmem [shape: f32[2,16,16,128], index: 3, kind: output, shape index: {}, may-alias: {0,3}]  }
   0x1   :  { %s572_s14 = smov 0  }
   0x2 LB: > { %s25_s15 = sadd.s32 1, %s542_s13  ;;  %p489_p0 = scmp.ge.s32.totalorder %s546_s14, 1  ;;  %s546_s14 = sphi %s572_s14, %s13_s14   ;;  %s542_s13 = sphi %s570_s13, %s779_s13   ;;  %s538_s12 = sphi %s568_s12, %s778_s12  }
   0x3   : > { %p27_p1 = scmp.ge.s32.totalorder %s25_s15, 2  ;;  %p159_p2 = scmp.lt.s32.totalorder %s546_s14, 3 }
   0x5   : > { %s781_s15 = smov (%p27_p1, %s25_s15), 0  ;;  %p160_p3 = pnand %p489_p0, %p159_p2 }
   0x6   : > { %p194_p4 = scmp.lt.s32.totalorder (!%p160_p3), %s538_s12, 1  ;;  %v592_v0 = vld [vmem:[%s775_s1] ss:$0 sm:$0xff] (!%p160_p3) }
   0x7   : > { %163 = sbr.rel (%p160_p3) target bundleno = 47 (0x2f), region = 32  ;;  %v604_v1 = vld [vmem:[%s776_s2] ss:$0 sm:$0xff] (!%p160_p3) }
   0xe   : > { %s783_s12 = smov (!%p194_p4, %s538_s12), 1 }
   0xf   : > { %s498_s16 = sshll.u32 %s783_s12, 8 }
  0x10   : > { %s599_s21 = scalar_lea.vmem %s774_s0, %s498_s16  ;;  %s646_s26 = scalar_lea.vmem %s777_s3, %s498_s16 }
  0x11   : > { %v217_v2 = vld [vmem:[%s599_s21] sm:$0xff]  ;;  %v218_v3 = vld [vmem:[%s599_s21 + $0x8] sm:$0xff]  ;;  %v219_v4 = vld [vmem:[%s599_s21 + $0x10] sm:$0xff] }
  0x12   : > { %v220_v5 = vld [vmem:[%s599_s21 + $0x18] sm:$0xff]  ;;  %v221_v6 = vld [vmem:[%s599_s21 + $0x20] sm:$0xff]  ;;  %v222_v7 = vld [vmem:[%s599_s21 + $0x28] sm:$0xff]  ;;  %v255_v8 = vmul.f32 %v592_v0, %v217_v2  ;;  %v256_v9 = vmul.f32 %v592_v0, %v218_v3  ;;  %v257_v10 = vmul.f32 %v592_v0, %v219_v4 }
  0x13   : > { %v223_v11 = vld [vmem:[%s599_s21 + $0x30] sm:$0xff]  ;;  %v224_v12 = vld [vmem:[%s599_s21 + $0x38] sm:$0xff]  ;;  %v258_v13 = vmul.f32 %v592_v0, %v220_v5  ;;  %v259_v14 = vmul.f32 %v592_v0, %v221_v6  ;;  %v260_v15 = vmul.f32 %v592_v0, %v222_v7  ;;  %v225_v20 = vld [vmem:[%s599_s21 + $0x40] sm:$0xff] }
  0x14   : > { %v293_v16 = vadd.f32 %v604_v1, %v255_v8  ;;  %v294_v17 = vadd.f32 %v604_v1, %v256_v9  ;;  %v295_v18 = vadd.f32 %v604_v1, %v257_v10  ;;  %v261_v19 = vmul.f32 %v592_v0, %v223_v11  ;;  %v226_v21 = vld [vmem:[%s599_s21 + $0x48] sm:$0xff]  ;;  %v227_v22 = vld [vmem:[%s599_s21 + $0x50] sm:$0xff]  ;;  %v228_v27 = vld [vmem:[%s599_s21 + $0x58] sm:$0xff] }
  0x15   : > { %v296_v23 = vadd.f32 %v604_v1, %v258_v13  ;;  %v297_v24 = vadd.f32 %v604_v1, %v259_v14  ;;  %v298_v25 = vadd.f32 %v604_v1, %v260_v15  ;;  %v262_v26 = vmul.f32 %v592_v0, %v224_v12  ;;  %v229_v28 = vld [vmem:[%s599_s21 + $0x60] sm:$0xff]  ;;  %v230_v29 = vld [vmem:[%s599_s21 + $0x68] sm:$0xff]  ;;  %v231_v34 = vld [vmem:[%s599_s21 + $0x70] sm:$0xff] }
  0x16   : > { %v325_v30 = vmax.f32 %v293_v16, 0.0  ;;  %v326_v31 = vmax.f32 %v294_v17, 0.0  ;;  %v327_v32 = vmax.f32 %v295_v18, 0.0  ;;  %v299_v33 = vadd.f32 %v604_v1, %v261_v19  ;;  %v232_v39 = vld [vmem:[%s599_s21 + $0x78] sm:$0xff]  ;;  %v233_v44 = vld [vmem:[%s599_s21 + $0x80] sm:$0xff]  ;;  %v234_v45 = vld [vmem:[%s599_s21 + $0x88] sm:$0xff] }
  0x17   : > { %v328_v35 = vmax.f32 %v296_v23, 0.0  ;;  %v329_v36 = vmax.f32 %v297_v24, 0.0  ;;  %v330_v37 = vmax.f32 %v298_v25, 0.0  ;;  %v300_v38 = vadd.f32 %v604_v1, %v262_v26  ;;  %v235_v46 = vld [vmem:[%s599_s21 + $0x90] sm:$0xff]  ;;  %v236_v47 = vld [vmem:[%s599_s21 + $0x98] sm:$0xff]  ;;  %v237_v48 = vld [vmem:[%s599_s21 + $0xa0] sm:$0xff] }
  0x18   : > { %v331_v40 = vmax.f32 %v299_v33, 0.0  ;;  %v263_v41 = vmul.f32 %v592_v0, %v225_v20  ;;  %v264_v42 = vmul.f32 %v592_v0, %v226_v21  ;;  %v265_v43 = vmul.f32 %v592_v0, %v227_v22  ;;  %v238_v49 = vld [vmem:[%s599_s21 + $0xa8] sm:$0xff]  ;;  %v239_v50 = vld [vmem:[%s599_s21 + $0xb0] sm:$0xff]  ;;  %v240_v51 = vld [vmem:[%s599_s21 + $0xb8] sm:$0xff] }
  0x19   : > { %v657_v52 = vld [vmem:[%s599_s21 + $0xc0] sm:$0xff]  ;;  %v660_v53 = vld [vmem:[%s599_s21 + $0xc8] sm:$0xff]  ;;  %v332_v54 = vmax.f32 %v300_v38, 0.0  ;;  %v266_v55 = vmul.f32 %v592_v0, %v228_v27  ;;  %v267_v56 = vmul.f32 %v592_v0, %v229_v28  ;;  %v268_v57 = vmul.f32 %v592_v0, %v230_v29  ;;  %v666_v58 = vld [vmem:[%s599_s21 + $0xd0] sm:$0xff] }
  0x1a   : > { %v669_v59 = vld [vmem:[%s599_s21 + $0xd8] sm:$0xff]  ;;  %v672_v60 = vld [vmem:[%s599_s21 + $0xe0] sm:$0xff]  ;;  %v301_v61 = vadd.f32 %v604_v1, %v263_v41  ;;  %v302_v62 = vadd.f32 %v604_v1, %v264_v42  ;;  %v303_v63 = vadd.f32 %v604_v1, %v265_v43  ;;  %v269_v2 = vmul.f32 %v592_v0, %v231_v34  ;;  %v679_v3 = vld [vmem:[%s599_s21 + $0xe8] sm:$0xff] }
  0x1b   : > { %v682_v4 = vld [vmem:[%s599_s21 + $0xf0] sm:$0xff]  ;;  %v685_v5 = vld [vmem:[%s599_s21 + $0xf8] sm:$0xff]  ;;  %v304_v6 = vadd.f32 %v604_v1, %v266_v55  ;;  %v305_v7 = vadd.f32 %v604_v1, %v267_v56  ;;  %v306_v8 = vadd.f32 %v604_v1, %v268_v57  ;;  %v270_v9 = vmul.f32 %v592_v0, %v232_v39 }
  0x1c   : > { %357 = vst [vmem:[%s646_s26] sm:$0xff] %v325_v30  ;;  %358 = vst [vmem:[%s646_s26 + $0x8] sm:$0xff] %v326_v31  ;;  %v333_v10 = vmax.f32 %v301_v61, 0.0  ;;  %v334_v11 = vmax.f32 %v302_v62, 0.0  ;;  %v335_v12 = vmax.f32 %v303_v63, 0.0  ;;  %v307_v13 = vadd.f32 %v604_v1, %v269_v2 }
  0x1d   : > { %359 = vst [vmem:[%s646_s26 + $0x10] sm:$0xff] %v327_v32  ;;  %360 = vst [vmem:[%s646_s26 + $0x18] sm:$0xff] %v328_v35  ;;  %v336_v14 = vmax.f32 %v304_v6, 0.0  ;;  %v337_v15 = vmax.f32 %v305_v7, 0.0  ;;  %v338_v16 = vmax.f32 %v306_v8, 0.0  ;;  %v308_v17 = vadd.f32 %v604_v1, %v270_v9 }
  0x1e   : > { %361 = vst [vmem:[%s646_s26 + $0x20] sm:$0xff] %v329_v36  ;;  %362 = vst [vmem:[%s646_s26 + $0x28] sm:$0xff] %v330_v37  ;;  %v339_v18 = vmax.f32 %v307_v13, 0.0  ;;  %v271_v19 = vmul.f32 %v592_v0, %v233_v44  ;;  %v272_v20 = vmul.f32 %v592_v0, %v234_v45  ;;  %v273_v21 = vmul.f32 %v592_v0, %v235_v46 }
  0x1f   : > { %363 = vst [vmem:[%s646_s26 + $0x30] sm:$0xff] %v331_v40  ;;  %364 = vst [vmem:[%s646_s26 + $0x38] sm:$0xff] %v332_v54  ;;  %v340_v22 = vmax.f32 %v308_v17, 0.0  ;;  %v274_v23 = vmul.f32 %v592_v0, %v236_v47  ;;  %v275_v24 = vmul.f32 %v592_v0, %v237_v48  ;;  %v276_v25 = vmul.f32 %v592_v0, %v238_v49 }
  0x20   : > { %365 = vst [vmem:[%s646_s26 + $0x40] sm:$0xff] %v333_v10  ;;  %366 = vst [vmem:[%s646_s26 + $0x48] sm:$0xff] %v334_v11  ;;  %v309_v26 = vadd.f32 %v604_v1, %v271_v19  ;;  %v310_v27 = vadd.f32 %v604_v1, %v272_v20  ;;  %v311_v28 = vadd.f32 %v604_v1, %v273_v21 }
  0x21   : > { %367 = vst [vmem:[%s646_s26 + $0x50] sm:$0xff] %v335_v12  ;;  %368 = vst [vmem:[%s646_s26 + $0x58] sm:$0xff] %v336_v14  ;;  %v277_v29 = vmul.f32 %v592_v0, %v239_v50  ;;  %v312_v30 = vadd.f32 %v604_v1, %v274_v23  ;;  %v313_v31 = vadd.f32 %v604_v1, %v275_v24 }
  0x22   : > { %369 = vst [vmem:[%s646_s26 + $0x60] sm:$0xff] %v337_v15  ;;  %370 = vst [vmem:[%s646_s26 + $0x68] sm:$0xff] %v338_v16  ;;  %v314_v32 = vadd.f32 %v604_v1, %v276_v25  ;;  %v278_v33 = vmul.f32 %v592_v0, %v240_v51  ;;  %v341_v34 = vmax.f32 %v309_v26, 0.0  ;;  %v342_v35 = vmax.f32 %v310_v27, 0.0 }
  0x23   : > { %371 = vst [vmem:[%s646_s26 + $0x70] sm:$0xff] %v339_v18  ;;  %372 = vst [vmem:[%s646_s26 + $0x78] sm:$0xff] %v340_v22  ;;  %v343_v36 = vmax.f32 %v311_v28, 0.0  ;;  %v315_v37 = vadd.f32 %v604_v1, %v277_v29  ;;  %v344_v38 = vmax.f32 %v312_v30, 0.0  ;;  %v345_v39 = vmax.f32 %v313_v31, 0.0 }
  0x24   : > { %v346_v40 = vmax.f32 %v314_v32, 0.0  ;;  %v316_v41 = vadd.f32 %v604_v1, %v278_v33  ;;  %373 = vst [vmem:[%s646_s26 + $0x80] sm:$0xff] %v341_v34  ;;  %374 = vst [vmem:[%s646_s26 + $0x88] sm:$0xff] %v342_v35  ;;  %v279_v43 = vmul.f32 %v592_v0, %v657_v52  ;;  %v280_v44 = vmul.f32 %v592_v0, %v660_v53 }
  0x25   : > { %375 = vst [vmem:[%s646_s26 + $0x90] sm:$0xff] %v343_v36  ;;  %v347_v42 = vmax.f32 %v315_v37, 0.0  ;;  %v281_v45 = vmul.f32 %v592_v0, %v666_v58  ;;  %376 = vst [vmem:[%s646_s26 + $0x98] sm:$0xff] %v344_v38  ;;  %v282_v47 = vmul.f32 %v592_v0, %v669_v59  ;;  %v283_v48 = vmul.f32 %v592_v0, %v672_v60 }
  0x26   : > { %377 = vst [vmem:[%s646_s26 + $0xa0] sm:$0xff] %v345_v39  ;;  %378 = vst [vmem:[%s646_s26 + $0xa8] sm:$0xff] %v346_v40  ;;  %v348_v46 = vmax.f32 %v316_v41, 0.0  ;;  %v284_v49 = vmul.f32 %v592_v0, %v679_v3  ;;  %v317_v50 = vadd.f32 %v604_v1, %v279_v43  ;;  %v318_v51 = vadd.f32 %v604_v1, %v280_v44 }
  0x27   : > { %379 = vst [vmem:[%s646_s26 + $0xb0] sm:$0xff] %v347_v42  ;;  %v319_v52 = vadd.f32 %v604_v1, %v281_v45  ;;  %v285_v53 = vmul.f32 %v592_v0, %v682_v4  ;;  %v320_v54 = vadd.f32 %v604_v1, %v282_v47  ;;  %v321_v55 = vadd.f32 %v604_v1, %v283_v48 }
  0x28   : > { %380 = vst [vmem:[%s646_s26 + $0xb8] sm:$0xff] %v348_v46  ;;  %v322_v56 = vadd.f32 %v604_v1, %v284_v49  ;;  %v286_v57 = vmul.f32 %v592_v0, %v685_v5  ;;  %v349_v58 = vmax.f32 %v317_v50, 0.0  ;;  %v350_v59 = vmax.f32 %v318_v51, 0.0 }
  0x29   : > { %v351_v60 = vmax.f32 %v319_v52, 0.0  ;;  %v323_v61 = vadd.f32 %v604_v1, %v285_v53  ;;  %v352_v62 = vmax.f32 %v320_v54, 0.0  ;;  %v353_v63 = vmax.f32 %v321_v55, 0.0 }
  0x2a   : > { %v354_v2 = vmax.f32 %v322_v56, 0.0  ;;  %v324_v3 = vadd.f32 %v604_v1, %v286_v57  ;;  %381 = vst [vmem:[%s646_s26 + $0xc0] sm:$0xff] %v349_v58  ;;  %382 = vst [vmem:[%s646_s26 + $0xc8] sm:$0xff] %v350_v59 }
  0x2b   : > { %383 = vst [vmem:[%s646_s26 + $0xd0] sm:$0xff] %v351_v60  ;;  %v355_v4 = vmax.f32 %v323_v61, 0.0  ;;  %384 = vst [vmem:[%s646_s26 + $0xd8] sm:$0xff] %v352_v62 }
  0x2c   : > { %385 = vst [vmem:[%s646_s26 + $0xe0] sm:$0xff] %v353_v63  ;;  %386 = vst [vmem:[%s646_s26 + $0xe8] sm:$0xff] %v354_v2  ;;  %v356_v0 = vmax.f32 %v324_v3, 0.0 }
  0x2d   : > { %387 = vst [vmem:[%s646_s26 + $0xf0] sm:$0xff] %v355_v4 }
  0x2e   : > { %388 = vst [vmem:[%s646_s26 + $0xf8] sm:$0xff] %v356_v0 }
  0x2f PF: > { %s13_s14 = sadd.s32 1, %s546_s14   ;;  %s778_s12 = smov %s542_s13 }
  0x30   : > { %p10_p5 = scmp.ge.s32.totalorder %s13_s14, 4   ;;  %s779_s13 = smov %s781_s15 }
  0x32   :  { %12 = sbr.rel (!%p10_p5) target bundleno = 2 (0x2), region = 62 }

// kernel: conv_batch_norm.2
= control target key start
LH: loop header
LB: loop body
LE: loop exit
PB: predicated region body
PF: predicated region fallthrough
CT: control target
= control target key end

     0   :  { %s3467_s12 = smov 0   ;;  %s3469_s13 = smov 0   ;;  %s5365_s0 = inlined_call_operand.vmem [shape: f32[2,18,18,128], index: 0, kind: input, shape index: {}]   ;;  %s5366_s1 = inlined_call_operand.vmem [shape: f32[3,384,128], index: 1, kind: input, shape index: {}]   ;;  %s5367_s2 = inlined_call_operand.vmem [shape: f32[2,16,16,128], index: 2, kind: output, shape index: {0}]   ;;  %s5368_s3 = inlined_call_operand.vmem [shape: f32[2,1,2,128], index: 3, kind: output, shape index: {1}]  }
   0x1   :  { %s3471_s14 = smov 0  }
   0x2 LB: > { %s26_s15 = sadd.s32 1, %s3440_s13  ;;  %p2640_p0 = scmp.ge.s32.totalorder %s3444_s14, 1  ;;  %s3444_s14 = sphi %s3471_s14, %s14_s14   ;;  %s3440_s13 = sphi %s3469_s13, %s5503_s13   ;;  %s3436_s12 = sphi %s3467_s12, %s5502_s12  }
   0x3   : > { %p28_p1 = scmp.ge.s32.totalorder %s26_s15, 2  ;;  %p156_p2 = scmp.lt.s32.totalorder %s3444_s14, 3 }
   0x5   : > { %s5505_s15 = smov (%p28_p1, %s26_s15), 0  ;;  %p157_p3 = pnand %p2640_p0, %p156_p2 }
   0x7   : > { %160 = sbr.rel (%p157_p3) target bundleno = 678 (0x2a6), region = 28 }
   0xe   : > { %v580_v0 = vld [vmem:[%s5366_s1] sm:$0xff]  ;;  %v581_v1 = vld [vmem:[%s5366_s1 + $0x8] sm:$0xff]  ;;  %p192_p4 = scmp.lt.s32.totalorder %s3436_s12, 1  ;;  %v5369_v3 = vmov 0.0|0.0   ;;  %v582_v6 = vld [vmem:[%s5366_s1 + $0x10] sm:$0xff]  ;;  %vm453_vm0 = vcmask 1045504  }
   0xf   : > { %v612_v2 = vld [vmem:[%s5366_s1 + $0x100] sm:$0xff]  ;;  %3128 = vmatprep.subr.bf16.mxu0 %v5369_v3  ;;  %v3129_v4 = vpack.c.bf16 %v581_v1, %v580_v0  ;;  %v613_v5 = vld [vmem:[%s5366_s1 + $0x108] sm:$0xff]  ;;  %v583_v7 = vld [vmem:[%s5366_s1 + $0x18] sm:$0xff]  ;;  %vm326_vm1 = vcmask 1046528   ;;  %vm2503_vm2 = vcmask 1040384  }
  0x10   : > { %v3176_v8 = vpack.c.bf16 %v613_v5, %v612_v2  ;;  %v614_v9 = vld [vmem:[%s5366_s1 + $0x110] sm:$0xff]  ;;  %v615_v10 = vld [vmem:[%s5366_s1 + $0x118] sm:$0xff]  ;;  %s5507_s12 = smov (!%p192_p4, %s3436_s12), 1  ;;  %v3132_v11 = vpack.c.bf16 %v583_v7, %v582_v6  ;;  %v616_v13 = vld [vmem:[%s5366_s1 + $0x120] sm:$0xff] }
  0x11   : > { %3130 = vmatpush1.bf16.msra.mxu0 %v3129_v4  ;;  %v3180_v12 = vpack.c.bf16 %v615_v10, %v614_v9  ;;  %v617_v14 = vld [vmem:[%s5366_s1 + $0x128] sm:$0xff]  ;;  %v584_v15 = vld [vmem:[%s5366_s1 + $0x20] sm:$0xff]  ;;  %s3368_s17 = smul.u32 432, %s5507_s12  ;;  %v618_v19 = vld [vmem:[%s5366_s1 + $0x130] sm:$0xff]  ;;  %s2644_s23 = sshll.u32 %s5507_s12, 1 }
  0x12   : > { %3177 = vmatprep.subr.bf16.mxu1 %v3176_v8  ;;  %3131 = vmatprep.subr.bf16.mxu0 %v5369_v3  ;;  %v585_v16 = vld [vmem:[%s5366_s1 + $0x28] sm:$0xff]  ;;  %v3184_v17 = vpack.c.bf16 %v617_v14, %v616_v13  ;;  %v619_v20 = vld [vmem:[%s5366_s1 + $0x138] sm:$0xff]  ;;  %v586_v21 = vld [vmem:[%s5366_s1 + $0x30] sm:$0xff]  ;;  %s214_s27 = scalar_lea.vmem %s5368_s3, %s2644_s23 }
  0x13   : > { %3179 = vmatpush3.bf16.msra.mxu1 %v3176_v8  ;;  %v3135_v18 = vpack.c.bf16 %v585_v16, %v584_v15  ;;  %s3535_s24 = scalar_lea.vmem %s5365_s0, %s3368_s17  ;;  %v587_v22 = vld [vmem:[%s5366_s1 + $0x38] sm:$0xff]  ;;  %v3188_v23 = vpack.c.bf16 %v619_v20, %v618_v19  ;;  %v620_v26 = vld [vmem:[%s5366_s1 + $0x140] sm:$0xff]  ;;  %v621_v27 = vld [vmem:[%s5366_s1 + $0x148] sm:$0xff] }
  0x14   : > { %3181 = vmatprep.subr.bf16.mxu1 %v3180_v12  ;;  %v3545_v24 = vld [vmem:[%s3535_s24] sm:$0xff]  ;;  %v3138_v25 = vpack.c.bf16 %v587_v22, %v586_v21  ;;  %v3554_v28 = vld [vmem:[%s3535_s24 + $0x8] sm:$0xff]  ;;  %v3192_v35 = vpack.c.bf16 %v621_v27, %v620_v26  ;;  %v622_v39 = vld [vmem:[%s5366_s1 + $0x150] sm:$0xff] }
  0x15   : > { %3133 = vmatpush1.bf16.msra.mxu0 %v3132_v11  ;;  %v454_v29 = vrot.slane %v3545_v24, 2  ;;  %v327_v30 = vrot.slane %v3545_v24, 1  ;;  %v588_v31 = vld [vmem:[%s5366_s1 + $0x40] sm:$0xff]  ;;  %v589_v32 = vld [vmem:[%s5366_s1 + $0x48] sm:$0xff]  ;;  %v455_v33 = vrot.slane %v3554_v28, 2  ;;  %v328_v34 = vrot.slane %v3554_v28, 1 }
  0x16   : > { %3134 = vmatprep.subr.bf16.mxu0 %v5369_v3  ;;  %v3141_v38 = vpack.c.bf16 %v589_v32, %v588_v31  ;;  %v623_v40 = vld [vmem:[%s5366_s1 + $0x158] sm:$0xff]  ;;  %v590_v41 = vld [vmem:[%s5366_s1 + $0x50] sm:$0xff]  ;;  %v624_v45 = vld [vmem:[%s5366_s1 + $0x160] sm:$0xff] }
  0x17   : > { %3183 = vmatpush3.bf16.msra.mxu1 %v3180_v12  ;;  %v456_v36 = vsel %vm453_vm0, %v454_v29, %v455_v33  ;;  %v329_v37 = vsel %vm326_vm1, %v327_v30, %v328_v34  ;;  %v591_v42 = vld [vmem:[%s5366_s1 + $0x58] sm:$0xff]  ;;  %v3196_v43 = vpack.c.bf16 %v623_v40, %v622_v39  ;;  %v625_v46 = vld [vmem:[%s5366_s1 + $0x168] sm:$0xff]  ;;  %v592_v47 = vld [vmem:[%s5366_s1 + $0x60] sm:$0xff] }
  0x18   : > { %3185 = vmatprep.subr.bf16.mxu1 %v3184_v17  ;;  %2920 = vmatprep.mubr.f32.mxu1 %v456_v36  ;;  %v3144_v44 = vpack.c.bf16 %v591_v42, %v590_v41  ;;  %v593_v48 = vld [vmem:[%s5366_s1 + $0x68] sm:$0xff]  ;;  %v3200_v49 = vpack.c.bf16 %v625_v46, %v624_v45  ;;  %v626_v51 = vld [vmem:[%s5366_s1 + $0x170] sm:$0xff]  ;;  %v627_v52 = vld [vmem:[%s5366_s1 + $0x178] sm:$0xff] }
  0x19   : > { %3136 = vmatpush1.bf16.msra.mxu0 %v3135_v18  ;;  %692 = vmatprep.mubr.f32.mxu0 %v329_v37  ;;  %v3147_v50 = vpack.c.bf16 %v593_v48, %v592_v47  ;;  %v594_v53 = vld [vmem:[%s5366_s1 + $0x70] sm:$0xff]  ;;  %v595_v54 = vld [vmem:[%s5366_s1 + $0x78] sm:$0xff]  ;;  %v3204_v55 = vpack.c.bf16 %v627_v52, %v626_v51  ;;  %v3619_v59 = vld [vmem:[%s3535_s24 + $0x20] sm:$0xff] }
  0x1a   : > { %3137 = vmatprep.subr.bf16.mxu0 %v5369_v3  ;;  %v3613_v56 = vld [vmem:[%s3535_s24 + $0x10] sm:$0x3]  ;;  %v3150_v57 = vpack.c.bf16 %v595_v54, %v594_v53  ;;  %v3616_v58 = vld [vmem:[%s3535_s24 + $0x18] sm:$0xff]  ;;  %v596_v60 = vld [vmem:[%s5366_s1 + $0x80] sm:$0xff]  ;;  %v460_v2 = vrot.slane %v3619_v59, 2 }
  0x1b   : > { %3187 = vmatpush3.bf16.msra.mxu1 %v3184_v17  ;;  %v597_v61 = vld [vmem:[%s5366_s1 + $0x88] sm:$0xff]  ;;  %v457_v62 = vrot.slane %v3613_v56, 2  ;;  %v2645_v63 = vld [vmem:[%s5366_s1 + $0x180] sm:$0xff]  ;;  %v459_v1 = vrot.slane %v3616_v58, 2  ;;  %v3641_v6 = vld [vmem:[%s3535_s24 + $0x30] sm:$0xff] }
  0x1c   : > { %3189 = vmatprep.subr.bf16.mxu1 %v3188_v23  ;;  %v2646_v0 = vld [vmem:[%s5366_s1 + $0x188] sm:$0xff]  ;;  %v3153_v5 = vpack.c.bf16 %v597_v61, %v596_v60  ;;  %v3644_v7 = vld [vmem:[%s3535_s24 + $0x38] sm:$0xff]  ;;  %v598_v8 = vld [vmem:[%s5366_s1 + $0x90] sm:$0xff]  ;;  %v464_v16 = vrot.slane %v3641_v6, 2 }
  0x1d   : > { %3139 = vmatpush1.bf16.msra.mxu0 %v3138_v25  ;;  %v3638_v4 = vld [vmem:[%s3535_s24 + $0x28] sm:$0x3]  ;;  %v599_v9 = vld [vmem:[%s5366_s1 + $0x98] sm:$0xff]  ;;  %v458_v10 = vsel %vm453_vm0, %v455_v33, %v457_v62  ;;  %v3209_v11 = vpack.c.bf16 %v2646_v0, %v2645_v63  ;;  %v3659_v13 = vsel %vm453_vm0, %v459_v1, %v460_v2  ;;  %v2647_v14 = vld [vmem:[%s5366_s1 + $0x190] sm:$0xff]  ;;  %v465_v17 = vrot.slane %v3644_v7, 2 }
  0x1e   : > { %3140 = vmatprep.subr.bf16.mxu0 %v5369_v3  ;;  %v462_v12 = vrot.slane %v3638_v4, 2  ;;  %5429 = vst [vmem:[#allocation3_spill] sm:$0xff] %v3659_v13  ;;  %v2648_v15 = vld [vmem:[%s5366_s1 + $0x198] sm:$0xff]  ;;  %v3670_v18 = vld [vmem:[%s3535_s24 + $0x40] sm:$0x3]  ;;  %v3156_v19 = vpack.c.bf16 %v599_v9, %v598_v8  ;;  %v3673_v20 = vld [vmem:[%s3535_s24 + $0x48] sm:$0xff] }
  0x1f   : > { %3191 = vmatpush3.bf16.msra.mxu1 %v3188_v23  ;;  %v3676_v21 = vld [vmem:[%s3535_s24 + $0x50] sm:$0xff]  ;;  %v600_v22 = vld [vmem:[%s5366_s1 + $0xa0] sm:$0xff]  ;;  %v601_v23 = vld [vmem:[%s5366_s1 + $0xa8] sm:$0xff]  ;;  %v3212_v26 = vpack.c.bf16 %v2648_v15, %v2647_v14  ;;  %v467_v27 = vrot.slane %v3670_v18, 2  ;;  %v3692_v29 = vsel %vm453_vm0, %v464_v16, %v465_v17  ;;  %v469_v32 = vrot.slane %v3673_v20, 2 }
  0x20   : > { %3193 = vmatprep.subr.bf16.mxu1 %v3192_v35  ;;  %v3687_v25 = vsel %vm453_vm0, %v460_v2, %v462_v12  ;;  %5431 = vst [vmem:[#allocation5_spill] sm:$0xff] %v3692_v29  ;;  %v2649_v30 = vld [vmem:[%s5366_s1 + $0x1a0] sm:$0xff]  ;;  %v2650_v31 = vld [vmem:[%s5366_s1 + $0x1a8] sm:$0xff]  ;;  %v470_v33 = vrot.slane %v3676_v21, 2  ;;  %v3159_v36 = vpack.c.bf16 %v601_v23, %v600_v22  ;;  %v602_v39 = vld [vmem:[%s5366_s1 + $0xb0] sm:$0xff] }
  0x21   : > { %3142 = vmatpush1.bf16.msra.mxu0 %v3141_v38  ;;  %5430 = vst [vmem:[#allocation4_spill] sm:$0xff] %v3687_v25  ;;  %v3706_v37 = vld [vmem:[%s3535_s24 + $0x60] sm:$0xff]  ;;  %v3709_v38 = vld [vmem:[%s3535_s24 + $0x68] sm:$0xff]  ;;  %v603_v40 = vld [vmem:[%s5366_s1 + $0xb8] sm:$0xff]  ;;  %v3721_v41 = vsel %vm453_vm0, %v465_v17, %v467_v27  ;;  %v3215_v42 = vpack.c.bf16 %v2650_v31, %v2649_v30 }
  0x22   : > { %3143 = vmatprep.subr.bf16.mxu0 %v5369_v3  ;;  %5432 = vst [vmem:[#allocation6_spill] sm:$0xff] %v3721_v41  ;;  %v2651_v45 = vld [vmem:[%s5366_s1 + $0x1b0] sm:$0xff]  ;;  %v2652_v46 = vld [vmem:[%s5366_s1 + $0x1b8] sm:$0xff]  ;;  %v474_v47 = vrot.slane %v3706_v37, 2  ;;  %v475_v48 = vrot.slane %v3709_v38, 2  ;;  %v3743_v52 = vld [vmem:[%s3535_s24 + $0x80] sm:$0xff] }
  0x23   : > { %3195 = vmatpush3.bf16.msra.mxu1 %v3192_v35  ;;  %v3703_v35 = vld [vmem:[%s3535_s24 + $0x58] sm:$0x3]  ;;  %v604_v53 = vld [vmem:[%s5366_s1 + $0xc0] sm:$0xff]  ;;  %v605_v54 = vld [vmem:[%s5366_s1 + $0xc8] sm:$0xff]  ;;  %v480_v1 = vrot.slane %v3743_v52, 2 }
  0x24   : > { %3197 = vmatprep.subr.bf16.mxu1 %v3196_v43  ;;  %v3740_v51 = vld [vmem:[%s3535_s24 + $0x78] sm:$0xff]  ;;  %v3760_v61 = vsel %vm453_vm0, %v474_v47, %v475_v48  ;;  %v2653_v62 = vld [vmem:[%s5366_s1 + $0x1c0] sm:$0xff]  ;;  %v2654_v63 = vld [vmem:[%s5366_s1 + $0x1c8] sm:$0xff] }
  0x25   : > { %3145 = vmatpush1.bf16.msra.mxu0 %v3144_v44  ;;  %v3726_v44 = vsel %vm453_vm0, %v469_v32, %v470_v33  ;;  %5435 = vst [vmem:[#allocation9_spill] sm:$0xff] %v3760_v61  ;;  %v479_v0 = vrot.slane %v3740_v51, 2  ;;  %v3771_v2 = vld [vmem:[%s3535_s24 + $0x88] sm:$0x3]  ;;  %v3774_v8 = vld [vmem:[%s3535_s24 + $0x90] sm:$0xff]  ;;  %v3777_v9 = vld [vmem:[%s3535_s24 + $0x98] sm:$0xff]  ;;  %v3221_v14 = vpack.c.bf16 %v2654_v63, %v2653_v62 }
  0x26   : > { %3146 = vmatprep.subr.bf16.mxu0 %v5369_v3  ;;  %5433 = vst [vmem:[#allocation7_spill] sm:$0xff] %v3726_v44  ;;  %v482_v15 = vrot.slane %v3771_v2, 2  ;;  %v2655_v17 = vld [vmem:[%s5366_s1 + $0x1d0] sm:$0xff]  ;;  %v484_v22 = vrot.slane %v3774_v8, 2  ;;  %v485_v23 = vrot.slane %v3777_v9, 2  ;;  %v3808_v30 = vld [vmem:[%s3535_s24 + $0xa8] sm:$0xff] }
  0x27   : > { %3199 = vmatpush3.bf16.msra.mxu1 %v3196_v43  ;;  %v472_v43 = vrot.slane %v3703_v35, 2  ;;  %v3794_v16 = vsel %vm453_vm0, %v479_v0, %v480_v1  ;;  %v3811_v31 = vld [vmem:[%s3535_s24 + $0xb0] sm:$0xff]  ;;  %v608_v32 = vld [vmem:[%s5366_s1 + $0xe0] sm:$0xff] }
  0x28   : > { %3201 = vmatprep.subr.bf16.mxu1 %v3200_v49  ;;  %5437 = vst [vmem:[#allocation11_spill] sm:$0xff] %v3794_v16  ;;  %v490_v47 = vrot.slane %v3811_v31, 2 }
  0x29   : > { %3148 = vmatpush1.bf16.msra.mxu0 %v3147_v50  ;;  %v3162_v50 = vpack.c.bf16 %v603_v40, %v602_v39 }
  0x2a   : > { %3149 = vmatprep.subr.bf16.mxu0 %v5369_v3 }
  0x2b   : > { %3203 = vmatpush3.bf16.msra.mxu1 %v3200_v49  ;;  %v3737_v49 = vld [vmem:[%s3535_s24 + $0x70] sm:$0x3] }
  0x2c   : > { %3205 = vmatprep.subr.bf16.mxu1 %v3204_v55  ;;  %v477_v60 = vrot.slane %v3737_v49, 2 }
  0x2d   : > { %3151 = vmatpush1.bf16.msra.mxu0 %v3150_v57  ;;  %v3218_v57 = vpack.c.bf16 %v2652_v46, %v2651_v45  ;;  %v2658_v45 = vld [vmem:[%s5366_s1 + $0x1e8] sm:$0xff]  ;;  %v489_v46 = vrot.slane %v3808_v30, 2 }
  0x2e   : > { %3152 = vmatprep.subr.bf16.mxu0 %v5369_v3  ;;  %v3789_v12 = vsel %vm453_vm0, %v475_v48, %v477_v60  ;;  %v3839_v48 = vld [vmem:[%s3535_s24 + $0xb8] sm:$0x3] }
  0x2f   : > { %3207 = vmatpush3.bf16.msra.mxu1 %v3204_v55  ;;  %v3755_v55 = vsel %vm453_vm0, %v470_v33, %v472_v43  ;;  %5436 = vst [vmem:[#allocation10_spill] sm:$0xff] %v3789_v12  ;;  %v609_v33 = vld [vmem:[%s5366_s1 + $0xe8] sm:$0xff]  ;;  %v2657_v43 = vld [vmem:[%s5366_s1 + $0x1e0] sm:$0xff]  ;;  %v611_v60 = vld [vmem:[%s5366_s1 + $0xf8] sm:$0xff]  ;;  %v492_v0 = vrot.slane %v3839_v48, 2 }
  0x30   : > { %3208 = vmatprep.subr.bf16.mxu1 %v5369_v3  ;;  %5434 = vst [vmem:[#allocation8_spill] sm:$0xff] %v3755_v55  ;;  %v3227_v63 = vpack.c.bf16 %v2658_v45, %v2657_v43  ;;  %v2679_v45 = vld [vmem:[%s5366_s1 + $0x290] sm:$0xff] }
  0x31   : > { %3154 = vmatpush1.bf16.msra.mxu0 %v3153_v5  ;;  %v3165_v5 = vpack.c.bf16 %v605_v54, %v604_v53  ;;  %v3842_v53 = vld [vmem:[%s3535_s24 + $0xc0] sm:$0xff]  ;;  %v3845_v54 = vld [vmem:[%s3535_s24 + $0xc8] sm:$0xff] }
  0x32   : > { %2921 = vmatmul.mubr.f32.vlgmr.msra.gmra.mrb[0].mxu1 %v458_v10  ;;  %3155 = vmatprep.subr.bf16.mxu0 %v5369_v3  ;;  %v606_v10 = vld [vmem:[%s5366_s1 + $0xd0] sm:$0xff] }
  0x33   : > { %3210 = vmatpush1.bf16.msra.mxu1 %v3209_v11  ;;  %2923 = vmatprep.mubr.f32.mxu1 %v3659_v13  ;;  %v607_v11 = vld [vmem:[%s5366_s1 + $0xd8] sm:$0xff]  ;;  %v345_v13 = vrot.slane %v3703_v35, 1 }
  0x34   : > { %3211 = vmatprep.subr.bf16.mxu1 %v5369_v3  ;;  %v3168_v27 = vpack.c.bf16 %v607_v11, %v606_v10  ;;  %v3868_v10 = vsel %vm453_vm0, %v489_v46, %v490_v47  ;;  %v2659_v11 = vld [vmem:[%s5366_s1 + $0x1f0] sm:$0xff]  ;;  %v2692_v35 = vld [vmem:[%s5366_s1 + $0x2f8] sm:$0xff] }
  0x35   : > { %3157 = vmatpush1.bf16.msra.mxu0 %v3156_v19  ;;  %v2656_v19 = vld [vmem:[%s5366_s1 + $0x1d8] sm:$0xff]  ;;  %5441 = vst [vmem:[#allocation15_spill] sm:$0xff] %v3868_v10 }
  0x36   : > { %2924 = vmatmul.mubr.f32.gmra.mrb[2].mxu1 %v3687_v25  ;;  %3158 = vmatprep.subr.bf16.mxu0 %v5369_v3  ;;  %v3224_v39 = vpack.c.bf16 %v2656_v19, %v2655_v17  ;;  %v495_v17 = vrot.slane %v3845_v54, 2  ;;  %v3879_v19 = vld [vmem:[%s3535_s24 + $0xd0] sm:$0x3] }
  0x37   : > { %3213 = vmatpush1.bf16.msra.mxu1 %v3212_v26  ;;  %2926 = vmatprep.mubr.f32.mxu1 %v3692_v29  ;;  %v3805_v26 = vld [vmem:[%s3535_s24 + $0xa0] sm:$0x3]  ;;  %v497_v43 = vrot.slane %v3879_v19, 2 }
  0x38   : > { %3214 = vmatprep.subr.bf16.mxu1 %v5369_v3  ;;  %v487_v40 = vrot.slane %v3805_v26, 2 }
  0x39   : > { %3160 = vmatpush1.bf16.msra.mxu0 %v3159_v36  ;;  %v3823_v36 = vsel %vm453_vm0, %v480_v1, %v482_v15  ;;  %v2677_v1 = vld [vmem:[%s5366_s1 + $0x280] sm:$0xff]  ;;  %v494_v15 = vrot.slane %v3842_v53, 2 }
  0x3a   : > { %2927 = vmatmul.mubr.f32.gmra.mrb[4].mxu1 %v3721_v41  ;;  %3161 = vmatprep.subr.bf16.mxu0 %v5369_v3  ;;  %5438 = vst [vmem:[#allocation12_spill] sm:$0xff] %v3823_v36  ;;  %v3857_v62 = vsel %vm453_vm0, %v485_v23, %v487_v40  ;;  %v343_v41 = vrot.slane %v3676_v21, 1 }
  0x3b   : > { %3216 = vmatpush1.bf16.msra.mxu1 %v3215_v42  ;;  %2929 = vmatprep.mubr.f32.mxu1 %v3726_v44  ;;  %v3828_v42 = vsel %vm453_vm0, %v484_v22, %v485_v23  ;;  %5440 = vst [vmem:[#allocation14_spill] sm:$0xff] %v3857_v62  ;;  %v3882_v23 = vld [vmem:[%s3535_s24 + $0xd8] sm:$0xff]  ;;  %v3903_v46 = vsel %vm453_vm0, %v494_v15, %v495_v17 }
  0x3c   : > { %3217 = vmatprep.subr.bf16.mxu1 %v5369_v3  ;;  %5439 = vst [vmem:[#allocation13_spill] sm:$0xff] %v3828_v42  ;;  %5443 = vst [vmem:[#allocation17_spill] sm:$0xff] %v3903_v46 }
  0x3d   : > { %3163 = vmatpush1.bf16.msra.mxu0 %v3162_v50  ;;  %v3171_v50 = vpack.c.bf16 %v609_v33, %v608_v32  ;;  %v330_v32 = vrot.slane %v3613_v56, 1  ;;  %v2680_v56 = vld [vmem:[%s5366_s1 + $0x298] sm:$0xff] }
  0x3e   : > { %2930 = vmatmul.mubr.f32.gmra.mrb[6].mxu1 %v3755_v55  ;;  %3164 = vmatprep.subr.bf16.mxu0 %v5369_v3  ;;  %v3260_v15 = vpack.c.bf16 %v2680_v56, %v2679_v45 }
  0x3f   : > { %3219 = vmatpush1.bf16.msra.mxu1 %v3218_v57  ;;  %2932 = vmatprep.mubr.f32.mxu1 %v3760_v61  ;;  %v610_v57 = vld [vmem:[%s5366_s1 + $0xf0] sm:$0xff] }
  0x40   : > { %3220 = vmatprep.subr.bf16.mxu1 %v5369_v3  ;;  %v3174_v22 = vpack.c.bf16 %v611_v60, %v610_v57  ;;  %v499_v57 = vrot.slane %v3882_v23, 2 }
  0x41   : > { %3166 = vmatpush1.bf16.msra.mxu0 %v3165_v5  ;;  %v2678_v5 = vld [vmem:[%s5366_s1 + $0x288] sm:$0xff] }
  0x42   : > { %2933 = vmatmul.mubr.f32.gmra.mrb[8].mxu1 %v3789_v12  ;;  %3167 = vmatprep.subr.bf16.mxu0 %v5369_v3  ;;  %v3256_v33 = vpack.c.bf16 %v2678_v5, %v2677_v1  ;;  %v3920_v1 = vld [vmem:[%s3535_s24 + $0xf8] sm:$0xff]  ;;  %v331_v5 = vsel %vm326_vm1, %v328_v34, %v330_v32  ;;  %v2681_v34 = vld [vmem:[%s5366_s1 + $0x2a0] sm:$0xff]  ;;  %v2682_v32 = vld [vmem:[%s5366_s1 + $0x2a8] sm:$0xff]  ;;  %v340_v12 = vrot.slane %v3670_v18, 1 }
  0x43   : > { %3222 = vmatpush1.bf16.msra.mxu1 %v3221_v14  ;;  %2935 = vmatprep.mubr.f32.mxu1 %v3794_v16  ;;  %v2660_v14 = vld [vmem:[%s5366_s1 + $0x1f8] sm:$0xff] }
  0x44   : > { %3223 = vmatprep.subr.bf16.mxu1 %v5369_v3  ;;  %v3230_v40 = vpack.c.bf16 %v2660_v14, %v2659_v11  ;;  %v332_v11 = vrot.slane %v3616_v58, 1  ;;  %v333_v14 = vrot.slane %v3619_v59, 1  ;;  %v2688_v18 = vld [vmem:[%s5366_s1 + $0x2d8] sm:$0xff] }
  0x45   : > { %3169 = vmatpush1.bf16.msra.mxu0 %v3168_v27  ;;  %v3885_v27 = vld [vmem:[%s3535_s24 + $0xe0] sm:$0xff] }
  0x46   : > { %2936 = vmatmul.mubr.f32.gmra.mrb[10].mxu1 %v3823_v36  ;;  %3170 = vmatprep.subr.bf16.mxu0 %v5369_v3  ;;  %v500_v60 = vrot.slane %v3885_v27, 2 }
  0x47   : > { %3225 = vmatpush1.bf16.msra.mxu1 %v3224_v39  ;;  %2938 = vmatprep.mubr.f32.mxu1 %v3828_v42  ;;  %v3892_v39 = vsel %vm453_vm0, %v490_v47, %v492_v0  ;;  %v2661_v47 = vld [vmem:[%s5366_s1 + $0x200] sm:$0xff]  ;;  %v3917_v0 = vld [vmem:[%s3535_s24 + $0xf0] sm:$0xff] }
  0x48   : > { %3226 = vmatprep.subr.bf16.mxu1 %v5369_v3  ;;  %5442 = vst [vmem:[#allocation16_spill] sm:$0xff] %v3892_v39  ;;  %v3942_v45 = vsel %vm453_vm0, %v499_v57, %v500_v60  ;;  %v504_v56 = vrot.slane %v3917_v0, 2  ;;  %v3963_v57 = vsel %vm326_vm1, %v332_v11, %v333_v14  ;;  %v2683_v11 = vld [vmem:[%s5366_s1 + $0x2b0] sm:$0xff] }
  0x49   : > { %3172 = vmatpush1.bf16.msra.mxu0 %v3171_v50  ;;  %v2662_v50 = vld [vmem:[%s5366_s1 + $0x208] sm:$0xff]  ;;  %5446 = vst [vmem:[#allocation19_spill] sm:$0xff] %v3942_v45 }
  0x4a   : > { %2939 = vmatmul.mubr.f32.gmra.mrb[12].mxu1 %v3857_v62  ;;  %3173 = vmatprep.subr.bf16.mxu0 %v5369_v3  ;;  %v3264_v62 = vpack.c.bf16 %v2682_v32, %v2681_v34 }
  0x4b   : > { %3228 = vmatpush1.bf16.msra.mxu1 %v3227_v63  ;;  %2941 = vmatprep.mubr.f32.mxu1 %v3868_v10  ;;  %v3914_v63 = vld [vmem:[%s3535_s24 + $0xe8] sm:$0x3]  ;;  %v335_v10 = vrot.slane %v3638_v4, 1  ;;  %v2684_v4 = vld [vmem:[%s5366_s1 + $0x2b8] sm:$0xff] }
  0x4c   : > { %3229 = vmatprep.subr.bf16.mxu1 %v5369_v3  ;;  %v3233_v3 = vpack.c.bf16 %v2662_v50, %v2661_v47  ;;  %v505_v47 = vrot.slane %v3920_v1, 2  ;;  %v3953_v50 = vld [vmem:[%s3535_s24 + $0x100] sm:$0x3]  ;;  %v3268_v36 = vpack.c.bf16 %v2684_v4, %v2683_v11 }
  0x4d   : > { %3175 = vmatpush1.bf16.msra.mxu0 %v3174_v22  ;;  %v3930_v22 = vsel %vm453_vm0, %v495_v17, %v497_v43  ;;  %v2663_v17 = vld [vmem:[%s5366_s1 + $0x210] sm:$0xff]  ;;  %v2664_v43 = vld [vmem:[%s5366_s1 + $0x218] sm:$0xff] }
  0x4e   : > { %2942 = vmatmul.mubr.f32.gmra.mrb[14].mxu1 %v3892_v39  ;;  %3257 = vmatprep.subr.bf16.mxu0 %v3256_v33  ;;  %5444 = vst [vmem:[#allocation18_spill] sm:$0xff] %v3930_v22  ;;  %v502_v39 = vrot.slane %v3914_v63, 2  ;;  %v3236_v42 = vpack.c.bf16 %v2664_v43, %v2663_v17  ;;  %v3991_v17 = vld [vmem:[%s3535_s24 + $0x118] sm:$0x3]  ;;  %v3998_v43 = vld [vmem:[%s3535_s24 + $0x128] sm:$0xff] }
  0x4f   : > { %3231 = vmatpush1.bf16.msra.mxu1 %v3230_v40  ;;  %2944 = vmatprep.mubr.f32.mxu1 %v3903_v46  ;;  %v5445_v40 = vmov 0.0|0.0   ;;  %v3959_v46 = vld [vmem:[%s3535_s24 + $0x110] sm:$0xff]  ;;  %v515_v4 = vrot.slane %v3998_v43, 2 }
  0x50   : > { %693 = vmatmul.mubr.f32.vlgmr.msra.gmra.mrb[0].mxu0 %v3545_v24  ;;  %3232 = vmatprep.subr.bf16.mxu1 %v5445_v40  ;;  %v3956_v24 = vld [vmem:[%s3535_s24 + $0x108] sm:$0xff]  ;;  %v510_v32 = vrot.slane %v3959_v46, 2 }
  0x51   : > { %697 = vmatprep.mubr.f32.mxu0 %v331_v5  ;;  %3259 = vmatpush3.bf16.msra.mxu0 %v3256_v33  ;;  %v3968_v5 = vsel %vm453_vm0, %v500_v60, %v502_v39  ;;  %v507_v33 = vrot.slane %v3953_v50, 2  ;;  %v2665_v39 = vld [vmem:[%s5366_s1 + $0x220] sm:$0xff]  ;;  %v2666_v60 = vld [vmem:[%s5366_s1 + $0x228] sm:$0xff]  ;;  %v509_v34 = vrot.slane %v3956_v24, 2 }
  0x52   : > { %2945 = vmatmul.mubr.f32.gmra.mrb[16].mxu1 %v3930_v22  ;;  %3261 = vmatprep.subr.bf16.mxu0 %v3260_v15  ;;  %5447 = vst [vmem:[#allocation20_spill] sm:$0xff] %v3968_v5  ;;  %v338_v22 = vrot.slane %v3644_v7, 1 }
  0x53   : > { %3234 = vmatpush1.bf16.msra.mxu1 %v3233_v3  ;;  %2947 = vmatprep.mubr.f32.mxu1 %v3942_v45  ;;  %v3980_v3 = vsel %vm453_vm0, %v504_v56, %v505_v47  ;;  %v4002_v56 = vsel %vm326_vm1, %v333_v14, %v335_v10  ;;  %v337_v45 = vrot.slane %v3641_v6, 1  ;;  %v4008_v16 = vsel %vm453_vm0, %v505_v47, %v507_v33  ;;  %v2685_v10 = vld [vmem:[%s5366_s1 + $0x2c0] sm:$0xff]  ;;  %v2686_v14 = vld [vmem:[%s5366_s1 + $0x2c8] sm:$0xff]  ;;  %v2667_v47 = vld [vmem:[%s5366_s1 + $0x230] sm:$0xff] }
  0x54   : > { %698 = vmatmul.mubr.f32.gmra.mrb[2].mxu0 %v3554_v28  ;;  %3235 = vmatprep.subr.bf16.mxu1 %v5445_v40  ;;  %5448 = vst [vmem:[#allocation21_spill] sm:$0xff] %v3980_v3  ;;  %v3995_v28 = vld [vmem:[%s3535_s24 + $0x120] sm:$0xff]  ;;  %5449 = vst [vmem:[#allocation22_spill] sm:$0xff] %v4008_v16  ;;  %v2668_v33 = vld [vmem:[%s5366_s1 + $0x238] sm:$0xff]  ;;  %v3272_v61 = vpack.c.bf16 %v2686_v14, %v2685_v10 }
  0x55   : > { %702 = vmatprep.mubr.f32.mxu0 %v3963_v57  ;;  %3263 = vmatpush3.bf16.msra.mxu0 %v3260_v15  ;;  %v3239_v15 = vpack.c.bf16 %v2666_v60, %v2665_v39  ;;  %v514_v11 = vrot.slane %v3995_v28, 2  ;;  %v4031_v39 = vld [vmem:[%s3535_s24 + $0x130] sm:$0x3]  ;;  %v4035_v60 = vld [vmem:[%s3535_s24 + $0x138] sm:$0xff]  ;;  %v3242_v44 = vpack.c.bf16 %v2668_v33, %v2667_v47  ;;  %v4070_v47 = vld [vmem:[%s3535_s24 + $0x148] sm:$0x3] }
  0x56   : > { %2948 = vmatmul.mubr.f32.gmra.mrb[18].mxu1 %v3968_v5  ;;  %3265 = vmatprep.subr.bf16.mxu0 %v3264_v62  ;;  %v512_v5 = vrot.slane %v3991_v17, 2  ;;  %v519_v10 = vrot.slane %v4035_v60, 2  ;;  %5454 = vst [vmem:[#allocation27_spill] sm:$0xff] %v4070_v47  ;;  %v4074_v33 = vld [vmem:[%s3535_s24 + $0x150] sm:$0xff] }
  0x57   : > { %3237 = vmatpush1.bf16.msra.mxu1 %v3236_v42  ;;  %2950 = vmatprep.mubr.f32.mxu1 %v3980_v3  ;;  %v4020_v42 = vsel %vm453_vm0, %v509_v34, %v510_v32  ;;  %v4038_v34 = vld [vmem:[%s3535_s24 + $0x140] sm:$0xff]  ;;  %v4042_v3 = vsel %vm326_vm1, %v337_v45, %v338_v22  ;;  %v2687_v45 = vld [vmem:[%s5366_s1 + $0x2d0] sm:$0xff]  ;;  %5455 = vst [vmem:[#allocation28_spill] sm:$0xff] %v4074_v33 }
  0x58   : > { %703 = vmatmul.mubr.f32.gmra.mrb[4].mxu0 %v3616_v58  ;;  %3238 = vmatprep.subr.bf16.mxu1 %v5445_v40  ;;  %5450 = vst [vmem:[#allocation23_spill] sm:$0xff] %v4020_v42  ;;  %5451 = vst [vmem:[#allocation24_spill] sm:$0xff] %v4038_v34  ;;  %v4047_v55 = vsel %vm453_vm0, %v510_v32, %v512_v5  ;;  %v2669_v5 = vld [vmem:[%s5366_s1 + $0x240] sm:$0xff]  ;;  %v2670_v32 = vld [vmem:[%s5366_s1 + $0x248] sm:$0xff]  ;;  %v520_v14 = vrot.slane %v4038_v34, 2  ;;  %v3276_v29 = vpack.c.bf16 %v2688_v18, %v2687_v45 }
  0x59   : > { %707 = vmatprep.mubr.f32.mxu0 %v4002_v56  ;;  %3267 = vmatpush3.bf16.msra.mxu0 %v3264_v62  ;;  %5452 = vst [vmem:[#allocation25_spill] sm:$0xff] %v4047_v55  ;;  %v517_v62 = vrot.slane %v4031_v39, 2  ;;  %v524_v45 = vrot.slane %v4074_v33, 2 }
  0x5a   : > { %2951 = vmatmul.mubr.f32.gmra.mrb[20].mxu1 %v4008_v16  ;;  %3269 = vmatprep.subr.bf16.mxu0 %v3268_v36  ;;  %v342_v16 = vrot.slane %v3673_v20, 1 }
  0x5b   : > { %3240 = vmatpush1.bf16.msra.mxu1 %v3239_v15  ;;  %2953 = vmatprep.mubr.f32.mxu1 %v4020_v42  ;;  %v4059_v15 = vsel %vm453_vm0, %v514_v11, %v515_v4  ;;  %v4077_v11 = vld [vmem:[%s3535_s24 + $0x158] sm:$0xff]  ;;  %v4081_v42 = vsel %vm326_vm1, %v338_v22, %v340_v12  ;;  %v4087_v25 = vsel %vm453_vm0, %v515_v4, %v517_v62  ;;  %v2689_v12 = vld [vmem:[%s5366_s1 + $0x2e0] sm:$0xff]  ;;  %v2690_v22 = vld [vmem:[%s5366_s1 + $0x2e8] sm:$0xff] }
  0x5c   : > { %708 = vmatmul.mubr.f32.gmra.mrb[6].mxu0 %v3619_v59  ;;  %3241 = vmatprep.subr.bf16.mxu1 %v5445_v40  ;;  %5453 = vst [vmem:[#allocation26_spill] sm:$0xff] %v4059_v15  ;;  %5456 = vst [vmem:[#allocation29_spill] sm:$0xff] %v4077_v11  ;;  %v2671_v4 = vld [vmem:[%s5366_s1 + $0x250] sm:$0xff]  ;;  %v2672_v62 = vld [vmem:[%s5366_s1 + $0x258] sm:$0xff]  ;;  %v525_v18 = vrot.slane %v4077_v11, 2  ;;  %v3280_v33 = vpack.c.bf16 %v2690_v22, %v2689_v12 }
  0x5d   : > { %712 = vmatprep.mubr.f32.mxu0 %v4042_v3  ;;  %3271 = vmatpush3.bf16.msra.mxu0 %v3268_v36  ;;  %5457 = vst [vmem:[#allocation30_spill] sm:$0xff] %v4087_v25  ;;  %v3245_v36 = vpack.c.bf16 %v2670_v32, %v2669_v5  ;;  %v4110_v5 = vld [vmem:[%s3535_s24 + $0x160] sm:$0x3]  ;;  %v4114_v32 = vld [vmem:[%s3535_s24 + $0x168] sm:$0xff]  ;;  %v4149_v22 = vld [vmem:[%s3535_s24 + $0x178] sm:$0x3] }
  0x5e   : > { %2954 = vmatmul.mubr.f32.gmra.mrb[22].mxu1 %v4047_v55  ;;  %3273 = vmatprep.subr.bf16.mxu0 %v3272_v61  ;;  %v522_v55 = vrot.slane %v4070_v47, 2  ;;  %v3248_v47 = vpack.c.bf16 %v2672_v62, %v2671_v4  ;;  %v527_v34 = vrot.slane %v4110_v5, 2  ;;  %v4154_v4 = vsel %vm326_vm1, %v343_v41, %v345_v13 }
  0x5f   : > { %3243 = vmatpush1.bf16.msra.mxu1 %v3242_v44  ;;  %2956 = vmatprep.mubr.f32.mxu1 %v4059_v15  ;;  %v4099_v44 = vsel %vm453_vm0, %v519_v10, %v520_v14  ;;  %v4117_v10 = vld [vmem:[%s3535_s24 + $0x170] sm:$0xff]  ;;  %v4121_v15 = vsel %vm326_vm1, %v342_v16, %v343_v41  ;;  %v4138_v16 = vsel %vm453_vm0, %v524_v45, %v525_v18  ;;  %v347_v62 = vrot.slane %v3706_v37, 1 }
  0x60   : > { %713 = vmatmul.mubr.f32.gmra.mrb[8].mxu0 %v3641_v6  ;;  %3244 = vmatprep.subr.bf16.mxu1 %v5445_v40  ;;  %5458 = vst [vmem:[#allocation31_spill] sm:$0xff] %v4099_v44  ;;  %5459 = vst [vmem:[#allocation32_spill] sm:$0xff] %v4117_v10  ;;  %v4126_v11 = vsel %vm453_vm0, %v520_v14, %v522_v55  ;;  %v2673_v55 = vld [vmem:[%s5366_s1 + $0x260] sm:$0xff]  ;;  %v2674_v14 = vld [vmem:[%s5366_s1 + $0x268] sm:$0xff]  ;;  %v530_v12 = vrot.slane %v4117_v10, 2  ;;  %v348_v45 = vrot.slane %v3709_v38, 1 }
  0x61   : > { %717 = vmatprep.mubr.f32.mxu0 %v4081_v42  ;;  %3275 = vmatpush3.bf16.msra.mxu0 %v3272_v61  ;;  %v2691_v61 = vld [vmem:[%s5366_s1 + $0x2f0] sm:$0xff]  ;;  %v3251_v10 = vpack.c.bf16 %v2674_v14, %v2673_v55  ;;  %v352_v55 = vrot.slane %v3740_v51, 1  ;;  %v353_v14 = vrot.slane %v3743_v52, 1 }
  0x62   : > { %2957 = vmatmul.mubr.f32.gmra.mrb[24].mxu1 %v4087_v25  ;;  %3277 = vmatprep.subr.bf16.mxu0 %v3276_v29  ;;  %v4160_v25 = vsel %vm453_vm0, %v525_v18, %v527_v34  ;;  %v2675_v41 = vld [vmem:[%s5366_s1 + $0x270] sm:$0xff]  ;;  %v4177_v34 = vsel %vm326_vm1, %v347_v62, %v348_v45  ;;  %v350_v18 = vrot.slane %v3737_v49, 1  ;;  %v2694_v49 = vld [vmem:[%s5366_s1 + $0x308] sm:$0xff] }
  0x63   : > { %3246 = vmatpush1.bf16.msra.mxu1 %v3245_v36  ;;  %2959 = vmatprep.mubr.f32.mxu1 %v4099_v44  ;;  %v529_v36 = vrot.slane %v4114_v32, 2  ;;  %v3284_v44 = vpack.c.bf16 %v2692_v35, %v2691_v61 }
  0x64   : > { %718 = vmatmul.mubr.f32.gmra.mrb[10].mxu0 %v3644_v7  ;;  %3247 = vmatprep.subr.bf16.mxu1 %v5445_v40 }
  0x65   : > { %722 = vmatprep.mubr.f32.mxu0 %v4121_v15  ;;  %3279 = vmatpush3.bf16.msra.mxu0 %v3276_v29  ;;  %v532_v29 = vrot.slane %v4149_v22, 2  ;;  %v4166_v13 = vsel %vm453_vm0, %v529_v36, %v530_v12  ;;  %v2725_v36 = vld [vmem:[%s5366_s1 + $0x400] sm:$0xff] }
  0x66   : > { %2960 = vmatmul.mubr.f32.gmra.mrb[26].mxu1 %v4126_v11  ;;  %3281 = vmatprep.subr.bf16.mxu0 %v3280_v33 }
  0x67   : > { %3249 = vmatpush1.bf16.msra.mxu1 %v3248_v47  ;;  %2962 = vmatprep.mubr.f32.mxu1 %v4138_v16  ;;  %v2676_v47 = vld [vmem:[%s5366_s1 + $0x278] sm:$0xff]  ;;  %v4182_v61 = vsel %vm453_vm0, %v530_v12, %v532_v29  ;;  %v2726_v12 = vld [vmem:[%s5366_s1 + $0x408] sm:$0xff] }
  0x68   : > { %723 = vmatmul.mubr.f32.gmra.mrb[12].mxu0 %v3673_v20  ;;  %3250 = vmatprep.subr.bf16.mxu1 %v5445_v40  ;;  %v3254_v35 = vpack.c.bf16 %v2676_v47, %v2675_v41  ;;  %v4206_v62 = vpack.c.bf16 %v2726_v12, %v2725_v36  ;;  %v2696_v29 = vld [vmem:[%s5366_s1 + $0x318] sm:$0xff]  ;;  %v355_v41 = vrot.slane %v3771_v2, 1  ;;  %v2701_v12 = vld [vmem:[%s5366_s1 + $0x340] sm:$0xff] }
  0x69   : > { %727 = vmatprep.mubr.f32.mxu0 %v4154_v4  ;;  %3283 = vmatpush3.bf16.msra.mxu0 %v3280_v33  ;;  %v2693_v33 = vld [vmem:[%s5366_s1 + $0x300] sm:$0xff] }
  0x6a   : > { %2963 = vmatmul.mubr.f32.gmra.mrb[28].mxu1 %v4160_v25  ;;  %3285 = vmatprep.subr.bf16.mxu0 %v3284_v44  ;;  %v4235_v2 = vsel %vm326_vm1, %v353_v14, %v355_v41  ;;  %v2703_v41 = vld [vmem:[%s5366_s1 + $0x350] sm:$0xff] }
  0x6b   : > { %3252 = vmatpush1.bf16.msra.mxu1 %v3251_v10  ;;  %2965 = vmatprep.mubr.f32.mxu1 %v4166_v13  ;;  %v4195_v10 = vsel %vm326_vm1, %v348_v45, %v350_v18  ;;  %v2695_v45 = vld [vmem:[%s5366_s1 + $0x310] sm:$0xff]  ;;  %v2697_v18 = vld [vmem:[%s5366_s1 + $0x320] sm:$0xff] }
  0x6c   : > { %728 = vmatmul.mubr.f32.gmra.mrb[14].mxu0 %v3676_v21  ;;  %3253 = vmatprep.subr.bf16.mxu1 %v5445_v40  ;;  %v3292_v47 = vpack.c.bf16 %v2696_v29, %v2695_v45  ;;  %v363_v45 = vrot.slane %v3811_v31, 1 }
  0x6d   : > { %732 = vmatprep.mubr.f32.mxu0 %v4177_v34  ;;  %3287 = vmatpush3.bf16.msra.mxu0 %v3284_v44  ;;  %v3289_v44 = vpack.c.bf16 %v2694_v49, %v2693_v33  ;;  %v2699_v49 = vld [vmem:[%s5366_s1 + $0x330] sm:$0xff] }
  0x6e   : > { %2966 = vmatmul.mubr.f32.gmra.mrb[30].mxu1 %v4182_v61  ;;  %3337 = vmatprep.subr.bf16.mxu0 %v4206_v62 }
  0x6f   : > { %3255 = vmatpush1.bf16.msra.mxu1 %v3254_v35  ;;  %1255 = vmatprep.mubr.f32.mxu1 %v3963_v57  ;;  %v4220_v57 = vsel %vm326_vm1, %v352_v55, %v353_v14  ;;  %v358_v35 = vrot.slane %v3777_v9, 1  ;;  %v360_v14 = vrot.slane %v3805_v26, 1 }
  0x70   : > { %733 = vmatmul.mubr.f32.gmra.mrb[16].mxu0 %v3706_v37  ;;  %3288 = vmatprep.subr.bf16.mxu1 %v5445_v40 }
  0x71   : > { %737 = vmatprep.mubr.f32.mxu0 %v4195_v10  ;;  %v4266_v26 = vsel %vm326_vm1, %v358_v35, %v360_v14 }
  0x72   : > { %1256 = vmatmul.mubr.f32.vlgmr.msra.gmra.mrb[32].mxu1 %v3616_v58  ;;  %v2698_v58 = vld [vmem:[%s5366_s1 + $0x328] sm:$0xff] }
  0x73   : > { %3290 = vmatpush1.bf16.msra.mxu1 %v3289_v44  ;;  %1260 = vmatprep.mubr.f32.mxu1 %v4002_v56  ;;  %v357_v56 = vrot.slane %v3774_v8, 1  ;;  %v3295_v33 = vpack.c.bf16 %v2698_v58, %v2697_v18  ;;  %v362_v44 = vrot.slane %v3808_v30, 1  ;;  %v365_v18 = vrot.slane %v3839_v48, 1 }
  0x74   : > { %738 = vmatmul.mubr.f32.gmra.mrb[18].mxu0 %v3709_v38  ;;  %3291 = vmatprep.subr.bf16.mxu1 %v5445_v40 }
  0x75   : > { %742 = vmatprep.mubr.f32.mxu0 %v4220_v57  ;;  %v4251_v55 = vsel %vm326_vm1, %v357_v56, %v358_v35  ;;  %v2705_v56 = vld [vmem:[%s5366_s1 + $0x360] sm:$0xff]  ;;  %v4297_v48 = vsel %vm326_vm1, %v363_v45, %v365_v18  ;;  %v367_v35 = vrot.slane %v3842_v53, 1  ;;  %v375_v18 = vrot.slane %v3914_v63, 1 }
  0x76   : > { %1261 = vmatmul.mubr.f32.gmra.mrb[34].mxu1 %v3619_v59  ;;  %v2700_v59 = vld [vmem:[%s5366_s1 + $0x338] sm:$0xff] }
  0x77   : > { %1265 = vmatprep.mubr.f32.mxu1 %v4042_v3  ;;  %3293 = vmatpush1.bf16.msra.mxu1 %v3292_v47  ;;  %v3298_v36 = vpack.c.bf16 %v2700_v59, %v2699_v49  ;;  %v4282_v47 = vsel %vm326_vm1, %v362_v44, %v363_v45  ;;  %v2707_v59 = vld [vmem:[%s5366_s1 + $0x370] sm:$0xff]  ;;  %v372_v44 = vrot.slane %v3882_v23, 1  ;;  %v373_v45 = vrot.slane %v3885_v27, 1 }
  0x78   : > { %743 = vmatmul.mubr.f32.gmra.mrb[20].mxu0 %v3740_v51  ;;  %3294 = vmatprep.subr.bf16.mxu1 %v5445_v40 }
  0x79   : > { %747 = vmatprep.mubr.f32.mxu0 %v4235_v2  ;;  %v4359_v63 = vsel %vm326_vm1, %v373_v45, %v375_v18  ;;  %v2721_v18 = vld [vmem:[%s5366_s1 + $0x3e0] sm:$0xff] }
  0x7a   : > { %1266 = vmatmul.mubr.f32.gmra.mrb[36].mxu1 %v3641_v6  ;;  %v2702_v6 = vld [vmem:[%s5366_s1 + $0x348] sm:$0xff] }
  0x7b   : > { %1270 = vmatprep.mubr.f32.mxu1 %v4081_v42  ;;  %3296 = vmatpush1.bf16.msra.mxu1 %v3295_v33  ;;  %v3301_v29 = vpack.c.bf16 %v2702_v6, %v2701_v12  ;;  %v368_v33 = vrot.slane %v3845_v54, 1  ;;  %v2709_v6 = vld [vmem:[%s5366_s1 + $0x380] sm:$0xff] }
  0x7c   : > { %748 = vmatmul.mubr.f32.gmra.mrb[22].mxu0 %v3743_v52  ;;  %3297 = vmatprep.subr.bf16.mxu1 %v5445_v40 }
  0x7d   : > { %752 = vmatprep.mubr.f32.mxu0 %v4251_v55  ;;  %v4313_v14 = vsel %vm326_vm1, %v367_v35, %v368_v33  ;;  %v378_v35 = vrot.slane %v3920_v1, 1 }
  0x7e   : > { %1271 = vmatmul.mubr.f32.gmra.mrb[38].mxu1 %v3644_v7  ;;  %v2704_v7 = vld [vmem:[%s5366_s1 + $0x358] sm:$0xff] }
  0x7f   : > { %1275 = vmatprep.mubr.f32.mxu1 %v4121_v15  ;;  %3299 = vmatpush1.bf16.msra.mxu1 %v3298_v36  ;;  %v3304_v58 = vpack.c.bf16 %v2704_v7, %v2703_v41  ;;  %v370_v36 = vrot.slane %v3879_v19, 1  ;;  %v2711_v41 = vld [vmem:[%s5366_s1 + $0x390] sm:$0xff]  ;;  %v4344_v7 = vsel %vm326_vm1, %v372_v44, %v373_v45 }
  0x80   : > { %753 = vmatmul.mubr.f32.gmra.mrb[24].mxu0 %v3774_v8  ;;  %3300 = vmatprep.subr.bf16.mxu1 %v5445_v40  ;;  %v2719_v45 = vld [vmem:[%s5366_s1 + $0x3d0] sm:$0xff] }
  0x81   : > { %757 = vmatprep.mubr.f32.mxu0 %v4266_v26  ;;  %v4328_v19 = vsel %vm326_vm1, %v368_v33, %v370_v36 }
  0x82   : > { %1276 = vmatmul.mubr.f32.gmra.mrb[40].mxu1 %v3673_v20  ;;  %v2706_v20 = vld [vmem:[%s5366_s1 + $0x368] sm:$0xff] }
  0x83   : > { %1280 = vmatprep.mubr.f32.mxu1 %v4154_v4  ;;  %3302 = vmatpush1.bf16.msra.mxu1 %v3301_v29  ;;  %v3307_v49 = vpack.c.bf16 %v2706_v20, %v2705_v56  ;;  %v2713_v56 = vld [vmem:[%s5366_s1 + $0x3a0] sm:$0xff]  ;;  %v377_v20 = vrot.slane %v3917_v0, 1 }
  0x84   : > { %758 = vmatmul.mubr.f32.gmra.mrb[26].mxu0 %v3777_v9  ;;  %3303 = vmatprep.subr.bf16.mxu1 %v5445_v40 }
  0x85   : > { %762 = vmatprep.mubr.f32.mxu0 %v4282_v47 }
  0x86   : > { %1281 = vmatmul.mubr.f32.gmra.mrb[42].mxu1 %v3676_v21  ;;  %v2708_v21 = vld [vmem:[%s5366_s1 + $0x378] sm:$0xff] }
  0x87   : > { %1285 = vmatprep.mubr.f32.mxu1 %v4177_v34  ;;  %3305 = vmatpush1.bf16.msra.mxu1 %v3304_v58  ;;  %v3310_v12 = vpack.c.bf16 %v2708_v21, %v2707_v59  ;;  %v4375_v59 = vsel %vm326_vm1, %v377_v20, %v378_v35  ;;  %v380_v21 = vrot.slane %v3953_v50, 1  ;;  %v2723_v20 = vld [vmem:[%s5366_s1 + $0x3f0] sm:$0xff] }
  0x88   : > { %763 = vmatmul.mubr.f32.gmra.mrb[28].mxu0 %v3808_v30  ;;  %3306 = vmatprep.subr.bf16.mxu1 %v5445_v40 }
  0x89   : > { %767 = vmatprep.mubr.f32.mxu0 %v4297_v48  ;;  %v4390_v50 = vsel %vm326_vm1, %v378_v35, %v380_v21  ;;  %v5460_v21 = vld [vmem:[#allocation24_spill] sm:$0xff] }
  0x8a   : > { %1286 = vmatmul.mubr.f32.gmra.mrb[44].mxu1 %v3706_v37  ;;  %v2710_v37 = vld [vmem:[%s5366_s1 + $0x388] sm:$0xff] }
  0x8b   : > { %1290 = vmatprep.mubr.f32.mxu1 %v4195_v10  ;;  %3308 = vmatpush1.bf16.msra.mxu1 %v3307_v49  ;;  %v3313_v29 = vpack.c.bf16 %v2710_v37, %v2709_v6  ;;  %v2715_v49 = vld [vmem:[%s5366_s1 + $0x3b0] sm:$0xff]  ;;  %v382_v6 = vrot.slane %v3956_v24, 1  ;;  %v383_v37 = vrot.slane %v3959_v46, 1 }
  0x8c   : > { %768 = vmatmul.mubr.f32.gmra.mrb[30].mxu0 %v3811_v31  ;;  %3309 = vmatprep.subr.bf16.mxu1 %v5445_v40 }
  0x8d   : > { %772 = vmatprep.mubr.f32.mxu0 %v4313_v14 }
  0x8e   : > { %1291 = vmatmul.mubr.f32.gmra.mrb[46].mxu1 %v3709_v38  ;;  %v2712_v38 = vld [vmem:[%s5366_s1 + $0x398] sm:$0xff] }
  0x8f   : > { %1295 = vmatprep.mubr.f32.mxu1 %v4220_v57  ;;  %3311 = vmatpush1.bf16.msra.mxu1 %v3310_v12  ;;  %v3316_v58 = vpack.c.bf16 %v2712_v38, %v2711_v41  ;;  %v2717_v12 = vld [vmem:[%s5366_s1 + $0x3c0] sm:$0xff]  ;;  %v385_v41 = vrot.slane %v3991_v17, 1 }
  0x90   : > { %773 = vmatmul.mubr.f32.gmra.mrb[32].mxu0 %v3842_v53  ;;  %3312 = vmatprep.subr.bf16.mxu1 %v5445_v40 }
  0x91   : > { %777 = vmatprep.mubr.f32.mxu0 %v4328_v19  ;;  %v4421_v17 = vsel %vm326_vm1, %v383_v37, %v385_v41  ;;  %v5464_v41 = vld [vmem:[#allocation32_spill] sm:$0xff] }
  0x92   : > { %1296 = vmatmul.mubr.f32.gmra.mrb[48].mxu1 %v3740_v51  ;;  %v2714_v51 = vld [vmem:[%s5366_s1 + $0x3a8] sm:$0xff] }
  0x93   : > { %1300 = vmatprep.mubr.f32.mxu1 %v4235_v2  ;;  %3314 = vmatpush1.bf16.msra.mxu1 %v3313_v29  ;;  %v3319_v33 = vpack.c.bf16 %v2714_v51, %v2713_v56  ;;  %v4406_v29 = vsel %vm326_vm1, %v382_v6, %v383_v37  ;;  %v388_v56 = vrot.slane %v3998_v43, 1  ;;  %v5463_v37 = vld [vmem:[#allocation29_spill] sm:$0xff] }
  0x94   : > { %778 = vmatmul.mubr.f32.gmra.mrb[34].mxu0 %v3845_v54  ;;  %3315 = vmatprep.subr.bf16.mxu1 %v5445_v40 }
  0x95   : > { %782 = vmatprep.mubr.f32.mxu0 %v4344_v7 }
  0x96   : > { %1301 = vmatmul.mubr.f32.gmra.mrb[50].mxu1 %v3743_v52  ;;  %v2716_v52 = vld [vmem:[%s5366_s1 + $0x3b8] sm:$0xff] }
  0x97   : > { %1305 = vmatprep.mubr.f32.mxu1 %v4251_v55  ;;  %3317 = vmatpush1.bf16.msra.mxu1 %v3316_v58  ;;  %v3322_v36 = vpack.c.bf16 %v2716_v52, %v2715_v49  ;;  %v387_v58 = vrot.slane %v3995_v28, 1 }
  0x98   : > { %783 = vmatmul.mubr.f32.gmra.mrb[36].mxu0 %v3882_v23  ;;  %3318 = vmatprep.subr.bf16.mxu1 %v5445_v40 }
  0x99   : > { %787 = vmatprep.mubr.f32.mxu0 %v4359_v63  ;;  %v4437_v35 = vsel %vm326_vm1, %v387_v58, %v388_v56  ;;  %v5466_v58 = vld [vmem:[#allocation4_spill] sm:$0xff] }
  0x9a   : > { %1306 = vmatmul.mubr.f32.gmra.mrb[52].mxu1 %v3774_v8  ;;  %v2718_v8 = vld [vmem:[%s5366_s1 + $0x3c8] sm:$0xff] }
  0x9b   : > { %1310 = vmatprep.mubr.f32.mxu1 %v4266_v26  ;;  %3320 = vmatpush1.bf16.msra.mxu1 %v3319_v33  ;;  %v3325_v44 = vpack.c.bf16 %v2718_v8, %v2717_v12  ;;  %v390_v33 = vrot.slane %v4031_v39, 1  ;;  %v5462_v8 = vld [vmem:[#allocation28_spill] sm:$0xff] }
  0x9c   : > { %788 = vmatmul.mubr.f32.gmra.mrb[38].mxu0 %v3885_v27  ;;  %3321 = vmatprep.subr.bf16.mxu1 %v5445_v40  ;;  %v397_v6 = vrot.slane %v5462_v8, 1 }
  0x9d   : > { %792 = vmatprep.mubr.f32.mxu0 %v4375_v59  ;;  %v4446_v52 = vsel %vm326_vm1, %v388_v56, %v390_v33  ;;  %v5467_v56 = vld [vmem:[#allocation5_spill] sm:$0xff]  ;;  %v5469_v33 = vld [vmem:[#allocation7_spill] sm:$0xff] }
  0x9e   : > { %1311 = vmatmul.mubr.f32.gmra.mrb[54].mxu1 %v3777_v9  ;;  %v2720_v9 = vld [vmem:[%s5366_s1 + $0x3d8] sm:$0xff] }
  0x9f   : > { %1315 = vmatprep.mubr.f32.mxu1 %v4282_v47  ;;  %3323 = vmatpush1.bf16.msra.mxu1 %v3322_v36  ;;  %v3328_v38 = vpack.c.bf16 %v2720_v9, %v2719_v45  ;;  %v393_v36 = vrot.slane %v5460_v21, 1  ;;  %v402_v9 = vrot.slane %v4114_v32, 1 }
  0xa0   : > { %793 = vmatmul.mubr.f32.gmra.mrb[40].mxu0 %v3917_v0  ;;  %3324 = vmatprep.subr.bf16.mxu1 %v5445_v40 }
  0xa1   : > { %797 = vmatprep.mubr.f32.mxu0 %v4390_v50 }
  0xa2   : > { %1316 = vmatmul.mubr.f32.gmra.mrb[56].mxu1 %v3808_v30  ;;  %v2722_v30 = vld [vmem:[%s5366_s1 + $0x3e8] sm:$0xff] }
  0xa3   : > { %1320 = vmatprep.mubr.f32.mxu1 %v4297_v48  ;;  %3326 = vmatpush1.bf16.msra.mxu1 %v3325_v44  ;;  %v3331_v51 = vpack.c.bf16 %v2722_v30, %v2721_v18  ;;  %v2730_v30 = vld [vmem:[%s5366_s1 + $0x428] sm:$0xff] }
  0xa4   : > { %798 = vmatmul.mubr.f32.gmra.mrb[42].mxu0 %v3920_v1  ;;  %3327 = vmatprep.subr.bf16.mxu1 %v5445_v40 }
  0xa5   : > { %802 = vmatprep.mubr.f32.mxu0 %v4406_v29 }
  0xa6   : > { %1321 = vmatmul.mubr.f32.gmra.mrb[58].mxu1 %v3811_v31  ;;  %v2724_v31 = vld [vmem:[%s5366_s1 + $0x3f8] sm:$0xff] }
  0xa7   : > { %1325 = vmatprep.mubr.f32.mxu1 %v4313_v14  ;;  %3329 = vmatpush1.bf16.msra.mxu1 %v3328_v38  ;;  %v3334_v49 = vpack.c.bf16 %v2724_v31, %v2723_v20  ;;  %v2732_v20 = vld [vmem:[%s5366_s1 + $0x438] sm:$0xff] }
  0xa8   : > { %803 = vmatmul.mubr.f32.gmra.mrb[44].mxu0 %v3956_v24  ;;  %3330 = vmatprep.subr.bf16.mxu1 %v5445_v40  ;;  %v5468_v31 = vld [vmem:[#allocation6_spill] sm:$0xff] }
  0xa9   : > { %807 = vmatprep.mubr.f32.mxu0 %v4421_v17 }
  0xaa   : > { %1326 = vmatmul.mubr.f32.gmra.mrb[60].mxu1 %v3842_v53  ;;  %v392_v53 = vrot.slane %v4035_v60, 1 }
  0xab   : > { %1330 = vmatprep.mubr.f32.mxu1 %v4328_v19  ;;  %3332 = vmatpush1.bf16.msra.mxu1 %v3331_v51  ;;  %v2731_v51 = vld [vmem:[%s5366_s1 + $0x430] sm:$0xff] }
  0xac   : > { %808 = vmatmul.mubr.f32.gmra.mrb[46].mxu0 %v3959_v46  ;;  %3333 = vmatprep.subr.bf16.mxu1 %v5445_v40  ;;  %v4455_v40 = vsel %vm326_vm1, %v392_v53, %v393_v36  ;;  %v5470_v53 = vld [vmem:[#allocation8_spill] sm:$0xff] }
  0xad   : > { %812 = vmatprep.mubr.f32.mxu0 %v4437_v35 }
  0xae   : > { %1331 = vmatmul.mubr.f32.gmra.mrb[62].mxu1 %v3845_v54  ;;  %v5461_v54 = vld [vmem:[#allocation27_spill] sm:$0xff] }
  0xaf   : > { %1335 = vmatprep.mubr.f32.mxu1 %v4344_v7  ;;  %3335 = vmatpush1.bf16.msra.mxu1 %v3334_v49  ;;  %v395_v39 = vrot.slane %v5461_v54, 1  ;;  %v2734_v49 = vld [vmem:[%s5366_s1 + $0x448] sm:$0xff]  ;;  %v2735_v54 = vld [vmem:[%s5366_s1 + $0x450] sm:$0xff] }
  0xb0   : > { %813 = vmatmul.mubr.f32.gmra.mrb[48].mxu0 %v3995_v28 }
  0xb1   : > { %817 = vmatprep.mubr.f32.mxu0 %v4446_v52  ;;  %v4463_v12 = vsel %vm326_vm1, %v393_v36, %v395_v39  ;;  %v5471_v36 = vld [vmem:[#allocation9_spill] sm:$0xff]  ;;  %v2736_v39 = vld [vmem:[%s5366_s1 + $0x458] sm:$0xff] }
  0xb2   : > { %1336 = vmatmul.mubr.f32.gmra.mrb[64].mxu1 %v3882_v23  ;;  %v398_v23 = vrot.slane %v5463_v37, 1 }
  0xb3   : > { %1340 = vmatprep.mubr.f32.mxu1 %v4359_v63 }
  0xb4   : > { %818 = vmatmul.mubr.f32.gmra.mrb[50].mxu0 %v3998_v43  ;;  %v4472_v44 = vsel %vm326_vm1, %v397_v6, %v398_v23  ;;  %v5472_v6 = vld [vmem:[#allocation10_spill] sm:$0xff] }
  0xb5   : > { %822 = vmatprep.mubr.f32.mxu0 %v4455_v40 }
  0xb6   : > { %1341 = vmatmul.mubr.f32.gmra.mrb[66].mxu1 %v3885_v27  ;;  %v400_v27 = vrot.slane %v4110_v5, 1 }
  0xb7   : > { %1345 = vmatprep.mubr.f32.mxu1 %v4375_v59 }
  0xb8   : > { %823 = vmatmul.mubr.f32.gmra.mrb[52].mxu0 %v4035_v60  ;;  %v4480_v45 = vsel %vm326_vm1, %v398_v23, %v400_v27  ;;  %v5473_v23 = vld [vmem:[#allocation11_spill] sm:$0xff] }
  0xb9   : > { %827 = vmatprep.mubr.f32.mxu0 %v4463_v12  ;;  %v4554_v27 = vld [vmem:[%s3535_s24 + $0x180] sm:$0xff] }
  0xba   : > { %1346 = vmatmul.mubr.f32.gmra.mrb[68].mxu1 %v3917_v0  ;;  %v403_v0 = vrot.slane %v5464_v41, 1 }
  0xbb   : > { %1350 = vmatprep.mubr.f32.mxu1 %v4390_v50 }
  0xbc   : > { %828 = vmatmul.mubr.f32.gmra.mrb[54].mxu0 %v5460_v21  ;;  %v4489_v5 = vsel %vm326_vm1, %v402_v9, %v403_v0  ;;  %v3356_v9 = vpack.c.bf16 %v2736_v39, %v2735_v54  ;;  %v5482_v54 = vld [vmem:[#allocation19_spill] sm:$0xff]  ;;  %v5483_v39 = vld [vmem:[#allocation20_spill] sm:$0xff] }
  0xbd   : > { %832 = vmatprep.mubr.f32.mxu0 %v4472_v44 }
  0xbe   : > { %1351 = vmatmul.mubr.f32.gmra.mrb[70].mxu1 %v3920_v1  ;;  %v405_v1 = vrot.slane %v4149_v22, 1  ;;  %v5465_v22 = vld [vmem:[#allocation3_spill] sm:$0xff] }
  0xbf   : > { %1355 = vmatprep.mubr.f32.mxu1 %v4406_v29 }
  0xc0   : > { %833 = vmatmul.mubr.f32.gmra.mrb[56].mxu0 %v5462_v8  ;;  %v4497_v38 = vsel %vm326_vm1, %v403_v0, %v405_v1  ;;  %v2737_v0 = vld [vmem:[%s5366_s1 + $0x460] sm:$0xff]  ;;  %v2738_v1 = vld [vmem:[%s5366_s1 + $0x468] sm:$0xff] }
  0xc1   : > { %837 = vmatprep.mubr.f32.mxu0 %v4480_v45 }
  0xc2   : > { %1356 = vmatmul.mubr.f32.gmra.mrb[72].mxu1 %v3956_v24  ;;  %v2727_v24 = vld [vmem:[%s5366_s1 + $0x410] sm:$0xff] }
  0xc3   : > { %1360 = vmatprep.mubr.f32.mxu1 %v4421_v17 }
  0xc4   : > { %838 = vmatmul.mubr.f32.gmra.mrb[58].mxu0 %v5463_v37 }
  0xc5   : > { %842 = vmatprep.mubr.f32.mxu0 %v4489_v5 }
  0xc6   : > { %1361 = vmatmul.mubr.f32.gmra.mrb[74].mxu1 %v3959_v46  ;;  %v2728_v46 = vld [vmem:[%s5366_s1 + $0x418] sm:$0xff] }
  0xc7   : > { %1365 = vmatprep.mubr.f32.mxu1 %v4437_v35  ;;  %v3340_v18 = vpack.c.bf16 %v2728_v46, %v2727_v24  ;;  %v5475_v24 = vld [vmem:[#allocation12_spill] sm:$0xff]  ;;  %v407_v46 = vrot.slane %v4554_v27, 1 }
  0xc8   : > { %843 = vmatmul.mubr.f32.gmra.mrb[60].mxu0 %v4114_v32 }
  0xc9   : > { %847 = vmatprep.mubr.f32.mxu0 %v4497_v38 }
  0xca   : > { %1366 = vmatmul.mubr.f32.gmra.mrb[76].mxu1 %v3995_v28  ;;  %v2729_v28 = vld [vmem:[%s5366_s1 + $0x420] sm:$0xff] }
  0xcb   : > { %1370 = vmatprep.mubr.f32.mxu1 %v4446_v52 }
  0xcc   : > { %848 = vmatmul.mubr.f32.gmra.mrb[62].mxu0 %v5464_v41 }
  0xcd   : > { %3000 = vmatprep.mubr.f32.mxu0 %v5465_v22 }
  0xce   : > { %1371 = vmatmul.mubr.f32.gmra.mrb[78].mxu1 %v3998_v43  ;;  %v3344_v43 = vpack.c.bf16 %v2730_v30, %v2729_v28  ;;  %v3360_v28 = vpack.c.bf16 %v2738_v1, %v2737_v0  ;;  %v2739_v30 = vld [vmem:[%s5366_s1 + $0x470] sm:$0xff]  ;;  %v5485_v1 = vld [vmem:[#allocation22_spill] sm:$0xff] }
  0xcf   : > { %1375 = vmatprep.mubr.f32.mxu1 %v4455_v40  ;;  %v3394_v0 = vld [vmem:[%s3535_s24 + $0x30] sm:$0xff] }
  0xd0   : > { %3001 = vmatmul.mubr.f32.vlgmr.msra.gmra.mrb[64].mxu0 %v5466_v58  ;;  %v2740_v58 = vld [vmem:[%s5366_s1 + $0x478] sm:$0xff] }
  0xd1   : > { %3003 = vmatprep.mubr.f32.mxu0 %v5467_v56  ;;  %3339 = vmatpush3.bf16.msra.mxu0 %v4206_v62  ;;  %v2733_v62 = vld [vmem:[%s5366_s1 + $0x440] sm:$0xff] }
  0xd2   : > { %1376 = vmatmul.mubr.f32.gmra.mrb[80].mxu1 %v4035_v60  ;;  %3341 = vmatprep.subr.bf16.mxu0 %v3340_v18  ;;  %v3348_v60 = vpack.c.bf16 %v2732_v20, %v2731_v51 }
  0xd3   : > { %1380 = vmatprep.mubr.f32.mxu1 %v4463_v12 }
  0xd4   : > { %3004 = vmatmul.mubr.f32.gmra.mrb[66].mxu0 %v5468_v31 }
  0xd5   : > { %3006 = vmatprep.mubr.f32.mxu0 %v5469_v33  ;;  %3343 = vmatpush3.bf16.msra.mxu0 %v3340_v18  ;;  %v5476_v18 = vld [vmem:[#allocation13_spill] sm:$0xff] }
  0xd6   : > { %1381 = vmatmul.mubr.f32.gmra.mrb[82].mxu1 %v5460_v21  ;;  %3345 = vmatprep.subr.bf16.mxu0 %v3344_v43  ;;  %v3352_v21 = vpack.c.bf16 %v2734_v49, %v2733_v62  ;;  %v5479_v62 = vld [vmem:[#allocation16_spill] sm:$0xff] }
  0xd7   : > { %1385 = vmatprep.mubr.f32.mxu1 %v4472_v44 }
  0xd8   : > { %3007 = vmatmul.mubr.f32.gmra.mrb[68].mxu0 %v5470_v53 }
  0xd9   : > { %3009 = vmatprep.mubr.f32.mxu0 %v5471_v36  ;;  %3347 = vmatpush3.bf16.msra.mxu0 %v3344_v43  ;;  %v5477_v43 = vld [vmem:[#allocation14_spill] sm:$0xff] }
  0xda   : > { %1386 = vmatmul.mubr.f32.gmra.mrb[84].mxu1 %v5462_v8  ;;  %3349 = vmatprep.subr.bf16.mxu0 %v3348_v60  ;;  %v4557_v8 = vld [vmem:[%s3535_s24 + $0x188] sm:$0xff] }
  0xdb   : > { %1390 = vmatprep.mubr.f32.mxu1 %v4480_v45  ;;  %5474 = vst [vmem:[#allocation24_spill] sm:$0xff] %v4557_v8  ;;  %v408_v22 = vrot.slane %v4557_v8, 1 }
  0xdc   : > { %3010 = vmatmul.mubr.f32.gmra.mrb[70].mxu0 %v5472_v6 }
  0xdd   : > { %3012 = vmatprep.mubr.f32.mxu0 %v5473_v23  ;;  %3351 = vmatpush3.bf16.msra.mxu0 %v3348_v60  ;;  %v4584_v51 = vsel %vm326_vm1, %v407_v46, %v408_v22  ;;  %v3364_v60 = vpack.c.bf16 %v2740_v58, %v2739_v30  ;;  %v5486_v46 = vld [vmem:[#allocation23_spill] sm:$0xff]  ;;  %v3396_v30 = vld [vmem:[%s3535_s24 + $0x48] sm:$0xff]  ;;  %v5489_v58 = vld [vmem:[#allocation30_spill] sm:$0xff] }
  0xde   : > { %1391 = vmatmul.mubr.f32.gmra.mrb[86].mxu1 %v5463_v37  ;;  %3353 = vmatprep.subr.bf16.mxu0 %v3352_v21  ;;  %v4572_v37 = vld [vmem:[%s3535_s24 + $0x190] sm:$0x3] }
  0xdf   : > { %1395 = vmatprep.mubr.f32.mxu1 %v4489_v5  ;;  %v410_v20 = vrot.slane %v4572_v37, 1 }
  0xe0   : > { %3013 = vmatmul.mubr.f32.gmra.mrb[72].mxu0 %v5475_v24 }
  0xe1   : > { %3015 = vmatprep.mubr.f32.mxu0 %v5476_v18  ;;  %3355 = vmatpush3.bf16.msra.mxu0 %v3352_v21  ;;  %v4592_v49 = vsel %vm326_vm1, %v408_v22, %v410_v20  ;;  %v5480_v21 = vld [vmem:[#allocation17_spill] sm:$0xff]  ;;  %v3395_v22 = vld [vmem:[%s3535_s24 + $0x38] sm:$0xff] }
  0xe2   : > { %1396 = vmatmul.mubr.f32.gmra.mrb[88].mxu1 %v4114_v32  ;;  %3357 = vmatprep.subr.bf16.mxu0 %v3356_v9  ;;  %v5478_v32 = vld [vmem:[#allocation15_spill] sm:$0xff]  ;;  %v3397_v20 = vld [vmem:[%s3535_s24 + $0x50] sm:$0xff] }
  0xe3   : > { %1400 = vmatprep.mubr.f32.mxu1 %v4497_v38 }
  0xe4   : > { %3016 = vmatmul.mubr.f32.gmra.mrb[74].mxu0 %v5477_v43 }
  0xe5   : > { %3018 = vmatprep.mubr.f32.mxu0 %v5478_v32  ;;  %3359 = vmatpush3.bf16.msra.mxu0 %v3356_v9  ;;  %v5484_v9 = vld [vmem:[#allocation21_spill] sm:$0xff] }
  0xe6   : > { %1401 = vmatmul.mubr.f32.gmra.mrb[90].mxu1 %v5464_v41  ;;  %3361 = vmatprep.subr.bf16.mxu0 %v3360_v28  ;;  %v5481_v41 = vld [vmem:[#allocation18_spill] sm:$0xff] }
  0xe7   : > { %1405 = vmatprep.mubr.f32.mxu1 %v4584_v51 }
  0xe8   : > { %3019 = vmatmul.mubr.f32.gmra.mrb[76].mxu0 %v5479_v62 }
  0xe9   : > { %3021 = vmatprep.mubr.f32.mxu0 %v5480_v21  ;;  %3363 = vmatpush3.bf16.msra.mxu0 %v3360_v28  ;;  %v5487_v28 = vld [vmem:[#allocation25_spill] sm:$0xff] }
  0xea   : > { %1406 = vmatmul.mubr.f32.gmra.mrb[92].mxu1 %v4554_v27  ;;  %3365 = vmatprep.subr.bf16.mxu0 %v3364_v60 }
  0xeb   : > { %1410 = vmatprep.mubr.f32.mxu1 %v4592_v49 }
  0xec   : > { %3022 = vmatmul.mubr.f32.gmra.mrb[78].mxu0 %v5481_v41 }
  0xed   : > { %3024 = vmatprep.mubr.f32.mxu0 %v5482_v54  ;;  %3367 = vmatpush3.bf16.msra.mxu0 %v3364_v60  ;;  %v534_v60 = vrot.slane %v4554_v27, 2 }
  0xee   : > { %1411 = vmatmul.mubr.f32.gmra.mrb[94].mxu1 %v4557_v8 }
  0xef   : > { %1850 = vmatprep.mubr.f32.mxu1 %v4042_v3  ;;  %v5488_v3 = vld [vmem:[#allocation26_spill] sm:$0xff] }
  0xf0   : > { %3025 = vmatmul.mubr.f32.gmra.mrb[80].mxu0 %v5483_v39 }
  0xf1   : > { %3027 = vmatprep.mubr.f32.mxu0 %v5484_v9 }
  0xf2   : > { %1851 = vmatmul.mubr.f32.vlgmr.msra.gmra.mrb[96].mxu1 %v3394_v0  ;;  %v535_v0 = vrot.slane %v4557_v8, 2  ;;  %v3400_v8 = vld [vmem:[%s3535_s24 + $0x78] sm:$0xff] }
  0xf3   : > { %1855 = vmatprep.mubr.f32.mxu1 %v4081_v42  ;;  %v5490_v42 = vld [vmem:[#allocation31_spill] sm:$0xff] }
  0xf4   : > { %3028 = vmatmul.mubr.f32.gmra.mrb[82].mxu0 %v5485_v1 }
  0xf5   : > { %3030 = vmatprep.mubr.f32.mxu0 %v5486_v46 }
  0xf6   : > { %1856 = vmatmul.mubr.f32.gmra.mrb[98].mxu1 %v3395_v22 }
  0xf7   : > { %1860 = vmatprep.mubr.f32.mxu1 %v4121_v15  ;;  %v3398_v15 = vld [vmem:[%s3535_s24 + $0x60] sm:$0xff] }
  0xf8   : > { %3031 = vmatmul.mubr.f32.gmra.mrb[84].mxu0 %v5487_v28 }
  0xf9   : > { %3033 = vmatprep.mubr.f32.mxu0 %v5488_v3 }
  0xfa   : > { %1861 = vmatmul.mubr.f32.gmra.mrb[100].mxu1 %v3396_v30  ;;  %v3399_v30 = vld [vmem:[%s3535_s24 + $0x68] sm:$0xff] }
  0xfb   : > { %1865 = vmatprep.mubr.f32.mxu1 %v4154_v4 }
  0xfc   : > { %3034 = vmatmul.mubr.f32.gmra.mrb[86].mxu0 %v5489_v58 }
  0xfd   : > { %3036 = vmatprep.mubr.f32.mxu0 %v5490_v42 }
  0xfe   : > { %1866 = vmatmul.mubr.f32.gmra.mrb[102].mxu1 %v3397_v20  ;;  %v4630_v20 = vsel %vm453_vm0, %v534_v60, %v535_v0 }
  0xff   : > { %1870 = vmatprep.mubr.f32.mxu1 %v4177_v34  ;;  %v537_v34 = vrot.slane %v4572_v37, 2 }
 0x100   : > { %3037 = vmatmul.mubr.f32.gmra.mrb[88].mxu0 %v4126_v11 }
 0x101   : > { %3039 = vmatprep.mubr.f32.mxu0 %v4138_v16 }
 0x102   : > { %1871 = vmatmul.mubr.f32.gmra.mrb[104].mxu1 %v3398_v15  ;;  %v4638_v15 = vsel %vm453_vm0, %v535_v0, %v537_v34 }
 0x103   : > { %1875 = vmatprep.mubr.f32.mxu1 %v4195_v10 }
 0x104   : > { %3040 = vmatmul.mubr.f32.gmra.mrb[90].mxu0 %v4160_v25 }
 0x105   : > { %v4624_v4 = vpop.f32.mrb[0].mxu1  ;;  %3042 = vmatprep.mubr.f32.mxu0 %v4166_v13 }
 0x106   : > { %v919_v22 = vpop.f32.mrb[1].mxu1  ;;  %1876 = vmatmul.mubr.f32.gmra.mrb[106].mxu1 %v3399_v30  ;;  %v3401_v30 = vld [vmem:[%s3535_s24 + $0x80] sm:$0xff] }
 0x107   : > { %1880 = vmatprep.mubr.f32.mxu1 %v4220_v57 }
 0x108   : > { %3043 = vmatmul.mubr.f32.gmra.mrb[92].mxu0 %v4182_v61 }
 0x109   : > { %v4634_v10 = vpop.f32.mrb[2].mxu1  ;;  %3045 = vmatprep.mubr.f32.mxu0 %v4630_v20 }
 0x10a   : > { %v4640_v37 = vpop.f32.mrb[3].mxu1  ;;  %1881 = vmatmul.mubr.f32.gmra.mrb[108].mxu1 %v3400_v8  ;;  %v3402_v8 = vld [vmem:[%s3535_s24 + $0x90] sm:$0xff] }
 0x10b   : > { %1885 = vmatprep.mubr.f32.mxu1 %v4235_v2 }
 0x10c   : > { %3046 = vmatmul.mubr.f32.gmra.mrb[94].mxu0 %v4638_v15 }
 0x10d   : > { %v4645_v60 = vpop.f32.mrb[4].mxu1  ;;  %3080 = vmatprep.mubr.f32.mxu0 %v5467_v56 }
 0x10e   : > { %v4648_v57 = vpop.f32.mrb[5].mxu1  ;;  %1886 = vmatmul.mubr.f32.gmra.mrb[110].mxu1 %v3401_v30 }
 0x10f   : > { %1890 = vmatprep.mubr.f32.mxu1 %v4251_v55 }
 0x110   : > { %3081 = vmatmul.mubr.f32.vlgmr.msra.gmra.mrb[96].mxu0 %v5468_v31  ;;  %v3403_v31 = vld [vmem:[%s3535_s24 + $0x98] sm:$0xff] }
 0x111   : > { %v4653_v0 = vpop.f32.mrb[6].mxu1  ;;  %3083 = vmatprep.mubr.f32.mxu0 %v5469_v33 }
 0x112   : > { %v4656_v2 = vpop.f32.mrb[7].mxu1  ;;  %1891 = vmatmul.mubr.f32.gmra.mrb[112].mxu1 %v3402_v8 }
 0x113   : > { %1895 = vmatprep.mubr.f32.mxu1 %v4266_v26 }
 0x114   : > { %3084 = vmatmul.mubr.f32.gmra.mrb[98].mxu0 %v5470_v53  ;;  %v3404_v53 = vld [vmem:[%s3535_s24 + $0xa8] sm:$0xff] }
 0x115   : > { %v4661_v56 = vpop.f32.mrb[8].mxu1  ;;  %3086 = vmatprep.mubr.f32.mxu0 %v5471_v36 }
 0x116   : > { %v4664_v55 = vpop.f32.mrb[9].mxu1  ;;  %1896 = vmatmul.mubr.f32.gmra.mrb[114].mxu1 %v3403_v31 }
 0x117   : > { %1900 = vmatprep.mubr.f32.mxu1 %v4282_v47 }
 0x118   : > { %3087 = vmatmul.mubr.f32.gmra.mrb[100].mxu0 %v5472_v6  ;;  %v3405_v6 = vld [vmem:[%s3535_s24 + $0xb0] sm:$0xff] }
 0x119   : > { %v4669_v33 = vpop.f32.mrb[10].mxu1  ;;  %3089 = vmatprep.mubr.f32.mxu0 %v5473_v23 }
 0x11a   : > { %v4672_v26 = vpop.f32.mrb[11].mxu1  ;;  %1901 = vmatmul.mubr.f32.gmra.mrb[116].mxu1 %v3404_v53 }
 0x11b   : > { %1905 = vmatprep.mubr.f32.mxu1 %v4297_v48 }
 0x11c   : > { %3090 = vmatmul.mubr.f32.gmra.mrb[102].mxu0 %v5475_v24  ;;  %v3406_v24 = vld [vmem:[%s3535_s24 + $0xc0] sm:$0xff] }
 0x11d   : > { %v4677_v36 = vpop.f32.mrb[12].mxu1  ;;  %3092 = vmatprep.mubr.f32.mxu0 %v5476_v18 }
 0x11e   : > { %v4680_v47 = vpop.f32.mrb[13].mxu1  ;;  %1906 = vmatmul.mubr.f32.gmra.mrb[118].mxu1 %v3405_v6 }
 0x11f   : > { %1910 = vmatprep.mubr.f32.mxu1 %v4313_v14 }
 0x120   : > { %3093 = vmatmul.mubr.f32.gmra.mrb[104].mxu0 %v5477_v43 }
 0x121   : > { %v4685_v23 = vpop.f32.mrb[14].mxu1  ;;  %3095 = vmatprep.mubr.f32.mxu0 %v5478_v32  ;;  %v3407_v32 = vld [vmem:[%s3535_s24 + $0xc8] sm:$0xff] }
 0x122   : > { %v4688_v48 = vpop.f32.mrb[15].mxu1  ;;  %1911 = vmatmul.mubr.f32.gmra.mrb[120].mxu1 %v3406_v24 }
 0x123   : > { %v694_v34 = vpop.f32.mrb[0].mxu0  ;;  %1915 = vmatprep.mubr.f32.mxu1 %v4328_v19 }
 0x124   : > { %v4692_v18 = vadd.f32 %v919_v22, %v694_v34  ;;  %3096 = vmatmul.mubr.f32.gmra.mrb[106].mxu0 %v5479_v62  ;;  %v696_v30 = vpop.f32.mrb[1].mxu0 }
 0x125   : > { %v4695_v14 = vpop.f32.mrb[16].mxu1  ;;  %3098 = vmatprep.mubr.f32.mxu0 %v5480_v21  ;;  %v3408_v21 = vld [vmem:[%s3535_s24 + $0xd8] sm:$0xff] }
 0x126   : > { %v4698_v43 = vpop.f32.mrb[17].mxu1  ;;  %1916 = vmatmul.mubr.f32.gmra.mrb[122].mxu1 %v3407_v32 }
 0x127   : > { %v699_v8 = vpop.f32.mrb[2].mxu0  ;;  %1920 = vmatprep.mubr.f32.mxu1 %v4344_v7 }
 0x128   : > { %v4703_v31 = vadd.f32 %v4624_v4, %v699_v8  ;;  %3099 = vmatmul.mubr.f32.gmra.mrb[108].mxu0 %v5481_v41  ;;  %v701_v19 = vpop.f32.mrb[3].mxu0 }
 0x129   : > { %v4706_v62 = vpop.f32.mrb[18].mxu1  ;;  %3101 = vmatprep.mubr.f32.mxu0 %v5482_v54  ;;  %v3409_v54 = vld [vmem:[%s3535_s24 + $0xe0] sm:$0xff] }
 0x12a   : > { %v4709_v22 = vpop.f32.mrb[19].mxu1  ;;  %1921 = vmatmul.mubr.f32.gmra.mrb[124].mxu1 %v3408_v21 }
 0x12b   : > { %v704_v53 = vpop.f32.mrb[4].mxu0  ;;  %1925 = vmatprep.mubr.f32.mxu1 %v4359_v63 }
 0x12c   : > { %v4714_v7 = vadd.f32 %v4640_v37, %v704_v53  ;;  %3102 = vmatmul.mubr.f32.gmra.mrb[110].mxu0 %v5483_v39  ;;  %v706_v4 = vpop.f32.mrb[5].mxu0  ;;  %v3413_v53 = vld [vmem:[%s3535_s24 + $0x110] sm:$0xff] }
 0x12d   : > { %v4717_v41 = vpop.f32.mrb[20].mxu1  ;;  %3104 = vmatprep.mubr.f32.mxu0 %v5484_v9  ;;  %v3410_v9 = vld [vmem:[%s3535_s24 + $0xf0] sm:$0xff] }
 0x12e   : > { %v4720_v6 = vpop.f32.mrb[21].mxu1  ;;  %1926 = vmatmul.mubr.f32.gmra.mrb[126].mxu1 %v3409_v54 }
 0x12f   : > { %v709_v24 = vpop.f32.mrb[6].mxu0  ;;  %1930 = vmatprep.mubr.f32.mxu1 %v4375_v59 }
 0x130   : > { %v4725_v63 = vadd.f32 %v4634_v10, %v709_v24  ;;  %3105 = vmatmul.mubr.f32.gmra.mrb[112].mxu0 %v5485_v1  ;;  %v711_v37 = vpop.f32.mrb[7].mxu0 }
 0x131   : > { %v4728_v39 = vpop.f32.mrb[22].mxu1  ;;  %3107 = vmatprep.mubr.f32.mxu0 %v5486_v46  ;;  %v3411_v46 = vld [vmem:[%s3535_s24 + $0xf8] sm:$0xff]  ;;  %v3414_v37 = vld [vmem:[%s3535_s24 + $0x120] sm:$0xff] }
 0x132   : > { %v4731_v34 = vpop.f32.mrb[23].mxu1  ;;  %1931 = vmatmul.mubr.f32.gmra.mrb[128].mxu1 %v3410_v9 }
 0x133   : > { %v714_v30 = vpop.f32.mrb[8].mxu0  ;;  %1935 = vmatprep.mubr.f32.mxu1 %v4390_v50 }
 0x134   : > { %v4736_v59 = vadd.f32 %v4648_v57, %v714_v30  ;;  %v716_v10 = vpop.f32.mrb[9].mxu0  ;;  %3108 = vmatmul.mubr.f32.gmra.mrb[114].mxu0 %v5487_v28  ;;  %v4787_v30 = vld [vmem:[%s3535_s24 + $0x1a8] sm:$0x3] }
 0x135   : > { %v4739_v1 = vpop.f32.mrb[24].mxu1  ;;  %3110 = vmatprep.mubr.f32.mxu0 %v5488_v3  ;;  %v3412_v3 = vld [vmem:[%s3535_s24 + $0x108] sm:$0xff] }
 0x136   : > { %v4742_v32 = vpop.f32.mrb[25].mxu1  ;;  %1936 = vmatmul.mubr.f32.gmra.mrb[130].mxu1 %v3411_v46  ;;  %v542_v46 = vrot.slane %v4787_v30, 2 }
 0x137   : > { %v719_v8 = vpop.f32.mrb[10].mxu0  ;;  %1940 = vmatprep.mubr.f32.mxu1 %v4406_v29 }
 0x138   : > { %v4747_v50 = vadd.f32 %v4645_v60, %v719_v8  ;;  %v721_v57 = vpop.f32.mrb[11].mxu0  ;;  %3111 = vmatmul.mubr.f32.gmra.mrb[116].mxu0 %v5489_v58 }
 0x139   : > { %v4750_v19 = vpop.f32.mrb[26].mxu1  ;;  %3113 = vmatprep.mubr.f32.mxu0 %v5490_v42  ;;  %v3415_v57 = vld [vmem:[%s3535_s24 + $0x128] sm:$0xff] }
 0x13a   : > { %v4753_v28 = vpop.f32.mrb[27].mxu1  ;;  %1941 = vmatmul.mubr.f32.gmra.mrb[132].mxu1 %v3412_v3 }
 0x13b   : > { %v724_v21 = vpop.f32.mrb[12].mxu0  ;;  %1945 = vmatprep.mubr.f32.mxu1 %v4421_v17  ;;  %v4769_v17 = vld [vmem:[%s3535_s24 + $0x198] sm:$0xff] }
 0x13c   : > { %v4758_v29 = vadd.f32 %v4656_v2, %v724_v21  ;;  %v726_v60 = vpop.f32.mrb[13].mxu0  ;;  %3114 = vmatmul.mubr.f32.gmra.mrb[118].mxu0 %v4126_v11  ;;  %v4772_v2 = vld [vmem:[%s3535_s24 + $0x1a0] sm:$0xff] }
 0x13d   : > { %v4761_v58 = vpop.f32.mrb[28].mxu1  ;;  %3116 = vmatprep.mubr.f32.mxu0 %v4138_v16  ;;  %v540_v9 = vrot.slane %v4772_v2, 2 }
 0x13e   : > { %v4764_v42 = vpop.f32.mrb[29].mxu1  ;;  %1946 = vmatmul.mubr.f32.gmra.mrb[134].mxu1 %v3413_v53  ;;  %v3416_v53 = vld [vmem:[%s3535_s24 + $0x138] sm:$0xff] }
 0x13f   : > { %v729_v4 = vpop.f32.mrb[14].mxu0  ;;  %1950 = vmatprep.mubr.f32.mxu1 %v4437_v35  ;;  %v539_v35 = vrot.slane %v4769_v17, 2 }
 0x140   : > { %v4775_v54 = vadd.f32 %v4653_v0, %v729_v4  ;;  %v731_v11 = vpop.f32.mrb[15].mxu0  ;;  %3117 = vmatmul.mubr.f32.gmra.mrb[120].mxu0 %v4160_v25 }
 0x141   : > { %v4778_v24 = vpop.f32.mrb[30].mxu1  ;;  %3119 = vmatprep.mubr.f32.mxu0 %v4166_v13  ;;  %v541_v3 = vsel %vm453_vm0, %v539_v35, %v540_v9 }
 0x142   : > { %v4781_v16 = vpop.f32.mrb[31].mxu1  ;;  %1951 = vmatmul.mubr.f32.gmra.mrb[136].mxu1 %v3414_v37  ;;  %v3417_v37 = vld [vmem:[%s3535_s24 + $0x140] sm:$0xff] }
 0x143   : > { %v734_v0 = vpop.f32.mrb[16].mxu0  ;;  %1955 = vmatprep.mubr.f32.mxu1 %v4446_v52 }
 0x144   : > { %v4791_v25 = vadd.f32 %v4664_v55, %v734_v0  ;;  %v736_v10 = vpop.f32.mrb[17].mxu0  ;;  %3120 = vmatmul.mubr.f32.gmra.mrb[122].mxu0 %v4182_v61 }
 0x145   : > { %v4794_v13 = vpop.f32.mrb[32].mxu1  ;;  %3122 = vmatprep.mubr.f32.mxu0 %v4630_v20  ;;  %v543_v20 = vsel %vm453_vm0, %v540_v9, %v542_v46 }
 0x146   : > { %v1259_v8 = vpop.f32.mrb[33].mxu1  ;;  %1956 = vmatmul.mubr.f32.gmra.mrb[138].mxu1 %v3415_v57 }
 0x147   : > { %v739_v21 = vpop.f32.mrb[18].mxu0  ;;  %1960 = vmatprep.mubr.f32.mxu1 %v4455_v40 }
 0x148   : > { %v4802_v52 = vadd.f32 %v4661_v56, %v739_v21  ;;  %v741_v61 = vpop.f32.mrb[19].mxu0  ;;  %3123 = vmatmul.mubr.f32.gmra.mrb[124].mxu0 %v4638_v15  ;;  %v3419_v21 = vld [vmem:[%s3535_s24 + $0x158] sm:$0xff] }
 0x149   : > { %v4805_v55 = vpop.f32.mrb[34].mxu1  ;;  %3125 = vmatprep.mubr.f32.mxu0 %v541_v3 }
 0x14a   : > { %v1264_v60 = vpop.f32.mrb[35].mxu1  ;;  %1961 = vmatmul.mubr.f32.gmra.mrb[140].mxu1 %v3416_v53  ;;  %v3420_v53 = vld [vmem:[%s3535_s24 + $0x168] sm:$0xff] }
 0x14b   : > { %v744_v4 = vpop.f32.mrb[20].mxu0  ;;  %1965 = vmatprep.mubr.f32.mxu1 %v4463_v12 }
 0x14c   : > { %v4811_v40 = vadd.f32 %v4672_v26, %v744_v4  ;;  %v746_v56 = vpop.f32.mrb[21].mxu0  ;;  %3126 = vmatmul.mubr.f32.gmra.mrb[126].mxu0 %v543_v20  ;;  %v3418_v26 = vld [vmem:[%s3535_s24 + $0x150] sm:$0xff] }
 0x14d   : > { %v4813_v11 = vpop.f32.mrb[36].mxu1 }
 0x14e   : > { %v1269_v15 = vpop.f32.mrb[37].mxu1  ;;  %1966 = vmatmul.mubr.f32.gmra.mrb[142].mxu1 %v3417_v37 }
 0x14f   : > { %v749_v35 = vpop.f32.mrb[22].mxu0  ;;  %1970 = vmatprep.mubr.f32.mxu1 %v4472_v44 }
 0x150   : > { %v4818_v9 = vadd.f32 %v4669_v33, %v749_v35  ;;  %v751_v0 = vpop.f32.mrb[23].mxu0 }
 0x151   : > { %v4820_v10 = vpop.f32.mrb[38].mxu1 }
 0x152   : > { %v1274_v12 = vpop.f32.mrb[39].mxu1  ;;  %1971 = vmatmul.mubr.f32.gmra.mrb[144].mxu1 %v3418_v26 }
 0x153   : > { %v754_v46 = vpop.f32.mrb[24].mxu0  ;;  %1975 = vmatprep.mubr.f32.mxu1 %v4480_v45  ;;  %v412_v12 = vrot.slane %v4769_v17, 1 }
 0x154   : > { %v4825_v8 = vadd.f32 %v4680_v47, %v754_v46  ;;  %v756_v57 = vpop.f32.mrb[25].mxu0 }
 0x155   : > { %v4827_v3 = vpop.f32.mrb[40].mxu1 }
 0x156   : > { %v1279_v44 = vpop.f32.mrb[41].mxu1  ;;  %1976 = vmatmul.mubr.f32.gmra.mrb[146].mxu1 %v3419_v21 }
 0x157   : > { %v759_v33 = vpop.f32.mrb[26].mxu0  ;;  %1980 = vmatprep.mubr.f32.mxu1 %v4489_v5  ;;  %v3421_v5 = vld [vmem:[%s3535_s24 + $0x170] sm:$0xff]  ;;  %v415_v44 = vrot.slane %v4787_v30, 1  ;;  %s2743_s24 = sshll.u32 %s5507_s12, 8 }
 0x158   : > { %v4832_v61 = vadd.f32 %v4677_v36, %v759_v33  ;;  %v761_v20 = vpop.f32.mrb[27].mxu0  ;;  %s5087_s22 = scalar_lea.vmem %s5367_s2, %s2743_s24 }
 0x159   : > { %v4834_v60 = vpop.f32.mrb[42].mxu1  ;;  %v5491_v20 = vld [vmem:[#allocation24_spill] sm:$0xff] }
 0x15a   : > { %v1284_v45 = vpop.f32.mrb[43].mxu1  ;;  %1981 = vmatmul.mubr.f32.gmra.mrb[148].mxu1 %v3420_v53 }
 0x15b   : > { %v764_v47 = vpop.f32.mrb[28].mxu0  ;;  %1985 = vmatprep.mubr.f32.mxu1 %v4497_v38  ;;  %v413_v38 = vrot.slane %v4772_v2, 1 }
 0x15c   : > { %v4839_v4 = vadd.f32 %v4688_v48, %v764_v47  ;;  %v766_v56 = vpop.f32.mrb[29].mxu0 }
 0x15d   : > { %v4841_v15 = vpop.f32.mrb[44].mxu1 }
 0x15e   : > { %v1289_v37 = vpop.f32.mrb[45].mxu1  ;;  %1986 = vmatmul.mubr.f32.gmra.mrb[150].mxu1 %v3421_v5 }
 0x15f   : > { %v769_v36 = vpop.f32.mrb[30].mxu0  ;;  %1990 = vmatprep.mubr.f32.mxu1 %v4584_v51 }
 0x160   : > { %v4846_v35 = vadd.f32 %v4685_v23, %v769_v36  ;;  %v771_v0 = vpop.f32.mrb[31].mxu0  ;;  %v414_v23 = vsel %vm326_vm1, %v412_v12, %v413_v38 }
 0x161   : > { %v4850_v26 = vpop.f32.mrb[46].mxu1 }
 0x162   : > { %v1294_v48 = vpop.f32.mrb[47].mxu1  ;;  %1991 = vmatmul.mubr.f32.gmra.mrb[152].mxu1 %v4554_v27 }
 0x163   : > { %v774_v46 = vpop.f32.mrb[32].mxu0  ;;  %1995 = vmatprep.mubr.f32.mxu1 %v4592_v49  ;;  %v416_v49 = vsel %vm326_vm1, %v413_v38, %v415_v44 }
 0x164   : > { %v4855_v57 = vadd.f32 %v4698_v43, %v774_v46  ;;  %v776_v51 = vpop.f32.mrb[33].mxu0 }
 0x165   : > { %v4859_v21 = vpop.f32.mrb[48].mxu1 }
 0x166   : > { %v1299_v33 = vpop.f32.mrb[49].mxu1  ;;  %1996 = vmatmul.mubr.f32.gmra.mrb[154].mxu1 %v5491_v20 }
 0x167   : > { %v779_v45 = vpop.f32.mrb[34].mxu0  ;;  %2000 = vmatprep.mubr.f32.mxu1 %v414_v23 }
 0x168   : > { %v4863_v27 = vadd.f32 %v4695_v14, %v779_v45  ;;  %v781_v53 = vpop.f32.mrb[35].mxu0 }
 0x169   : > { %v4866_v43 = vpop.f32.mrb[50].mxu1 }
 0x16a   : > { %v1304_v47 = vpop.f32.mrb[51].mxu1  ;;  %2001 = vmatmul.mubr.f32.gmra.mrb[156].mxu1 %v4769_v17 }
 0x16b   : > { %v784_v56 = vpop.f32.mrb[36].mxu0  ;;  %2005 = vmatprep.mubr.f32.mxu1 %v416_v49 }
 0x16c   : > { %v4870_v30 = vadd.f32 %v4709_v22, %v784_v56  ;;  %v786_v37 = vpop.f32.mrb[37].mxu0 }
 0x16d   : > { %v4872_v5 = vpop.f32.mrb[52].mxu1 }
 0x16e   : > { %v1309_v36 = vpop.f32.mrb[53].mxu1  ;;  %2006 = vmatmul.mubr.f32.gmra.mrb[158].mxu1 %v4772_v2 }
 0x16f   : > { %v789_v14 = vpop.f32.mrb[38].mxu0 }
 0x170   : > { %v4876_v0 = vadd.f32 %v4706_v62, %v789_v14  ;;  %v791_v12 = vpop.f32.mrb[39].mxu0 }
 0x171   : > { %v4878_v38 = vpop.f32.mrb[54].mxu1 }
 0x172   : > { %v1314_v48 = vpop.f32.mrb[55].mxu1 }
 0x173   : > { %v794_v17 = vpop.f32.mrb[40].mxu0 }
 0x174   : > { %v4881_v46 = vadd.f32 %v4720_v6, %v794_v17  ;;  %v796_v22 = vpop.f32.mrb[41].mxu0 }
 0x175   : > { %v4883_v51 = vpop.f32.mrb[56].mxu1 }
 0x176   : > { %v1319_v23 = vpop.f32.mrb[57].mxu1 }
 0x177   : > { %v799_v44 = vpop.f32.mrb[42].mxu0 }
 0x178   : > { %v4886_v33 = vadd.f32 %v4717_v41, %v799_v44  ;;  %v801_v2 = vpop.f32.mrb[43].mxu0 }
 0x179   : > { %v4888_v20 = vpop.f32.mrb[58].mxu1 }
 0x17a   : > { %v1324_v62 = vpop.f32.mrb[59].mxu1 }
 0x17b   : > { %v804_v45 = vpop.f32.mrb[44].mxu0 }
 0x17c   : > { %v4891_v53 = vadd.f32 %v4731_v34, %v804_v45  ;;  %v806_v49 = vpop.f32.mrb[45].mxu0 }
 0x17d   : > { %v4893_v47 = vpop.f32.mrb[60].mxu1 }
 0x17e   : > { %v1329_v6 = vpop.f32.mrb[61].mxu1 }
 0x17f   : > { %v809_v56 = vpop.f32.mrb[46].mxu0 }
 0x180   : > { %v4896_v37 = vadd.f32 %v4728_v39, %v809_v56  ;;  %v811_v36 = vpop.f32.mrb[47].mxu0 }
 0x181   : > { %v4898_v14 = vpop.f32.mrb[62].mxu1 }
 0x182   : > { %v1334_v41 = vpop.f32.mrb[63].mxu1 }
 0x183   : > { %v814_v12 = vpop.f32.mrb[48].mxu0 }
 0x184   : > { %v4901_v48 = vadd.f32 %v4742_v32, %v814_v12  ;;  %v816_v17 = vpop.f32.mrb[49].mxu0 }
 0x185   : > { %v4903_v22 = vpop.f32.mrb[64].mxu1 }
 0x186   : > { %v1339_v34 = vpop.f32.mrb[65].mxu1 }
 0x187   : > { %v819_v23 = vpop.f32.mrb[50].mxu0 }
 0x188   : > { %v4906_v44 = vadd.f32 %v4739_v1, %v819_v23  ;;  %v821_v2 = vpop.f32.mrb[51].mxu0 }
 0x189   : > { %v4908_v62 = vpop.f32.mrb[66].mxu1 }
 0x18a   : > { %v1344_v39 = vpop.f32.mrb[67].mxu1 }
 0x18b   : > { %v824_v45 = vpop.f32.mrb[52].mxu0 }
 0x18c   : > { %v4911_v49 = vadd.f32 %v4753_v28, %v824_v45  ;;  %v826_v6 = vpop.f32.mrb[53].mxu0 }
 0x18d   : > { %v4913_v56 = vpop.f32.mrb[68].mxu1 }
 0x18e   : > { %5492 = vst [vmem:[#allocation27_spill] sm:$0xff] %v4911_v49  ;;  %v1349_v32 = vpop.f32.mrb[69].mxu1 }
 0x18f   : > { %v829_v36 = vpop.f32.mrb[54].mxu0 }
 0x190   : > { %v4916_v41 = vadd.f32 %v4750_v19, %v829_v36  ;;  %v831_v12 = vpop.f32.mrb[55].mxu0 }
 0x191   : > { %v4918_v17 = vpop.f32.mrb[70].mxu1 }
 0x192   : > { %5493 = vst [vmem:[#allocation28_spill] sm:$0xff] %v4916_v41  ;;  %v1354_v1 = vpop.f32.mrb[71].mxu1 }
 0x193   : > { %v834_v34 = vpop.f32.mrb[56].mxu0 }
 0x194   : > { %v4921_v23 = vadd.f32 %v4764_v42, %v834_v34  ;;  %v836_v2 = vpop.f32.mrb[57].mxu0 }
 0x195   : > { %v4923_v39 = vpop.f32.mrb[72].mxu1 }
 0x196   : > { %5494 = vst [vmem:[#allocation29_spill] sm:$0xff] %v4921_v23  ;;  %v1359_v28 = vpop.f32.mrb[73].mxu1 }
 0x197   : > { %v839_v45 = vpop.f32.mrb[58].mxu0 }
 0x198   : > { %v4926_v6 = vadd.f32 %v4761_v58, %v839_v45  ;;  %v841_v32 = vpop.f32.mrb[59].mxu0 }
 0x199   : > { %v4928_v49 = vpop.f32.mrb[74].mxu1 }
 0x19a   : > { %5495 = vst [vmem:[#allocation32_spill] sm:$0xff] %v4926_v6  ;;  %v1364_v19 = vpop.f32.mrb[75].mxu1 }
 0x19b   : > { %v844_v36 = vpop.f32.mrb[60].mxu0 }
 0x19c   : > { %v4931_v12 = vadd.f32 %v4781_v16, %v844_v36  ;;  %v846_v1 = vpop.f32.mrb[61].mxu0 }
 0x19d   : > { %v4933_v41 = vpop.f32.mrb[76].mxu1 }
 0x19e   : > { %5496 = vst [vmem:[#allocation3_spill] sm:$0xff] %v4931_v12  ;;  %v1369_v42 = vpop.f32.mrb[77].mxu1 }
 0x19f   : > { %v849_v34 = vpop.f32.mrb[62].mxu0 }
 0x1a0   : > { %v4936_v2 = vadd.f32 %v4778_v24, %v849_v34  ;;  %v851_v28 = vpop.f32.mrb[63].mxu0 }
 0x1a1   : > { %v4938_v23 = vpop.f32.mrb[78].mxu1 }
 0x1a2   : > { %v1374_v58 = vpop.f32.mrb[79].mxu1 }
 0x1a3   : > { %v3002_v45 = vpop.f32.mrb[64].mxu0 }
 0x1a4   : > { %v1488_v32 = vadd.f32 %v3002_v45, %v4805_v55  ;;  %v1482_v19 = vpop.f32.mrb[65].mxu0 }
 0x1a5   : > { %v4941_v6 = vpop.f32.mrb[80].mxu1  ;;  %v1483_v16 = vadd.f32 %v1482_v19, %v4794_v13 }
 0x1a6   : > { %v4945_v36 = vadd.f32 %v1488_v32, %v4703_v31  ;;  %v1379_v1 = vpop.f32.mrb[81].mxu1 }
 0x1a7   : > { %v4948_v42 = vadd.f32 %v1483_v16, %v4692_v18  ;;  %v3005_v24 = vpop.f32.mrb[66].mxu0 }
 0x1a8   : > { %v1498_v34 = vadd.f32 %v3005_v24, %v4820_v10  ;;  %v1492_v28 = vpop.f32.mrb[67].mxu0 }
 0x1a9   : > { %v4951_v58 = vpop.f32.mrb[82].mxu1  ;;  %v1493_v55 = vadd.f32 %v1492_v28, %v4813_v11 }
 0x1aa   : > { %v4955_v45 = vadd.f32 %v1498_v34, %v4725_v63  ;;  %v1384_v12 = vpop.f32.mrb[83].mxu1 }
 0x1ab   : > { %v4958_v13 = vadd.f32 %v1493_v55, %v4714_v7  ;;  %v3008_v31 = vpop.f32.mrb[68].mxu0 }
 0x1ac   : > { %v1508_v32 = vadd.f32 %v3008_v31, %v4834_v60  ;;  %v1502_v18 = vpop.f32.mrb[69].mxu0 }
 0x1ad   : > { %v4961_v19 = vpop.f32.mrb[84].mxu1  ;;  %v1503_v10 = vadd.f32 %v1502_v18, %v4827_v3 }
 0x1ae   : > { %v4965_v16 = vadd.f32 %v1508_v32, %v4747_v50  ;;  %v1389_v1 = vpop.f32.mrb[85].mxu1 }
 0x1af   : > { %v4968_v11 = vadd.f32 %v1503_v10, %v4736_v59  ;;  %v3011_v63 = vpop.f32.mrb[70].mxu0 }
 0x1b0   : > { %v1518_v12 = vadd.f32 %v3011_v63, %v4850_v26  ;;  %v1512_v7 = vpop.f32.mrb[71].mxu0 }
 0x1b1   : > { %v4971_v24 = vpop.f32.mrb[86].mxu1  ;;  %v1513_v60 = vadd.f32 %v1512_v7, %v4841_v15 }
 0x1b2   : > { %v4975_v34 = vadd.f32 %v1518_v12, %v4775_v54  ;;  %v1394_v28 = vpop.f32.mrb[87].mxu1 }
 0x1b3   : > { %v4978_v3 = vadd.f32 %v1513_v60, %v4758_v29  ;;  %v3014_v50 = vpop.f32.mrb[72].mxu0 }
 0x1b4   : > { %v1528_v55 = vadd.f32 %v3014_v50, %v4866_v43  ;;  %v1522_v59 = vpop.f32.mrb[73].mxu0 }
 0x1b5   : > { %v4981_v31 = vpop.f32.mrb[88].mxu1  ;;  %v1523_v26 = vadd.f32 %v1522_v59, %v4859_v21 }
 0x1b6   : > { %v4985_v32 = vadd.f32 %v1528_v55, %v4802_v52  ;;  %v1399_v18 = vpop.f32.mrb[89].mxu1 }
 0x1b7   : > { %v4988_v15 = vadd.f32 %v1523_v26, %v4791_v25  ;;  %v3017_v54 = vpop.f32.mrb[74].mxu0 }
 0x1b8   : > { %v1538_v10 = vadd.f32 %v3017_v54, %v4878_v38  ;;  %v1532_v29 = vpop.f32.mrb[75].mxu0 }
 0x1b9   : > { %v4991_v1 = vpop.f32.mrb[90].mxu1  ;;  %v1533_v43 = vadd.f32 %v1532_v29, %v4872_v5 }
 0x1ba   : > { %v4995_v63 = vadd.f32 %v1538_v10, %v4818_v9  ;;  %v1404_v12 = vpop.f32.mrb[91].mxu1 }
 0x1bb   : > { %v4998_v21 = vadd.f32 %v1533_v43, %v4811_v40  ;;  %v3020_v52 = vpop.f32.mrb[76].mxu0 }
 0x1bc   : > { %v1548_v7 = vadd.f32 %v3020_v52, %v4888_v20  ;;  %v1542_v25 = vpop.f32.mrb[77].mxu0 }
 0x1bd   : > { %v5001_v60 = vpop.f32.mrb[92].mxu1  ;;  %v1543_v38 = vadd.f32 %v1542_v25, %v4883_v51 }
 0x1be   : > { %v5005_v28 = vadd.f32 %v1548_v7, %v4832_v61  ;;  %v1409_v50 = vpop.f32.mrb[93].mxu1 }
 0x1bf   : > { %v5008_v5 = vadd.f32 %v1543_v38, %v4825_v8  ;;  %v3023_v9 = vpop.f32.mrb[78].mxu0 }
 0x1c0   : > { %v1558_v55 = vadd.f32 %v3023_v9, %v4898_v14  ;;  %v1552_v40 = vpop.f32.mrb[79].mxu0 }
 0x1c1   : > { %v1412_v59 = vpop.f32.mrb[94].mxu1  ;;  %v1553_v26 = vadd.f32 %v1552_v40, %v4893_v47 }
 0x1c2   : > { %v5013_v20 = vadd.f32 %v1558_v55, %v4846_v35  ;;  %v1414_v18 = vpop.f32.mrb[95].mxu1 }
 0x1c3   : > { %v5016_v51 = vadd.f32 %v1553_v26, %v4839_v4  ;;  %v3026_v61 = vpop.f32.mrb[80].mxu0 }
 0x1c4   : > { %v1568_v54 = vadd.f32 %v3026_v61, %v4908_v62  ;;  %v1562_v10 = vpop.f32.mrb[81].mxu0 }
 0x1c5   : > { %v1563_v8 = vadd.f32 %v1562_v10, %v4903_v22  ;;  %v5020_v29 = vpop.f32.mrb[96].mxu1 }
 0x1c6   : > { %v5023_v14 = vadd.f32 %v1568_v54, %v4863_v27  ;;  %v1854_v43 = vpop.f32.mrb[97].mxu1 }
 0x1c7   : > { %v5026_v47 = vadd.f32 %v1563_v8, %v4855_v57  ;;  %v3029_v35 = vpop.f32.mrb[82].mxu0 }
 0x1c8   : > { %v1578_v12 = vadd.f32 %v3029_v35, %v4918_v17  ;;  %v1572_v4 = vpop.f32.mrb[83].mxu0 }
 0x1c9   : > { %v1573_v52 = vadd.f32 %v1572_v4, %v4913_v56  ;;  %v1857_v7 = vpop.f32.mrb[98].mxu1 }
 0x1ca   : > { %v5031_v62 = vadd.f32 %v1578_v12, %v4876_v0  ;;  %v1859_v22 = vpop.f32.mrb[99].mxu1 }
 0x1cb   : > { %v5034_v25 = vadd.f32 %v1573_v52, %v4870_v30  ;;  %v3032_v27 = vpop.f32.mrb[84].mxu0  ;;  %v5497_v52 = vld [vmem:[#allocation28_spill] sm:$0xff] }
 0x1cc   : > { %v1588_v38 = vadd.f32 %v3032_v27, %v4928_v49  ;;  %v1582_v50 = vpop.f32.mrb[85].mxu0 }
 0x1cd   : > { %v1583_v57 = vadd.f32 %v1582_v50, %v4923_v39  ;;  %v1862_v9 = vpop.f32.mrb[100].mxu1 }
 0x1ce   : > { %v5039_v17 = vadd.f32 %v1588_v38, %v4886_v33  ;;  %v1864_v55 = vpop.f32.mrb[101].mxu1 }
 0x1cf   : > { %v5042_v56 = vadd.f32 %v1583_v57, %v4881_v46  ;;  %v3035_v0 = vpop.f32.mrb[86].mxu0 }
 0x1d0   : > { %v1598_v40 = vadd.f32 %v3035_v0, %v4938_v23  ;;  %v1592_v26 = vpop.f32.mrb[87].mxu0  ;;  %v5500_v0 = vld [vmem:[#allocation29_spill] sm:$0xff] }
 0x1d1   : > { %v1593_v30 = vadd.f32 %v1592_v26, %v4933_v41  ;;  %v1867_v18 = vpop.f32.mrb[102].mxu1 }
 0x1d2   : > { %v5047_v49 = vadd.f32 %v1598_v40, %v4896_v37  ;;  %v1869_v61 = vpop.f32.mrb[103].mxu1 }
 0x1d3   : > { %v5050_v39 = vadd.f32 %v1593_v30, %v4891_v53  ;;  %v3038_v33 = vpop.f32.mrb[88].mxu0 }
 0x1d4   : > { %v1608_v54 = vadd.f32 %v3038_v33, %v4951_v58  ;;  %v1602_v10 = vpop.f32.mrb[89].mxu0 }
 0x1d5   : > { %v1603_v46 = vadd.f32 %v1602_v10, %v4941_v6  ;;  %v1872_v8 = vpop.f32.mrb[104].mxu1  ;;  %v5498_v6 = vld [vmem:[#allocation27_spill] sm:$0xff] }
 0x1d6   : > { %v5055_v23 = vadd.f32 %v1608_v54, %v4906_v44  ;;  %v1874_v43 = vpop.f32.mrb[105].mxu1 }
 0x1d7   : > { %v5058_v41 = vadd.f32 %v1603_v46, %v4901_v48  ;;  %v3041_v37 = vpop.f32.mrb[90].mxu0 }
 0x1d8   : > { %v1618_v35 = vadd.f32 %v3041_v37, %v4971_v24  ;;  %v1612_v12 = vpop.f32.mrb[91].mxu0  ;;  %v5499_v24 = vld [vmem:[#allocation32_spill] sm:$0xff] }
 0x1d9   : > { %v1613_v53 = vadd.f32 %v1612_v12, %v4961_v19  ;;  %v1877_v4 = vpop.f32.mrb[106].mxu1 }
 0x1da   : > { %v5063_v58 = vadd.f32 %v1618_v35, %v5497_v52  ;;  %v1879_v22 = vpop.f32.mrb[107].mxu1 }
 0x1db   : > { %v5066_v27 = vadd.f32 %v1613_v53, %v5498_v6  ;;  %v3044_v44 = vpop.f32.mrb[92].mxu0 }
 0x1dc   : > { %v1628_v38 = vadd.f32 %v3044_v44, %v4991_v1  ;;  %v1622_v48 = vpop.f32.mrb[93].mxu0 }
 0x1dd   : > { %v1623_v50 = vadd.f32 %v1622_v48, %v4981_v31  ;;  %v1882_v57 = vpop.f32.mrb[108].mxu1  ;;  %v5501_v31 = vld [vmem:[#allocation3_spill] sm:$0xff] }
 0x1de   : > { %v5071_v55 = vadd.f32 %v1628_v38, %v5499_v24  ;;  %v1884_v19 = vpop.f32.mrb[109].mxu1 }
 0x1df   : > { %v5074_v40 = vadd.f32 %v1623_v50, %v5500_v0  ;;  %v3047_v26 = vpop.f32.mrb[94].mxu0 }
 0x1e0   : > { %v1638_v30 = vadd.f32 %v3047_v26, %v1412_v59  ;;  %v1632_v61 = vpop.f32.mrb[95].mxu0 }
 0x1e1   : > { %v1633_v33 = vadd.f32 %v1632_v61, %v5001_v60  ;;  %v1887_v54 = vpop.f32.mrb[110].mxu1 }
 0x1e2   : > { %v5078_v10 = vadd.f32 %v1638_v30, %v4936_v2  ;;  %v1889_v1 = vpop.f32.mrb[111].mxu1 }
 0x1e3   : > { %v5082_v46 = vadd.f32 %v1633_v33, %v5501_v31  ;;  %v3082_v43 = vpop.f32.mrb[96].mxu0 }
 0x1e4   : > { %v2083_v37 = vadd.f32 %v3082_v43, %v1857_v7  ;;  %v2077_v35 = vpop.f32.mrb[97].mxu0 }
 0x1e5   : > { %v1892_v60 = vpop.f32.mrb[112].mxu1  ;;  %v2078_v59 = vadd.f32 %v2077_v35, %v5020_v29 }
 0x1e6   : > { %v5091_v2 = vadd.f32 %v2083_v37, %v4945_v36  ;;  %v1894_v12 = vpop.f32.mrb[113].mxu1 }
 0x1e7   : > { %v5094_v53 = vadd.f32 %v2078_v59, %v4948_v42  ;;  %v3085_v7 = vpop.f32.mrb[98].mxu0 }
 0x1e8   : > { %2333 = vst [vmem:[%s5087_s22 + $0x8] sm:$0xff] %v5091_v2  ;;  %v2093_v52 = vadd.f32 %v3085_v7, %v1867_v18  ;;  %v2087_v22 = vpop.f32.mrb[99].mxu0 }
 0x1e9   : > { %2332 = vst [vmem:[%s5087_s22] sm:$0xff] %v5094_v53  ;;  %v1897_v6 = vpop.f32.mrb[114].mxu1  ;;  %v2088_v44 = vadd.f32 %v2087_v22, %v1862_v9  ;;  %v2364_v36 = vadd.f32 %v5091_v2, %v5094_v53 }
 0x1ea   : > { %v5101_v29 = vadd.f32 %v2093_v52, %v4955_v45  ;;  %v1899_v38 = vpop.f32.mrb[115].mxu1 }
 0x1eb   : > { %v5106_v42 = vadd.f32 %v2088_v44, %v4958_v13  ;;  %v3088_v48 = vpop.f32.mrb[100].mxu0 }
 0x1ec   : > { %2335 = vst [vmem:[%s5087_s22 + $0x18] sm:$0xff] %v5101_v29  ;;  %v2103_v18 = vadd.f32 %v3088_v48, %v1877_v4  ;;  %v2097_v50 = vpop.f32.mrb[101].mxu0 }
 0x1ed   : > { %2334 = vst [vmem:[%s5087_s22 + $0x10] sm:$0xff] %v5106_v42  ;;  %v2365_v9 = vadd.f32 %v2364_v36, %v5106_v42  ;;  %v1902_v45 = vpop.f32.mrb[116].mxu1  ;;  %v2098_v24 = vadd.f32 %v2097_v50, %v1872_v8 }
 0x1ee   : > { %v5114_v19 = vadd.f32 %v2103_v18, %v4965_v16  ;;  %v1904_v0 = vpop.f32.mrb[117].mxu1 }
 0x1ef   : > { %v5117_v13 = vadd.f32 %v2098_v24, %v4968_v11  ;;  %v2366_v26 = vadd.f32 %v2365_v9, %v5101_v29  ;;  %v3091_v30 = vpop.f32.mrb[102].mxu0 }
 0x1f0   : > { %2337 = vst [vmem:[%s5087_s22 + $0x28] sm:$0xff] %v5114_v19  ;;  %v2113_v4 = vadd.f32 %v3091_v30, %v1887_v54  ;;  %v2107_v61 = vpop.f32.mrb[103].mxu0 }
 0x1f1   : > { %2336 = vst [vmem:[%s5087_s22 + $0x20] sm:$0xff] %v5117_v13  ;;  %v2367_v8 = vadd.f32 %v2366_v26, %v5117_v13  ;;  %v1907_v33 = vpop.f32.mrb[118].mxu1  ;;  %v2108_v16 = vadd.f32 %v2107_v61, %v1882_v57 }
 0x1f2   : > { %v5126_v1 = vadd.f32 %v2113_v4, %v4975_v34  ;;  %v1909_v31 = vpop.f32.mrb[119].mxu1 }
 0x1f3   : > { %v5129_v11 = vadd.f32 %v2108_v16, %v4978_v3  ;;  %v2368_v43 = vadd.f32 %v2367_v8, %v5114_v19  ;;  %v3094_v37 = vpop.f32.mrb[104].mxu0 }
 0x1f4   : > { %2339 = vst [vmem:[%s5087_s22 + $0x38] sm:$0xff] %v5126_v1  ;;  %v2123_v54 = vadd.f32 %v3094_v37, %v1897_v6  ;;  %v2117_v35 = vpop.f32.mrb[105].mxu0 }
 0x1f5   : > { %2338 = vst [vmem:[%s5087_s22 + $0x30] sm:$0xff] %v5129_v11  ;;  %v2369_v57 = vadd.f32 %v2368_v43, %v5129_v11  ;;  %v1912_v59 = vpop.f32.mrb[120].mxu1  ;;  %v2118_v34 = vadd.f32 %v2117_v35, %v1892_v60 }
 0x1f6   : > { %v5138_v12 = vadd.f32 %v2123_v54, %v4985_v32  ;;  %v1914_v7 = vpop.f32.mrb[121].mxu1 }
 0x1f7   : > { %v5141_v3 = vadd.f32 %v2118_v34, %v4988_v15  ;;  %v2370_v52 = vadd.f32 %v2369_v57, %v5126_v1  ;;  %v3097_v22 = vpop.f32.mrb[106].mxu0 }
 0x1f8   : > { %2341 = vst [vmem:[%s5087_s22 + $0x48] sm:$0xff] %v5138_v12  ;;  %v2133_v6 = vadd.f32 %v3097_v22, %v1907_v33  ;;  %v2127_v44 = vpop.f32.mrb[107].mxu0 }
 0x1f9   : > { %2340 = vst [vmem:[%s5087_s22 + $0x40] sm:$0xff] %v5141_v3  ;;  %v2371_v60 = vadd.f32 %v2370_v52, %v5141_v3  ;;  %v1917_v38 = vpop.f32.mrb[122].mxu1  ;;  %v2128_v32 = vadd.f32 %v2127_v44, %v1902_v45 }
 0x1fa   : > { %v5150_v36 = vadd.f32 %v2133_v6, %v4995_v63  ;;  %v1919_v15 = vpop.f32.mrb[123].mxu1 }
 0x1fb   : > { %v5153_v48 = vadd.f32 %v2128_v32, %v4998_v21  ;;  %v2372_v18 = vadd.f32 %v2371_v60, %v5138_v12  ;;  %v3100_v50 = vpop.f32.mrb[108].mxu0 }
 0x1fc   : > { %2343 = vst [vmem:[%s5087_s22 + $0x58] sm:$0xff] %v5150_v36  ;;  %v2143_v9 = vadd.f32 %v3100_v50, %v1917_v38  ;;  %v2137_v24 = vpop.f32.mrb[109].mxu0 }
 0x1fd   : > { %2342 = vst [vmem:[%s5087_s22 + $0x50] sm:$0xff] %v5153_v48  ;;  %v1922_v0 = vpop.f32.mrb[124].mxu1  ;;  %v2138_v45 = vadd.f32 %v2137_v24, %v1912_v59  ;;  %v2373_v63 = vadd.f32 %v2372_v18, %v5153_v48 }
 0x1fe   : > { %v5162_v26 = vadd.f32 %v2143_v9, %v5005_v28  ;;  %v1924_v21 = vpop.f32.mrb[125].mxu1 }
 0x1ff   : > { %v5165_v30 = vadd.f32 %v2138_v45, %v5008_v5  ;;  %v3103_v4 = vpop.f32.mrb[110].mxu0  ;;  %v2374_v16 = vadd.f32 %v2373_v63, %v5150_v36 }
 0x200   : > { %2345 = vst [vmem:[%s5087_s22 + $0x68] sm:$0xff] %v5162_v26  ;;  %v2147_v61 = vpop.f32.mrb[111].mxu0 }
 0x201   : > { %2344 = vst [vmem:[%s5087_s22 + $0x60] sm:$0xff] %v5165_v30  ;;  %v1927_v8 = vpop.f32.mrb[126].mxu1  ;;  %v2148_v33 = vadd.f32 %v2147_v61, %v1922_v0  ;;  %v2375_v57 = vadd.f32 %v2374_v16, %v5165_v30 }
 0x202   : > { %v2153_v31 = vadd.f32 %v3103_v4, %v1927_v8  ;;  %v1929_v43 = vpop.f32.mrb[127].mxu1 }
 0x203   : > { %v5173_v28 = vadd.f32 %v2148_v33, %v5016_v51  ;;  %v3106_v37 = vpop.f32.mrb[112].mxu0 }
 0x204   : > { %v5176_v5 = vadd.f32 %v2153_v31, %v5013_v20  ;;  %v2157_v54 = vpop.f32.mrb[113].mxu0  ;;  %v2376_v20 = vadd.f32 %v2375_v57, %v5162_v26 }
 0x205   : > { %2346 = vst [vmem:[%s5087_s22 + $0x70] sm:$0xff] %v5173_v28  ;;  %v1932_v35 = vpop.f32.mrb[128].mxu1 }
 0x206   : > { %2347 = vst [vmem:[%s5087_s22 + $0x78] sm:$0xff] %v5176_v5  ;;  %v2158_v59 = vadd.f32 %v2157_v54, %v1932_v35  ;;  %v1934_v34 = vpop.f32.mrb[129].mxu1  ;;  %v2377_v18 = vadd.f32 %v2376_v20, %v5173_v28 }
 0x207   : > { %v3109_v7 = vpop.f32.mrb[114].mxu0 }
 0x208   : > { %v5184_v52 = vadd.f32 %v2158_v59, %v5026_v47  ;;  %v2167_v51 = vpop.f32.mrb[115].mxu0  ;;  %v2378_v63 = vadd.f32 %v2377_v18, %v5176_v5 }
 0x209   : > { %v1937_v22 = vpop.f32.mrb[130].mxu1 }
 0x20a   : > { %2348 = vst [vmem:[%s5087_s22 + $0x80] sm:$0xff] %v5184_v52  ;;  %v2163_v6 = vadd.f32 %v3106_v37, %v1937_v22  ;;  %v1939_v44 = vpop.f32.mrb[131].mxu1  ;;  %v2379_v16 = vadd.f32 %v2378_v63, %v5184_v52 }
 0x20b   : > { %v3112_v60 = vpop.f32.mrb[116].mxu0 }
 0x20c   : > { %v5190_v38 = vadd.f32 %v2163_v6, %v5023_v14  ;;  %v2177_v32 = vpop.f32.mrb[117].mxu0 }
 0x20d   : > { %v1942_v15 = vpop.f32.mrb[132].mxu1 }
 0x20e   : > { %2349 = vst [vmem:[%s5087_s22 + $0x88] sm:$0xff] %v5190_v38  ;;  %v2168_v47 = vadd.f32 %v2167_v51, %v1942_v15  ;;  %v1944_v50 = vpop.f32.mrb[133].mxu1  ;;  %v2380_v37 = vadd.f32 %v2379_v16, %v5190_v38 }
 0x20f   : > { %v3115_v9 = vpop.f32.mrb[118].mxu0 }
 0x210   : > { %v5196_v24 = vadd.f32 %v2168_v47, %v5034_v25  ;;  %v2187_v0 = vpop.f32.mrb[119].mxu0 }
 0x211   : > { %v1947_v45 = vpop.f32.mrb[134].mxu1 }
 0x212   : > { %2350 = vst [vmem:[%s5087_s22 + $0x90] sm:$0xff] %v5196_v24  ;;  %v2173_v14 = vadd.f32 %v3109_v7, %v1947_v45  ;;  %v1949_v21 = vpop.f32.mrb[135].mxu1 }
 0x213   : > { %v3118_v4 = vpop.f32.mrb[120].mxu0 }
 0x214   : > { %v5202_v61 = vadd.f32 %v2173_v14, %v5031_v62  ;;  %v2197_v8 = vpop.f32.mrb[121].mxu0  ;;  %v2381_v62 = vadd.f32 %v2380_v37, %v5196_v24 }
 0x215   : > { %v1952_v33 = vpop.f32.mrb[136].mxu1 }
 0x216   : > { %2351 = vst [vmem:[%s5087_s22 + $0x98] sm:$0xff] %v5202_v61  ;;  %v2178_v25 = vadd.f32 %v2177_v32, %v1952_v33  ;;  %v1954_v31 = vpop.f32.mrb[137].mxu1  ;;  %v2382_v51 = vadd.f32 %v2381_v62, %v5202_v61 }
 0x217   : > { %v3121_v43 = vpop.f32.mrb[122].mxu0 }
 0x218   : > { %v5209_v54 = vadd.f32 %v2178_v25, %v5042_v56  ;;  %v2207_v35 = vpop.f32.mrb[123].mxu0 }
 0x219   : > { %v1957_v57 = vpop.f32.mrb[138].mxu1 }
 0x21a   : > { %2352 = vst [vmem:[%s5087_s22 + $0xa0] sm:$0xff] %v5209_v54  ;;  %v2183_v59 = vadd.f32 %v3112_v60, %v1957_v57  ;;  %v1959_v34 = vpop.f32.mrb[139].mxu1  ;;  %v2383_v56 = vadd.f32 %v2382_v51, %v5209_v54 }
 0x21b   : > { %v3124_v7 = vpop.f32.mrb[124].mxu0 }
 0x21c   : > { %v5216_v22 = vadd.f32 %v2183_v59, %v5039_v17  ;;  %v2217_v20 = vpop.f32.mrb[125].mxu0 }
 0x21d   : > { %v1962_v6 = vpop.f32.mrb[140].mxu1 }
 0x21e   : > { %2353 = vst [vmem:[%s5087_s22 + $0xa8] sm:$0xff] %v5216_v22  ;;  %v2188_v44 = vadd.f32 %v2187_v0, %v1962_v6  ;;  %v1964_v32 = vpop.f32.mrb[141].mxu1  ;;  %v2384_v60 = vadd.f32 %v2383_v56, %v5216_v22 }
 0x21f   : > { %v3127_v15 = vpop.f32.mrb[126].mxu0 }
 0x220   : > { %v5223_v18 = vadd.f32 %v2188_v44, %v5050_v39  ;;  %v2227_v47 = vpop.f32.mrb[127].mxu0 }
 0x221   : > { %v1967_v50 = vpop.f32.mrb[142].mxu1 }
 0x222   : > { %2354 = vst [vmem:[%s5087_s22 + $0xb0] sm:$0xff] %v5223_v18  ;;  %v2385_v17 = vadd.f32 %v2384_v60, %v5223_v18  ;;  %v2193_v45 = vadd.f32 %v3115_v9, %v1967_v50  ;;  %v1969_v63 = vpop.f32.mrb[143].mxu1 }
 0x224   : > { %v5229_v14 = vadd.f32 %v2193_v45, %v5047_v49 }
 0x225   : > { %v1972_v0 = vpop.f32.mrb[144].mxu1 }
 0x226   : > { %2355 = vst [vmem:[%s5087_s22 + $0xb8] sm:$0xff] %v5229_v14  ;;  %v2386_v21 = vadd.f32 %v2385_v17, %v5229_v14  ;;  %v2198_v33 = vadd.f32 %v2197_v8, %v1972_v0  ;;  %v1974_v39 = vpop.f32.mrb[145].mxu1 }
 0x228   : > { %v5235_v16 = vadd.f32 %v2198_v33, %v5058_v41 }
 0x229   : > { %v1977_v25 = vpop.f32.mrb[146].mxu1 }
 0x22a   : > { %2356 = vst [vmem:[%s5087_s22 + $0xc0] sm:$0xff] %v5235_v16  ;;  %v2387_v9 = vadd.f32 %v2386_v21, %v5235_v16  ;;  %v2203_v31 = vadd.f32 %v3118_v4, %v1977_v25  ;;  %v1979_v49 = vpop.f32.mrb[147].mxu1 }
 0x22c   : > { %v5241_v37 = vadd.f32 %v2203_v31, %v5055_v23 }
 0x22d   : > { %v1982_v57 = vpop.f32.mrb[148].mxu1 }
 0x22e   : > { %2357 = vst [vmem:[%s5087_s22 + $0xc8] sm:$0xff] %v5241_v37  ;;  %v2388_v8 = vadd.f32 %v2387_v9, %v5241_v37  ;;  %v2208_v62 = vadd.f32 %v2207_v35, %v1982_v57  ;;  %v1984_v41 = vpop.f32.mrb[149].mxu1 }
 0x230   : > { %v5247_v59 = vadd.f32 %v2208_v62, %v5066_v27 }
 0x231   : > { %v1987_v34 = vpop.f32.mrb[150].mxu1 }
 0x232   : > { %2358 = vst [vmem:[%s5087_s22 + $0xd0] sm:$0xff] %v5247_v59  ;;  %v2389_v4 = vadd.f32 %v2388_v8, %v5247_v59  ;;  %v2213_v51 = vadd.f32 %v3121_v43, %v1987_v34  ;;  %v1989_v23 = vpop.f32.mrb[151].mxu1 }
 0x234   : > { %v5253_v6 = vadd.f32 %v2213_v51, %v5063_v58 }
 0x235   : > { %v1992_v56 = vpop.f32.mrb[152].mxu1 }
 0x236   : > { %2359 = vst [vmem:[%s5087_s22 + $0xd8] sm:$0xff] %v5253_v6  ;;  %v2390_v35 = vadd.f32 %v2389_v4, %v5253_v6  ;;  %v2218_v44 = vadd.f32 %v2217_v20, %v1992_v56  ;;  %v1994_v27 = vpop.f32.mrb[153].mxu1 }
 0x238   : > { %v5259_v32 = vadd.f32 %v2218_v44, %v5074_v40 }
 0x239   : > { %v1997_v60 = vpop.f32.mrb[154].mxu1 }
 0x23a   : > { %2360 = vst [vmem:[%s5087_s22 + $0xe0] sm:$0xff] %v5259_v32  ;;  %v2391_v43 = vadd.f32 %v2390_v35, %v5259_v32  ;;  %v2223_v50 = vadd.f32 %v3124_v7, %v1997_v60  ;;  %v1999_v58 = vpop.f32.mrb[155].mxu1 }
 0x23c   : > { %v5265_v17 = vadd.f32 %v2223_v50, %v5071_v55 }
 0x23d   : > { %v2002_v45 = vpop.f32.mrb[156].mxu1 }
 0x23e   : > { %2361 = vst [vmem:[%s5087_s22 + $0xe8] sm:$0xff] %v5265_v17  ;;  %v2392_v20 = vadd.f32 %v2391_v43, %v5265_v17  ;;  %v2228_v63 = vadd.f32 %v2227_v47, %v2002_v45  ;;  %v2004_v0 = vpop.f32.mrb[157].mxu1 }
 0x240   : > { %v5271_v40 = vadd.f32 %v2228_v63, %v5082_v46 }
 0x241   : > { %v2007_v21 = vpop.f32.mrb[158].mxu1 }
 0x242   : > { %2362 = vst [vmem:[%s5087_s22 + $0xf0] sm:$0xff] %v5271_v40  ;;  %v2393_v33 = vadd.f32 %v2392_v20, %v5271_v40  ;;  %v2233_v7 = vadd.f32 %v3127_v15, %v2007_v21  ;;  %v2009_v39 = vpop.f32.mrb[159].mxu1 }
 0x244   : > { %v5277_v55 = vadd.f32 %v2233_v7, %v5078_v10 }
 0x246   : > { %2363 = vst [vmem:[%s5087_s22 + $0xf8] sm:$0xff] %v5277_v55  ;;  %v2394_v25 = vadd.f32 %v2393_v33, %v5277_v55 }
 0x248   : > { %v2395_v9 = vrot.slane %v2394_v25, 4 }
 0x24a   : > { %v2396_v47 = vadd.f32 %v2395_v9, %v2394_v25 }
 0x24c   : > { %v2397_v31 = vrot.slane %v2396_v47, 2 }
 0x24e   : > { %v2398_v49 = vadd.f32 %v2397_v31, %v2396_v47 }
 0x250   : > { %v2399_v46 = vrot.slane %v2398_v49, 1 }
 0x252   : > { %v5282_v57 = vadd.f32 %v2399_v46, %v2398_v49 }
 0x254   : > { %v5285_v8 = vmul.f32 0.00390625, %v5282_v57 }
 0x256   : > { %v2402_v15 = vsub.f32 %v5094_v53, %v5285_v8  ;;  %v2403_v10 = vsub.f32 %v5091_v2, %v5285_v8  ;;  %v2404_v62 = vsub.f32 %v5106_v42, %v5285_v8  ;;  %v2405_v4 = vsub.f32 %v5101_v29, %v5285_v8 }
 0x257   : > { %v2406_v51 = vsub.f32 %v5117_v13, %v5285_v8  ;;  %v2407_v35 = vsub.f32 %v5114_v19, %v5285_v8  ;;  %v2408_v2 = vsub.f32 %v5129_v11, %v5285_v8  ;;  %v2409_v60 = vsub.f32 %v5126_v1, %v5285_v8 }
 0x258   : > { %v2434_v41 = vmul.f32 %v2402_v15, %v2402_v15  ;;  %v2435_v34 = vmul.f32 %v2403_v10, %v2403_v10  ;;  %v2436_v23 = vmul.f32 %v2404_v62, %v2404_v62  ;;  %v2437_v53 = vmul.f32 %v2405_v4, %v2405_v4 }
 0x259   : > { %v2438_v27 = vmul.f32 %v2406_v51, %v2406_v51  ;;  %v2439_v43 = vmul.f32 %v2407_v35, %v2407_v35  ;;  %v2410_v13 = vsub.f32 %v5141_v3, %v5285_v8  ;;  %v2440_v50 = vmul.f32 %v2408_v2, %v2408_v2 }
 0x25a   : > { %v2466_v56 = vadd.f32 %v2435_v34, %v2434_v41  ;;  %v2411_v19 = vsub.f32 %v5138_v12, %v5285_v8  ;;  %v2441_v45 = vmul.f32 %v2409_v60, %v2409_v60  ;;  %v2412_v11 = vsub.f32 %v5153_v48, %v5285_v8 }
 0x25b   : > { %v2442_v63 = vmul.f32 %v2410_v13, %v2410_v13  ;;  %v2413_v1 = vsub.f32 %v5150_v36, %v5285_v8  ;;  %v2414_v3 = vsub.f32 %v5165_v30, %v5285_v8  ;;  %v2415_v12 = vsub.f32 %v5162_v26, %v5285_v8 }
 0x25c   : > { %v2467_v44 = vadd.f32 %v2466_v56, %v2436_v23  ;;  %v2443_v21 = vmul.f32 %v2411_v19, %v2411_v19  ;;  %v2444_v7 = vmul.f32 %v2412_v11, %v2412_v11  ;;  %v2416_v48 = vsub.f32 %v5173_v28, %v5285_v8 }
 0x25d   : > { %v2445_v25 = vmul.f32 %v2413_v1, %v2413_v1  ;;  %v2446_v47 = vmul.f32 %v2414_v3, %v2414_v3  ;;  %v2417_v36 = vsub.f32 %v5176_v5, %v5285_v8  ;;  %v2447_v49 = vmul.f32 %v2415_v12, %v2415_v12 }
 0x25e   : > { %v2468_v42 = vadd.f32 %v2467_v44, %v2437_v53  ;;  %v2418_v30 = vsub.f32 %v5184_v52, %v5285_v8  ;;  %v2448_v15 = vmul.f32 %v2416_v48, %v2416_v48  ;;  %v2419_v26 = vsub.f32 %v5190_v38, %v5285_v8 }
 0x25f   : > { %v2449_v62 = vmul.f32 %v2417_v36, %v2417_v36  ;;  %v2420_v28 = vsub.f32 %v5196_v24, %v5285_v8  ;;  %v2421_v5 = vsub.f32 %v5202_v61, %v5285_v8  ;;  %v2422_v52 = vsub.f32 %v5209_v54, %v5285_v8 }
 0x260   : > { %v2469_v29 = vadd.f32 %v2468_v42, %v2438_v27  ;;  %v2450_v34 = vmul.f32 %v2418_v30, %v2418_v30  ;;  %v2451_v51 = vmul.f32 %v2419_v26, %v2419_v26  ;;  %v2423_v38 = vsub.f32 %v5216_v22, %v5285_v8 }
 0x261   : > { %v2452_v56 = vmul.f32 %v2420_v28, %v2420_v28  ;;  %v2453_v53 = vmul.f32 %v2421_v5, %v2421_v5  ;;  %v2424_v24 = vsub.f32 %v5223_v18, %v5285_v8  ;;  %v2454_v2 = vmul.f32 %v2422_v52, %v2422_v52 }
 0x262   : > { %v2470_v58 = vadd.f32 %v2469_v29, %v2439_v43  ;;  %v2425_v61 = vsub.f32 %v5229_v14, %v5285_v8  ;;  %v2455_v42 = vmul.f32 %v2423_v38, %v2423_v38  ;;  %v2426_v54 = vsub.f32 %v5235_v16, %v5285_v8 }
 0x263   : > { %v2456_v43 = vmul.f32 %v2424_v24, %v2424_v24  ;;  %v2427_v22 = vsub.f32 %v5241_v37, %v5285_v8  ;;  %v2428_v18 = vsub.f32 %v5247_v59, %v5285_v8  ;;  %v2429_v14 = vsub.f32 %v5253_v6, %v5285_v8 }
 0x264   : > { %v2471_v20 = vadd.f32 %v2470_v58, %v2440_v50  ;;  %v2457_v13 = vmul.f32 %v2425_v61, %v2425_v61  ;;  %v2458_v58 = vmul.f32 %v2426_v54, %v2426_v54  ;;  %v2430_v16 = vsub.f32 %v5259_v32, %v5285_v8 }
 0x265   : > { %v2460_v11 = vmul.f32 %v2428_v18, %v2428_v18  ;;  %v2431_v37 = vsub.f32 %v5265_v17, %v5285_v8  ;;  %v2432_v59 = vsub.f32 %v5271_v40, %v5285_v8  ;;  %v2433_v6 = vsub.f32 %v5277_v55, %v5285_v8 }
 0x266   : > { %v2472_v0 = vadd.f32 %v2471_v20, %v2441_v45  ;;  %v2459_v45 = vmul.f32 %v2427_v22, %v2427_v22 }
 0x267   : > { %v2463_v3 = vmul.f32 %v2431_v37, %v2431_v37  ;;  %v2465_v12 = vmul.f32 %v2433_v6, %v2433_v6 }
 0x268   : > { %v2473_v33 = vadd.f32 %v2472_v0, %v2442_v63  ;;  %v2461_v0 = vmul.f32 %v2429_v14, %v2429_v14 }
 0x26a   : > { %v2474_v39 = vadd.f32 %v2473_v33, %v2443_v21  ;;  %v2462_v21 = vmul.f32 %v2430_v16, %v2430_v16 }
 0x26c   : > { %v2475_v9 = vadd.f32 %v2474_v39, %v2444_v7  ;;  %v2464_v39 = vmul.f32 %v2432_v59, %v2432_v59 }
 0x26e   : > { %v2476_v31 = vadd.f32 %v2475_v9, %v2445_v25 }
 0x270   : > { %v2477_v46 = vadd.f32 %v2476_v31, %v2446_v47 }
 0x272   : > { %v2478_v10 = vadd.f32 %v2477_v46, %v2447_v49 }
 0x274   : > { %v2479_v41 = vadd.f32 %v2478_v10, %v2448_v15 }
 0x276   : > { %v2480_v4 = vadd.f32 %v2479_v41, %v2449_v62 }
 0x278   : > { %v2481_v23 = vadd.f32 %v2480_v4, %v2450_v34 }
 0x27a   : > { %v2482_v35 = vadd.f32 %v2481_v23, %v2451_v51 }
 0x27c   : > { %v2483_v44 = vadd.f32 %v2482_v35, %v2452_v56 }
 0x27e   : > { %v2484_v27 = vadd.f32 %v2483_v44, %v2453_v53 }
 0x280   : > { %v2485_v60 = vadd.f32 %v2484_v27, %v2454_v2 }
 0x282   : > { %v2486_v29 = vadd.f32 %v2485_v60, %v2455_v42 }
 0x284   : > { %v2487_v50 = vadd.f32 %v2486_v29, %v2456_v43 }
 0x286   : > { %v2488_v19 = vadd.f32 %v2487_v50, %v2457_v13 }
 0x288   : > { %v2489_v20 = vadd.f32 %v2488_v19, %v2458_v58 }
 0x28a   : > { %v2490_v63 = vadd.f32 %v2489_v20, %v2459_v45 }
 0x28c   : > { %v2491_v1 = vadd.f32 %v2490_v63, %v2460_v11 }
 0x28e   : > { %v2492_v33 = vadd.f32 %v2491_v1, %v2461_v0 }
 0x290   : > { %v2493_v7 = vadd.f32 %v2492_v33, %v2462_v21 }
 0x292   : > { %v2494_v32 = vadd.f32 %v2493_v7, %v2463_v3 }
 0x294   : > { %v2495_v25 = vadd.f32 %v2494_v32, %v2464_v39 }
 0x296   : > { %v2496_v9 = vadd.f32 %v2495_v25, %v2465_v12 }
 0x298   : > { %v2497_v48 = vrot.slane %v2496_v9, 4 }
 0x29a   : > { %v2498_v17 = vadd.f32 %v2497_v48, %v2496_v9 }
 0x29c   : > { %v2499_v47 = vrot.slane %v2498_v17, 2 }
 0x29e   : > { %v2500_v31 = vadd.f32 %v2499_v47, %v2498_v17 }
 0x2a0   : > { %v2501_v36 = vrot.slane %v2500_v31, 1 }
 0x2a2   : > { %v2502_v40 = vadd.f32 %v2501_v36, %v2500_v31 }
 0x2a4   : > { %v2504_v55 = vsel %vm2503_vm2, %v5282_v57, %v2502_v40 }
 0x2a5   : > { %2505 = vst [vmem:[%s214_s27] sm:$0x3] %v2504_v55 }
 0x2a6 PF: > { %s14_s14 = sadd.s32 1, %s3444_s14   ;;  %s5502_s12 = smov %s3440_s13 }
 0x2a7   : > { %p11_p5 = scmp.ge.s32.totalorder %s14_s14, 4   ;;  %s5503_s13 = smov %s5505_s15 }
 0x2a9   :  { %13 = sbr.rel (!%p11_p5) target bundleno = 2 (0x2), region = 73 }

</bundles_post_ra>
